<compile_context>
chip_gen: v7x
topology: tpu7x:2x2x1
jax: 0.10.0
libtpu: 0.0.40
codegen_flags: <defaults>
</compile_context>

<pallas_src>
import jax
import jax.numpy as jnp
from jax import lax
from jax.experimental import pallas as pl
from jax.experimental.pallas import tpu as pltpu

_NORM_EPS = 1e-12   # F.normalize eps (clamp_min on the norm)
_BN_EPS = 1e-5      # nn.BatchNorm1d default eps


# ---------------------------------------------------------------------------
# Kernel 1: HBM-streaming channel-normalize + sum over N (the heavy part).
# ---------------------------------------------------------------------------
def _normalize_sum_kernel(x_ref, o_ref):
    k = pl.program_id(1)                     # inner (reduction) grid axis

    @pl.when(k == 0)
    def _init():
        o_ref[...] = jnp.zeros_like(o_ref)   # o_ref is the resident accumulator

    # x block: (B, D, tn) in native NCW layout (D on sublanes, tn on lanes).
    x = x_ref[...].astype(jnp.float32)

    # F.normalize(x, p=2, dim=1): sublane reduce over D -> (B, 1, tn).
    sq = jnp.sum(x * x, axis=1, keepdims=True)
    # Exact reciprocal on the small norm tensor (clamp_min(eps) like PyTorch).
    inv = pl.reciprocal(jnp.maximum(jnp.sqrt(sq), _NORM_EPS), approx=False)

    # Partial torch.sum(x, dim=2): broadcast mul + lane reduce -> (B, D).
    o_ref[...] += jnp.sum(x * inv, axis=2)


# ---------------------------------------------------------------------------
# Kernel 2: tiny epilogue -- combine split partials, BatchNorm1d (training
# mode, batch stats, biased variance), affine, final L2 normalize.
# ---------------------------------------------------------------------------
def _bn_l2_kernel(partials_ref, gamma_ref, beta_ref, o_ref):
    set_vec = jnp.sum(partials_ref[...], axis=0)                 # (B, D)

    mu = jnp.mean(set_vec, axis=0, keepdims=True)                # (1, D)
    var = jnp.mean((set_vec - mu) ** 2, axis=0, keepdims=True)   # biased
    y = (set_vec - mu) / jnp.sqrt(var + _BN_EPS)
    y = y * gamma_ref[...] + beta_ref[...]                       # (B, D)

    # F.normalize(set_vec, p=2, dim=1), exact reciprocal on tiny (B, 1).
    row_norm = jnp.sqrt(jnp.sum(y * y, axis=-1, keepdims=True))
    inv_row = pl.reciprocal(jnp.maximum(row_norm, _NORM_EPS), approx=False)
    o_ref[...] = (y * inv_row).astype(o_ref.dtype)


# ---------------------------------------------------------------------------
# Tiling / hardware helpers.
# ---------------------------------------------------------------------------
def _vmem_capacity_bytes():
    try:
        return int(pltpu.get_tpu_info().vmem_capacity_bytes)
    except Exception:
        return 64 * 1024 * 1024   # conservative fallback (v7x per-TC VMEM)


def _default_n_split():
    """2-way N split on v7x (2 TensorCores/chip), otherwise 1."""
    try:
        kind = jax.devices()[0].device_kind.lower()
        if "v7" in kind or "7x" in kind:
            return 2
    except Exception:
        pass
    return 1


def _choose_tn(B, D, N, itemsize, in_budget_bytes):
    """Largest N-tile that divides N, is a multiple of 128 lanes, and keeps
    the double-buffered input block within `in_budget_bytes`."""
    if N % 128 != 0:
        return N                                     # take the whole axis
    max_tn = (in_budget_bytes // (2 * B * D * itemsize)) // 128 * 128
    max_tn = max(128, max_tn)
    tn = min(N, max_tn)
    while N % tn != 0:                               # terminates at tn == 128
        tn -= 128
    return tn


# ---------------------------------------------------------------------------
# Wrapper.
# ---------------------------------------------------------------------------
def sum_pooling(x_bdn, gamma, beta, *, tn=None, n_split=None):
    """x_bdn: (B, D, N) (PyTorch NCW). gamma/beta: (D,) BN affine. Returns (B, D) f32.

    Note: torch's .squeeze() would collapse the output to (D,) when B == 1;
    this wrapper always returns (B, D).
    """
    B, D, N = x_bdn.shape
    itemsize = jnp.dtype(x_bdn.dtype).itemsize

    cap = _vmem_capacity_bytes()
    # Double-buffered x-block budget: ~21 MiB on v7x (64 MiB VMEM), 40 MiB on
    # v5e/v6e (128 MiB VMEM).
    in_budget = min(cap // 3, 40 * 1024 * 1024)

    if tn is None:
        tn = _choose_tn(B, D, N, itemsize, in_budget)
    assert N % tn == 0 and (tn == N or tn % 128 == 0), (N, tn)
    n_steps = N // tn

    if n_split is None:
        n_split = _default_n_split()
    if n_steps % n_split != 0:
        n_split = 1
    steps_per_split = n_steps // n_split

    # vmem limit derived from the actual double-buffered block (+ slack), so
    # big tiles are legal on v5e (16 MiB scoped default) and we never exceed
    # v7x's 64 MiB physical VMEM.
    block_bytes = B * D * tn * itemsize
    vmem_limit = max(2 * block_bytes + (4 << 20), 16 << 20)
    vmem_limit = int(min(vmem_limit, cap * 7 // 8))

    def x_index_map(s, k):
        return (0, 0, s * steps_per_split + k)

    partials = pl.pallas_call(
        _normalize_sum_kernel,
        out_shape=jax.ShapeDtypeStruct((n_split, B, D), jnp.float32),
        grid_spec=pltpu.PrefetchScalarGridSpec(
            num_scalar_prefetch=0,
            grid=(n_split, steps_per_split),
            in_specs=[pl.BlockSpec((B, D, tn), x_index_map)],
            out_specs=pl.BlockSpec((None, B, D), lambda s, k: (s, 0, 0)),
        ),
        compiler_params=pltpu.CompilerParams(
            dimension_semantics=("parallel", "arbitrary"),
            vmem_limit_bytes=vmem_limit,
        ),
    )(x_bdn)

    gamma2 = gamma.reshape(1, D).astype(jnp.float32)
    beta2 = beta.reshape(1, D).astype(jnp.float32)

    out = pl.pallas_call(
        _bn_l2_kernel,
        out_shape=jax.ShapeDtypeStruct((B, D), jnp.float32),
        in_specs=[pl.BlockSpec(memory_space=pltpu.MemorySpace.VMEM)] * 3,
        out_specs=pl.BlockSpec(memory_space=pltpu.MemorySpace.VMEM),
    )(partials, gamma2, beta2)
    return out


# ---------------------------------------------------------------------------
# Demo / self-test.
# ---------------------------------------------------------------------------
if __name__ == "__main__":
    B, D, N = 4, 128, 512   # dim=128 as in SumPooling.__init__ default

    key = jax.random.PRNGKey(0)
    x = jax.random.normal(key, (B, D, N), dtype=jnp.float32)

    # Deterministic BatchNorm1d affine params (shape (dim,)).
    gamma = 1.0 + 0.01 * jnp.arange(D, dtype=jnp.float32)   # bn.weight
    beta = 0.001 * jnp.arange(D, dtype=jnp.float32)         # bn.bias

    # Pure-JAX reference of the same PyTorch math.
    def ref(xv, g, b):
        xn = xv / jnp.maximum(jnp.linalg.norm(xv, axis=1, keepdims=True), _NORM_EPS)
        sv = jnp.sum(xn, axis=2)
        mu = jnp.mean(sv, axis=0, keepdims=True)
        var = jnp.mean((sv - mu) ** 2, axis=0, keepdims=True)
        y = (sv - mu) / jnp.sqrt(var + _BN_EPS) * g[None, :] + b[None, :]
        return y / jnp.maximum(jnp.linalg.norm(y, axis=1, keepdims=True), _NORM_EPS)

    ref_out = ref(x, gamma, beta)

    # 1) Auto tiling (largest tile that fits the VMEM budget; tn == N here).
    out = jax.block_until_ready(sum_pooling(x, gamma, beta))
    assert out.shape == (B, D)
    assert bool(jnp.all(jnp.isfinite(out)))
    assert bool(jnp.allclose(jnp.linalg.norm(out, axis=1), 1.0, atol=1e-5))
    assert bool(jnp.allclose(out, ref_out, atol=1e-4, rtol=1e-4))

    # 2) Multi-step accumulation + 2-way split (v7x-style sharding) coverage.
    out_split = jax.block_until_ready(sum_pooling(x, gamma, beta, tn=128, n_split=2))
    assert bool(jnp.allclose(out_split, ref_out, atol=1e-4, rtol=1e-4))

    # 3) bf16 input path (halves HBM bytes; f32 accumulation in-kernel).
    out_bf16 = jax.block_until_ready(sum_pooling(x.astype(jnp.bfloat16), gamma, beta))
    assert bool(jnp.allclose(out_bf16, ref_out, atol=3e-2, rtol=3e-2))

    print("KERNEL_OK")
</pallas_src>

<mosaic_0001>
module attributes {stable_mosaic.version = 11 : i64} {
  func.func @_normalize_sum_kernel(%arg0: i32, %arg1: i32, %arg2: memref<4x128x512xf32, #tpu.memory_space<vmem>>, %arg3: memref<1x4x128xf32, #tpu.memory_space<vmem>>) attributes {dimension_semantics = [#tpu.dimension_semantics<parallel>, #tpu.dimension_semantics<arbitrary>], iteration_bounds = array<i64: 1, 1>, scalar_prefetch = 0 : i64, scratch_operands = 0 : i64, tpu.core_type = #tpu.core_type<tc>, window_params = [{transform_indices = @transform_0, window_bounds = array<i64: 4, 128, 512>}, {transform_indices = @transform_1, window_bounds = array<i64: 1, 4, 128>}]} {
    %c0_i32 = arith.constant 0 : i32
    %0 = arith.cmpi eq, %arg1, %c0_i32 : i32
    %1 = arith.extui %0 : i1 to i32
    %c0_i32_0 = arith.constant 0 : i32
    %2 = arith.cmpi ne, %1, %c0_i32_0 : i32
    scf.if %2 {
      %cst_11 = arith.constant 0.000000e+00 : f32
      %20 = vector.broadcast %cst_11 : f32 to vector<4x128xf32>
      %c0_12 = arith.constant 0 : index
      %c0_13 = arith.constant 0 : index
      %c0_14 = arith.constant 0 : index
      %21 = vector.load %arg3[%c0_12, %c0_13, %c0_14] : memref<1x4x128xf32, #tpu.memory_space<vmem>>, vector<1x4x128xf32>
      %22 = vector.shape_cast %21 : vector<1x4x128xf32> to vector<4x128xf32>
      %23 = vector.shape_cast %20 : vector<4x128xf32> to vector<1x4x128xf32>
      tpu.vector_store %arg3[%c0_12, %c0_13, %c0_14], %23 {strides = array<i32>} : memref<1x4x128xf32, #tpu.memory_space<vmem>>, vector<1x4x128xf32>,
    } else {
    }
    %c0 = arith.constant 0 : index
    %c0_1 = arith.constant 0 : index
    %c0_2 = arith.constant 0 : index
    %3 = vector.load %arg2[%c0, %c0_1, %c0_2] : memref<4x128x512xf32, #tpu.memory_space<vmem>>, vector<4x128x512xf32>
    %4 = arith.mulf %3, %3 : vector<4x128x512xf32>
    %cst = arith.constant dense<0.000000e+00> : vector<4x512xf32>
    %5 = vector.multi_reduction <add>, %4, %cst [1] : vector<4x128x512xf32> to vector<4x512xf32>
    %6 = vector.shape_cast %5 : vector<4x512xf32> to vector<4x1x512xf32>
    %7 = math.sqrt %6 : vector<4x1x512xf32>
    %cst_3 = arith.constant 9.99999996E-13 : f32
    %8 = vector.broadcast %cst_3 : f32 to vector<4x1x512xf32>
    %9 = arith.maximumf %7, %8 : vector<4x1x512xf32>
    %10 = tpu.reciprocal %9 : vector<4x1x512xf32> -> vector<4x1x512xf32>
    %c0_4 = arith.constant 0 : index
    %c0_5 = arith.constant 0 : index
    %c0_6 = arith.constant 0 : index
    %11 = vector.load %arg3[%c0_4, %c0_5, %c0_6] : memref<1x4x128xf32, #tpu.memory_space<vmem>>, vector<1x4x128xf32>
    %12 = vector.shape_cast %11 : vector<1x4x128xf32> to vector<4x128xf32>
    %13 = vector.broadcast %10 : vector<4x1x512xf32> to vector<4x128x512xf32>
    %14 = arith.mulf %3, %13 : vector<4x128x512xf32>
    %cst_7 = arith.constant dense<0.000000e+00> : vector<4x128xf32>
    %15 = vector.multi_reduction <add>, %14, %cst_7 [2] : vector<4x128x512xf32> to vector<4x128xf32>
    %16 = arith.addf %12, %15 : vector<4x128xf32>
    %c0_8 = arith.constant 0 : index
    %c0_9 = arith.constant 0 : index
    %c0_10 = arith.constant 0 : index
    %17 = vector.load %arg3[%c0_8, %c0_9, %c0_10] : memref<1x4x128xf32, #tpu.memory_space<vmem>>, vector<1x4x128xf32>
    %18 = vector.shape_cast %17 : vector<1x4x128xf32> to vector<4x128xf32>
    %19 = vector.shape_cast %16 : vector<4x128xf32> to vector<1x4x128xf32>
    tpu.vector_store %arg3[%c0_8, %c0_9, %c0_10], %19 {strides = array<i32>} : memref<1x4x128xf32, #tpu.memory_space<vmem>>, vector<1x4x128xf32>,
    return
  }
  func.func @transform_0(%arg0: i32, %arg1: i32) -> (i32, i32, i32) {
    %c1_i32 = arith.constant 1 : i32
    %0 = arith.muli %arg0, %c1_i32 : i32
    %1 = arith.addi %0, %arg1 : i32
    %c0_i32 = arith.constant 0 : i32
    %c0_i32_0 = arith.constant 0 : i32
    %c0_i32_1 = arith.constant 0 : i32
    return %c0_i32, %c0_i32_0, %1 : i32, i32, i32
  }
  func.func @transform_1(%arg0: i32, %arg1: i32) -> (i32, i32, i32) {
    %c0_i32 = arith.constant 0 : i32
    %c0_i32_0 = arith.constant 0 : i32
    %c0_i32_1 = arith.constant 0 : i32
    return %arg0, %c0_i32, %c0_i32_0 : i32, i32, i32
  }
}

</mosaic_0001>

<bundles_post_ra>
// kernel: tpu_custom_call.1
= control target key start
LH: loop header
LB: loop body
LE: loop exit
PB: predicated region body
PF: predicated region fallthrough
CT: control target
= control target key end

     0   :  { %6 = vsyncpa [#allocation3], 0  ;;  %s4548_s0 = inlined_call_operand.hbm [shape: f32[4,128,512], index: 0, kind: input, shape index: {}]   ;;  %s4549_s1 = inlined_call_operand.hbm [shape: f32[1,4,128], index: 1, kind: output, shape index: {}]  }
   0x1   :  { %7 = vsyncpa [#allocation4], 0  ;;  %s2284_s6 = smov [#allocation2]   ;;  %s2236_s10 = scalar_lea.hbm %s4548_s0, 32768 }
   0x2   :  { %s17_s7 = sshll.u32 %s2284_s6, 4  ;;  %p2237_p0 = scmp.ne.s32.totalorder %s4548_s0, %s2236_s10  ;;  %s18_s7 = int_to_ptr.vmem [resolvable:$true] %s17_s7 }
   0x3   :  { %p2240_p1 = scmp.lt.u32.totalorder %s2236_s10, %s4548_s0 }
   0x5   :  { %p2242_p2 = pnand %p2240_p1, %p2237_p0 }
   0x7   :  { %2245 = shalt.err (!%p2242_p2)
}
   0x8   :  { %s2246_s15 = scalar_lea.vmem %s18_s7, 32768  ;;  %p2251_p4 = scmp.lt.s32.totalorder %s18_s7, %s18_s7 }
   0x9   :  { %p2247_p3 = scmp.ne.s32.totalorder %s18_s7, %s2246_s15  ;;  %p2252_p5 = scmp.lt.s32.totalorder %s2246_s15, %s2246_s15 }
   0xb   :  { %p2253_p6 = por %p2252_p5, %p2251_p4 }
   0xd   :  { %p2254_p7 = pnand %p2253_p6, %p2247_p3 }
   0xf   :  { %2257 = shalt.err (!%p2254_p7)
}
  0x10   :  { %s2285_s16 = smov 512   ;;  %s2286_s17 = smov 32  }
  0x11   :  { %23 = dma.hbm_to_vmem [thread:$0]  %s4548_s0, 32768, %s18_s7, [#allocation3], %s2285_s16, %s2285_s16, %s2286_s17  }
  0x12   :  { %2280 = dma.done.wait [#allocation3], 32768  }
  0x13   :  { %2281 = vsyncadd [#allocation3], 4294934528  ;;  %v2311_v0 = vld [vmem:[#allocation2] sm:$0xff]  ;;  %v2313_v1 = vld [vmem:[#allocation2 + $0x8] sm:$0xff]  ;;  %s2288_s0 = smov [#allocation5]  }
  0x14   :  { %4671 = vst [vmem:[#allocation8_spill] sm:$0xff] %v2313_v1  ;;  %v2315_v2 = vld [vmem:[#allocation2 + $0x20] sm:$0xff]  ;;  %v2317_v3 = vld [vmem:[#allocation2 + $0x28] sm:$0xff]  ;;  %v290_v4 = vmul.f32 %v2311_v0, %v2311_v0  ;;  %v291_v5 = vmul.f32 %v2313_v1, %v2313_v1  ;;  %v2365_v33 = vld [vmem:[#allocation2 + $0x10] sm:$0xff]  ;;  %s2030_s20 = sshll.u32 %s2288_s0, 4  ;;  %s2031_s20 = int_to_ptr.vmem [resolvable:$true] %s2030_s20 }
  0x15   :  { %4672 = vst [vmem:[#allocation9_spill] sm:$0xff] %v2315_v2  ;;  %4673 = vst [vmem:[#allocation10_spill] sm:$0xff] %v2317_v3  ;;  %v2323_v6 = vld [vmem:[#allocation2 + $0x40] sm:$0xff]  ;;  %v294_v7 = vmul.f32 %v2315_v2, %v2315_v2  ;;  %v295_v8 = vmul.f32 %v2317_v3, %v2317_v3  ;;  %v2329_v9 = vld [vmem:[#allocation2 + $0x48] sm:$0xff]  ;;  %v292_v50 = vmul.f32 %v2365_v33, %v2365_v33  ;;  %s2258_s21 = scalar_lea.vmem %s2031_s20, 64  ;;  %p2263_p9 = scmp.lt.s32.totalorder %s2031_s20, %s2031_s20 }
  0x16   :  { %4674 = vst [vmem:[#allocation11_spill] sm:$0xff] %v2329_v9  ;;  %v298_v10 = vmul.f32 %v2323_v6, %v2323_v6  ;;  %v2333_v11 = vld [vmem:[#allocation2 + $0x60] sm:$0xff]  ;;  %v2335_v12 = vld [vmem:[#allocation2 + $0x68] sm:$0xff]  ;;  %v299_v13 = vmul.f32 %v2329_v9, %v2329_v9  ;;  %4684 = vst [vmem:[#allocation21_spill] sm:$0xff] %v2365_v33  ;;  %p2259_p8 = scmp.ne.s32.totalorder %s2031_s20, %s2258_s21  ;;  %p2264_p10 = scmp.lt.s32.totalorder %s2258_s21, %s2258_s21 }
  0x17   :  { %4675 = vst [vmem:[#allocation12_spill] sm:$0xff] %v2333_v11  ;;  %4676 = vst [vmem:[#allocation13_spill] sm:$0xff] %v2335_v12  ;;  %v546_v14 = vadd.f32 %v294_v7, %v290_v4  ;;  %v2339_v15 = vld [vmem:[#allocation2 + $0x80] sm:$0xff]  ;;  %v2341_v16 = vld [vmem:[#allocation2 + $0x88] sm:$0xff]  ;;  %v302_v17 = vmul.f32 %v2333_v11, %v2333_v11  ;;  %v303_v18 = vmul.f32 %v2335_v12, %v2335_v12 }
  0x18   :  { %4677 = vst [vmem:[#allocation14_spill] sm:$0xff] %v2339_v15  ;;  %4678 = vst [vmem:[#allocation15_spill] sm:$0xff] %v2341_v16  ;;  %v567_v19 = vadd.f32 %v295_v8, %v291_v5  ;;  %v2347_v20 = vld [vmem:[#allocation2 + $0xa0] sm:$0xff]  ;;  %v306_v21 = vmul.f32 %v2339_v15, %v2339_v15  ;;  %v2351_v23 = vld [vmem:[#allocation2 + $0xa8] sm:$0xff]  ;;  %v307_v24 = vmul.f32 %v2341_v16, %v2341_v16  ;;  %p2265_p11 = por %p2264_p10, %p2263_p9 }
  0x19   :  { %4679 = vst [vmem:[#allocation16_spill] sm:$0xff] %v2347_v20  ;;  %v547_v22 = vadd.f32 %v546_v14, %v298_v10  ;;  %4680 = vst [vmem:[#allocation17_spill] sm:$0xff] %v2351_v23  ;;  %v2355_v26 = vld [vmem:[#allocation2 + $0xc0] sm:$0xff]  ;;  %v2357_v27 = vld [vmem:[#allocation2 + $0xc8] sm:$0xff]  ;;  %v310_v28 = vmul.f32 %v2347_v20, %v2347_v20  ;;  %v311_v31 = vmul.f32 %v2351_v23, %v2351_v23 }
  0x1a   :  { %v568_v25 = vadd.f32 %v567_v19, %v299_v13  ;;  %4681 = vst [vmem:[#allocation18_spill] sm:$0xff] %v2355_v26  ;;  %4682 = vst [vmem:[#allocation19_spill] sm:$0xff] %v2357_v27  ;;  %v2361_v30 = vld [vmem:[#allocation2 + $0xe0] sm:$0xff]  ;;  %v2367_v34 = vld [vmem:[#allocation2 + $0xe8] sm:$0xff]  ;;  %v314_v35 = vmul.f32 %v2355_v26, %v2355_v26  ;;  %v315_v40 = vmul.f32 %v2357_v27, %v2357_v27  ;;  %p2266_p12 = pnand %p2265_p11, %p2259_p8 }
  0x1b   :  { %v548_v29 = vadd.f32 %v547_v22, %v302_v17  ;;  %4683 = vst [vmem:[#allocation20_spill] sm:$0xff] %v2361_v30  ;;  %4685 = vst [vmem:[#allocation22_spill] sm:$0xff] %v2367_v34  ;;  %v2371_v37 = vld [vmem:[#allocation2 + $0x18] sm:$0xff]  ;;  %v2373_v38 = vld [vmem:[#allocation2 + $0x30] sm:$0xff]  ;;  %v318_v45 = vmul.f32 %v2361_v30, %v2361_v30  ;;  %v319_v51 = vmul.f32 %v2367_v34, %v2367_v34 }
  0x1c   :  { %v569_v32 = vadd.f32 %v568_v25, %v303_v18  ;;  %4686 = vst [vmem:[#allocation23_spill] sm:$0xff] %v2371_v37  ;;  %4687 = vst [vmem:[#allocation24_spill] sm:$0xff] %v2373_v38  ;;  %v2375_v39 = vld [vmem:[#allocation2 + $0x100] sm:$0xff]  ;;  %v2379_v42 = vld [vmem:[#allocation2 + $0x38] sm:$0xff]  ;;  %v293_v56 = vmul.f32 %v2371_v37, %v2371_v37  ;;  %v296_v57 = vmul.f32 %v2373_v38, %v2373_v38 }
  0x1d   :  { %v549_v36 = vadd.f32 %v548_v29, %v306_v21  ;;  %4688 = vst [vmem:[#allocation25_spill] sm:$0xff] %v2375_v39  ;;  %4689 = vst [vmem:[#allocation26_spill] sm:$0xff] %v2379_v42  ;;  %v2381_v43 = vld [vmem:[#allocation2 + $0x50] sm:$0xff]  ;;  %v2383_v44 = vld [vmem:[#allocation2 + $0x108] sm:$0xff]  ;;  %v322_v58 = vmul.f32 %v2375_v39, %v2375_v39  ;;  %v297_v63 = vmul.f32 %v2379_v42, %v2379_v42 }
  0x1e   :  { %v570_v41 = vadd.f32 %v569_v32, %v307_v24  ;;  %4690 = vst [vmem:[#allocation27_spill] sm:$0xff] %v2381_v43  ;;  %4691 = vst [vmem:[#allocation28_spill] sm:$0xff] %v2383_v44  ;;  %v2387_v47 = vld [vmem:[#allocation2 + $0x58] sm:$0xff]  ;;  %v2389_v48 = vld [vmem:[#allocation2 + $0x70] sm:$0xff]  ;;  %v300_v4 = vmul.f32 %v2381_v43, %v2381_v43  ;;  %v323_v5 = vmul.f32 %v2383_v44, %v2383_v44 }
  0x1f   :  { %v550_v46 = vadd.f32 %v549_v36, %v310_v28  ;;  %4692 = vst [vmem:[#allocation29_spill] sm:$0xff] %v2387_v47  ;;  %4693 = vst [vmem:[#allocation30_spill] sm:$0xff] %v2389_v48  ;;  %v2391_v49 = vld [vmem:[#allocation2 + $0x120] sm:$0xff]  ;;  %v2397_v53 = vld [vmem:[#allocation2 + $0x78] sm:$0xff]  ;;  %v301_v14 = vmul.f32 %v2387_v47, %v2387_v47  ;;  %v2431_v17 = vmul.f32 %v2389_v48, %v2389_v48 }
  0x20   :  { %4694 = vst [vmem:[#allocation31_spill] sm:$0xff] %v2391_v49  ;;  %v571_v52 = vadd.f32 %v570_v41, %v311_v31  ;;  %4695 = vst [vmem:[#allocation32_spill] sm:$0xff] %v2397_v53  ;;  %v2399_v54 = vld [vmem:[#allocation2 + $0x90] sm:$0xff]  ;;  %v2401_v55 = vld [vmem:[#allocation2 + $0x128] sm:$0xff]  ;;  %v326_v18 = vmul.f32 %v2391_v49, %v2391_v49  ;;  %v305_v25 = vmul.f32 %v2397_v53, %v2397_v53 }
  0x21   :  { %4696 = vst [vmem:[#allocation33_spill] sm:$0xff] %v2399_v54  ;;  %4697 = vst [vmem:[#allocation34_spill] sm:$0xff] %v2401_v55  ;;  %v551_v59 = vadd.f32 %v550_v46, %v314_v35  ;;  %v2409_v60 = vld [vmem:[#allocation2 + $0x98] sm:$0xff]  ;;  %v2411_v61 = vld [vmem:[#allocation2 + $0xb0] sm:$0xff]  ;;  %v2445_v28 = vmul.f32 %v2399_v54, %v2399_v54  ;;  %v327_v29 = vmul.f32 %v2401_v55, %v2401_v55 }
  0x22   :  { %4698 = vst [vmem:[#allocation35_spill] sm:$0xff] %v2409_v60  ;;  %4699 = vst [vmem:[#allocation36_spill] sm:$0xff] %v2411_v61  ;;  %v2413_v62 = vld [vmem:[#allocation2 + $0x140] sm:$0xff]  ;;  %v572_v7 = vadd.f32 %v571_v52, %v315_v40  ;;  %v2421_v8 = vld [vmem:[#allocation2 + $0xb8] sm:$0xff]  ;;  %v2457_v40 = vmul.f32 %v2409_v60, %v2409_v60  ;;  %v2461_v41 = vmul.f32 %v2411_v61, %v2411_v61 }
  0x23   :  { %4700 = vst [vmem:[#allocation37_spill] sm:$0xff] %v2413_v62  ;;  %4701 = vst [vmem:[#allocation38_spill] sm:$0xff] %v2421_v8  ;;  %v2423_v10 = vld [vmem:[#allocation2 + $0xd0] sm:$0xff]  ;;  %v2425_v13 = vld [vmem:[#allocation2 + $0x148] sm:$0xff]  ;;  %v552_v19 = vadd.f32 %v551_v59, %v318_v45  ;;  %v330_v45 = vmul.f32 %v2413_v62, %v2413_v62  ;;  %v609_v48 = vadd.f32 %v297_v63, %v293_v56 }
  0x24   :  { %4702 = vst [vmem:[#allocation39_spill] sm:$0xff] %v2423_v10  ;;  %4703 = vst [vmem:[#allocation40_spill] sm:$0xff] %v2425_v13  ;;  %v2435_v21 = vld [vmem:[#allocation2 + $0xd8] sm:$0xff]  ;;  %v2437_v22 = vld [vmem:[#allocation2 + $0xf0] sm:$0xff]  ;;  %v573_v31 = vadd.f32 %v572_v7, %v319_v51  ;;  %v2469_v51 = vmul.f32 %v2421_v8, %v2421_v8  ;;  %v2473_v59 = vmul.f32 %v2423_v10, %v2423_v10 }
  0x25   :  { %4704 = vst [vmem:[#allocation41_spill] sm:$0xff] %v2435_v21  ;;  %4705 = vst [vmem:[#allocation42_spill] sm:$0xff] %v2437_v22  ;;  %v2439_v24 = vld [vmem:[#allocation2 + $0x160] sm:$0xff]  ;;  %v2449_v32 = vld [vmem:[#allocation2 + $0xf8] sm:$0xff]  ;;  %v553_v46 = vadd.f32 %v552_v19, %v322_v58  ;;  %v331_v7 = vmul.f32 %v2425_v13, %v2425_v13  ;;  %v2485_v58 = vmul.f32 %v2435_v21, %v2435_v21 }
  0x26   :  { %4706 = vst [vmem:[#allocation43_spill] sm:$0xff] %v2439_v24  ;;  %4707 = vst [vmem:[#allocation44_spill] sm:$0xff] %v2449_v32  ;;  %v2451_v35 = vld [vmem:[#allocation2 + $0x110] sm:$0xff]  ;;  %v2453_v36 = vld [vmem:[#allocation2 + $0x168] sm:$0xff]  ;;  %v574_v60 = vadd.f32 %v573_v31, %v323_v5  ;;  %v2489_v19 = vmul.f32 %v2437_v22, %v2437_v22  ;;  %v334_v10 = vmul.f32 %v2439_v24, %v2439_v24 }
  0x27   :  { %4708 = vst [vmem:[#allocation45_spill] sm:$0xff] %v2451_v35  ;;  %4709 = vst [vmem:[#allocation46_spill] sm:$0xff] %v2453_v36  ;;  %v2465_v52 = vld [vmem:[#allocation2 + $0x180] sm:$0xff]  ;;  %v2477_v54 = vld [vmem:[#allocation2 + $0x118] sm:$0xff]  ;;  %v554_v8 = vadd.f32 %v553_v46, %v326_v18  ;;  %v2497_v5 = vmul.f32 %v2449_v32, %v2449_v32  ;;  %v2501_v31 = vmul.f32 %v2451_v35, %v2451_v35 }
  0x28   :  { %4710 = vst [vmem:[#allocation47_spill] sm:$0xff] %v2465_v52  ;;  %4711 = vst [vmem:[#allocation48_spill] sm:$0xff] %v2477_v54  ;;  %v2479_v61 = vld [vmem:[#allocation2 + $0x130] sm:$0xff]  ;;  %v2481_v42 = vld [vmem:[#allocation2 + $0x188] sm:$0xff]  ;;  %v335_v21 = vmul.f32 %v2453_v36, %v2453_v36  ;;  %v575_v37 = vadd.f32 %v574_v60, %v327_v29  ;;  %v338_v18 = vmul.f32 %v2465_v52, %v2465_v52 }
  0x29   :  { %4712 = vst [vmem:[#allocation49_spill] sm:$0xff] %v2479_v61  ;;  %4713 = vst [vmem:[#allocation50_spill] sm:$0xff] %v2481_v42  ;;  %v2493_v53 = vld [vmem:[#allocation2 + $0x1a0] sm:$0xff]  ;;  %v2505_v22 = vld [vmem:[#allocation2 + $0x138] sm:$0xff]  ;;  %v555_v46 = vadd.f32 %v554_v8, %v330_v45  ;;  %v588_v32 = vadd.f32 %v296_v57, %v292_v50  ;;  %v2517_v35 = vmul.f32 %v2477_v54, %v2477_v54 }
  0x2a   :  { %4714 = vst [vmem:[#allocation51_spill] sm:$0xff] %v2493_v53  ;;  %4715 = vst [vmem:[#allocation52_spill] sm:$0xff] %v2505_v22  ;;  %v2507_v47 = vld [vmem:[#allocation2 + $0x150] sm:$0xff]  ;;  %v2509_v38 = vld [vmem:[#allocation2 + $0x1a8] sm:$0xff]  ;;  %v2521_v60 = vmul.f32 %v2479_v61, %v2479_v61  ;;  %v339_v29 = vmul.f32 %v2481_v42, %v2481_v42  ;;  %v576_v43 = vadd.f32 %v575_v37, %v331_v7 }
  0x2b   :  { %4716 = vst [vmem:[#allocation53_spill] sm:$0xff] %v2507_v47  ;;  %4717 = vst [vmem:[#allocation54_spill] sm:$0xff] %v2509_v38  ;;  %v2513_v33 = vld [vmem:[#allocation2 + $0x1c0] sm:$0xff]  ;;  %v2525_v13 = vld [vmem:[#allocation2 + $0x158] sm:$0xff]  ;;  %v342_v56 = vmul.f32 %v2493_v53, %v2493_v53  ;;  %v556_v57 = vadd.f32 %v555_v46, %v334_v10  ;;  %v589_v63 = vadd.f32 %v588_v32, %v300_v4 }
  0x2c   :  { %4718 = vst [vmem:[#allocation55_spill] sm:$0xff] %v2513_v33  ;;  %4719 = vst [vmem:[#allocation56_spill] sm:$0xff] %v2525_v13  ;;  %v2527_v52 = vld [vmem:[#allocation2 + $0x170] sm:$0xff]  ;;  %v2529_v50 = vld [vmem:[#allocation2 + $0x1c8] sm:$0xff]  ;;  %v610_v8 = vadd.f32 %v609_v48, %v301_v14  ;;  %v2537_v54 = vmul.f32 %v2505_v22, %v2505_v22  ;;  %v2541_v37 = vmul.f32 %v2507_v47, %v2507_v47 }
  0x2d   :  { %4720 = vst [vmem:[#allocation57_spill] sm:$0xff] %v2527_v52  ;;  %4721 = vst [vmem:[#allocation58_spill] sm:$0xff] %v2529_v50  ;;  %v2533_v45 = vld [vmem:[#allocation2 + $0x1e0] sm:$0xff]  ;;  %v343_v7 = vmul.f32 %v2509_v38, %v2509_v38  ;;  %v577_v61 = vadd.f32 %v576_v43, %v335_v21  ;;  %v2545_v42 = vld [vmem:[#allocation2 + $0x178] sm:$0xff]  ;;  %v346_v48 = vmul.f32 %v2513_v33, %v2513_v33 }
  0x2e   :  { %4722 = vst [vmem:[#allocation59_spill] sm:$0xff] %v2533_v45  ;;  %4723 = vst [vmem:[#allocation60_spill] sm:$0xff] %v2545_v42  ;;  %v2547_v53 = vld [vmem:[#allocation2 + $0x190] sm:$0xff]  ;;  %v2549_v4 = vld [vmem:[#allocation2 + $0x1e8] sm:$0xff]  ;;  %v557_v10 = vadd.f32 %v556_v57, %v338_v18  ;;  %v590_v14 = vadd.f32 %v589_v63, %v2431_v17  ;;  %v611_v32 = vadd.f32 %v610_v8, %v305_v25 }
  0x2f   :  { %4724 = vst [vmem:[#allocation61_spill] sm:$0xff] %v2547_v53  ;;  %4725 = vst [vmem:[#allocation62_spill] sm:$0xff] %v2549_v4  ;;  %v2554_v46 = vld [vmem:[#allocation2 + $0x198] sm:$0xff]  ;;  %v2558_v47 = vmul.f32 %v2525_v13, %v2525_v13  ;;  %v2562_v43 = vmul.f32 %v2527_v52, %v2527_v52  ;;  %v347_v21 = vmul.f32 %v2529_v50, %v2529_v50  ;;  %v2566_v38 = vld [vmem:[#allocation2 + $0x1b0] sm:$0xff] }
  0x30   :  { %4726 = vst [vmem:[#allocation63_spill] sm:$0xff] %v2554_v46  ;;  %v578_v22 = vadd.f32 %v577_v61, %v339_v29  ;;  %4727 = vst [vmem:[#allocation64_spill] sm:$0xff] %v2566_v38  ;;  %v2568_v18 = vld [vmem:[#allocation2 + $0x1b8] sm:$0xff]  ;;  %v2570_v17 = vld [vmem:[#allocation2 + $0x1d0] sm:$0xff]  ;;  %v350_v25 = vmul.f32 %v2533_v45, %v2533_v45  ;;  %v558_v57 = vadd.f32 %v557_v10, %v342_v56 }
  0x31   :  { %4728 = vst [vmem:[#allocation65_spill] sm:$0xff] %v2568_v18  ;;  %4729 = vst [vmem:[#allocation66_spill] sm:$0xff] %v2570_v17  ;;  %v591_v63 = vadd.f32 %v590_v14, %v2445_v28  ;;  %v612_v8 = vadd.f32 %v611_v32, %v2457_v40  ;;  %v2576_v13 = vld [vmem:[#allocation2 + $0x1d8] sm:$0xff]  ;;  %v2580_v52 = vmul.f32 %v2545_v42, %v2545_v42  ;;  %v2588_v33 = vld [vmem:[#allocation2 + $0x1f0] sm:$0xff] }
  0x32   :  { %4730 = vst [vmem:[#allocation67_spill] sm:$0xff] %v2576_v13  ;;  %v2584_v61 = vmul.f32 %v2547_v53, %v2547_v53  ;;  %v351_v29 = vmul.f32 %v2549_v4, %v2549_v4  ;;  %v579_v50 = vadd.f32 %v578_v22, %v343_v7  ;;  %4731 = vst [vmem:[#allocation68_spill] sm:$0xff] %v2588_v33  ;;  %v2590_v56 = vld [vmem:[#allocation2 + $0x1f8] sm:$0xff]  ;;  %v98_v32 = vld [vmem:[#allocation2 + $0x200] sm:$0xff] }
  0x33   :  { %4732 = vst [vmem:[#allocation69_spill] sm:$0xff] %v2590_v56  ;;  %v2594_v28 = vmul.f32 %v2554_v46, %v2554_v46  ;;  %v559_v40 = vadd.f32 %v558_v57, %v346_v48  ;;  %v592_v10 = vadd.f32 %v591_v63, %v2461_v41  ;;  %v613_v14 = vadd.f32 %v612_v8, %v2469_v51  ;;  %v99_v42 = vld [vmem:[#allocation2 + $0x208] sm:$0xff]  ;;  %v100_v63 = vld [vmem:[#allocation2 + $0x210] sm:$0xff]  ;;  %v101_v8 = vld [vmem:[#allocation2 + $0x218] sm:$0xff] }
  0x34   :  { %v2600_v53 = vmul.f32 %v2566_v38, %v2566_v38  ;;  %v2604_v22 = vmul.f32 %v2568_v18, %v2568_v18  ;;  %v2608_v7 = vmul.f32 %v2570_v17, %v2570_v17  ;;  %v580_v46 = vadd.f32 %v579_v50, %v347_v21  ;;  %v102_v38 = vld [vmem:[#allocation2 + $0x220] sm:$0xff]  ;;  %v103_v17 = vld [vmem:[#allocation2 + $0x228] sm:$0xff]  ;;  %v129_v12 = vld [vmem:[#allocation2 + $0x2f8] sm:$0xff] }
  0x35   :  { %v2612_v41 = vmul.f32 %v2576_v13, %v2576_v13  ;;  %v560_v51 = vadd.f32 %v559_v40, %v350_v25  ;;  %v593_v48 = vadd.f32 %v592_v10, %v2473_v59  ;;  %v614_v57 = vadd.f32 %v613_v14, %v2485_v58  ;;  %v104_v40 = vld [vmem:[#allocation2 + $0x230] sm:$0xff]  ;;  %v105_v10 = vld [vmem:[#allocation2 + $0x238] sm:$0xff]  ;;  %v106_v14 = vld [vmem:[#allocation2 + $0x240] sm:$0xff] }
  0x36   :  { %v2618_v18 = vmul.f32 %v2588_v33, %v2588_v33  ;;  %v2622_v50 = vmul.f32 %v2590_v56, %v2590_v56  ;;  %v581_v21 = vadd.f32 %v580_v46, %v351_v29  ;;  %v2624_v13 = vmul.f32 %v98_v32, %v98_v32  ;;  %v107_v45 = vld [vmem:[#allocation2 + $0x248] sm:$0xff]  ;;  %v138_v49 = vld [vmem:[#allocation2 + $0x340] sm:$0xff]  ;;  %v140_v9 = vld [vmem:[#allocation2 + $0x350] sm:$0xff] }
  0x37   :  { %v561_v25 = vrot.slane %v560_v51, 4  ;;  %v594_v59 = vadd.f32 %v593_v48, %v2489_v19  ;;  %v615_v58 = vadd.f32 %v614_v57, %v2497_v5  ;;  %v2628_v4 = vmul.f32 %v99_v42, %v99_v42  ;;  %v108_v48 = vld [vmem:[#allocation2 + $0x250] sm:$0xff]  ;;  %v109_v5 = vld [vmem:[#allocation2 + $0x258] sm:$0xff]  ;;  %v110_v57 = vld [vmem:[#allocation2 + $0x260] sm:$0xff] }
  0x38   :  { %v582_v33 = vrot.slane %v581_v21, 4  ;;  %v2630_v62 = vmul.f32 %v100_v63, %v100_v63  ;;  %v2632_v56 = vmul.f32 %v101_v8, %v101_v8  ;;  %v2634_v46 = vmul.f32 %v102_v38, %v102_v38  ;;  %v111_v24 = vld [vmem:[#allocation2 + $0x268] sm:$0xff] }
  0x39   :  { %v562_v29 = vadd.f32 %v561_v25, %v560_v51  ;;  %v595_v32 = vadd.f32 %v594_v59, %v2501_v31  ;;  %v616_v19 = vadd.f32 %v615_v58, %v2517_v35  ;;  %v2638_v36 = vmul.f32 %v103_v17, %v103_v17  ;;  %v112_v25 = vld [vmem:[#allocation2 + $0x270] sm:$0xff]  ;;  %v113_v35 = vld [vmem:[#allocation2 + $0x278] sm:$0xff]  ;;  %v114_v59 = vld [vmem:[#allocation2 + $0x280] sm:$0xff] }
  0x3a   :  { %v583_v42 = vadd.f32 %v582_v33, %v581_v21  ;;  %v2640_v44 = vmul.f32 %v104_v40, %v104_v40  ;;  %v2642_v63 = vmul.f32 %v105_v10, %v105_v10  ;;  %v2644_v8 = vmul.f32 %v106_v14, %v106_v14  ;;  %v115_v39 = vld [vmem:[#allocation2 + $0x288] sm:$0xff] }
  0x3b   :  { %v563_v38 = vrot.slane %v562_v29, 2  ;;  %v596_v51 = vadd.f32 %v595_v32, %v2521_v60  ;;  %v617_v31 = vadd.f32 %v616_v19, %v2537_v54  ;;  %v2648_v58 = vmul.f32 %v107_v45, %v107_v45  ;;  %v116_v32 = vld [vmem:[#allocation2 + $0x290] sm:$0xff]  ;;  %v117_v54 = vld [vmem:[#allocation2 + $0x298] sm:$0xff]  ;;  %v118_v19 = vld [vmem:[#allocation2 + $0x2a0] sm:$0xff] }
  0x3c   :  { %v584_v17 = vrot.slane %v583_v42, 2  ;;  %v2650_v33 = vmul.f32 %v108_v48, %v108_v48  ;;  %v2652_v21 = vmul.f32 %v109_v5, %v109_v5  ;;  %v2654_v40 = vmul.f32 %v110_v57, %v110_v57  ;;  %v119_v27 = vld [vmem:[#allocation2 + $0x2a8] sm:$0xff] }
  0x3d   :  { %v564_v10 = vadd.f32 %v563_v38, %v562_v29  ;;  %v597_v14 = vadd.f32 %v596_v51, %v2541_v37  ;;  %v618_v60 = vadd.f32 %v617_v31, %v2558_v47  ;;  %v2658_v55 = vmul.f32 %v111_v24, %v111_v24  ;;  %v120_v38 = vld [vmem:[#allocation2 + $0x2b0] sm:$0xff]  ;;  %v121_v47 = vld [vmem:[#allocation2 + $0x2b8] sm:$0xff]  ;;  %v122_v51 = vld [vmem:[#allocation2 + $0x2c0] sm:$0xff] }
  0x3e   :  { %v585_v45 = vadd.f32 %v584_v17, %v583_v42  ;;  %v2660_v34 = vmul.f32 %v112_v25, %v112_v25  ;;  %v2662_v48 = vmul.f32 %v113_v35, %v113_v35  ;;  %v2664_v5 = vmul.f32 %v114_v59, %v114_v59  ;;  %v123_v16 = vld [vmem:[#allocation2 + $0x2c8] sm:$0xff] }
  0x3f   :  { %v565_v57 = vrot.slane %v564_v10, 1  ;;  %v598_v29 = vadd.f32 %v597_v14, %v2562_v43  ;;  %v619_v37 = vadd.f32 %v618_v60, %v2580_v52  ;;  %v2668_v31 = vmul.f32 %v115_v39, %v115_v39  ;;  %v124_v52 = vld [vmem:[#allocation2 + $0x2d0] sm:$0xff]  ;;  %v125_v14 = vld [vmem:[#allocation2 + $0x2d8] sm:$0xff]  ;;  %v126_v60 = vld [vmem:[#allocation2 + $0x2e0] sm:$0xff] }
  0x40   :  { %v586_v24 = vrot.slane %v585_v45, 1  ;;  %v2670_v42 = vmul.f32 %v116_v32, %v116_v32  ;;  %v2672_v25 = vmul.f32 %v117_v54, %v117_v54  ;;  %v2674_v35 = vmul.f32 %v118_v19, %v118_v19  ;;  %v127_v3 = vld [vmem:[#allocation2 + $0x2e8] sm:$0xff]  ;;  %v128_v32 = vld [vmem:[#allocation2 + $0x2f0] sm:$0xff] }
  0x41   :  { %v2676_v59 = vadd.f32 %v565_v57, %v564_v10  ;;  %v599_v17 = vadd.f32 %v598_v29, %v2584_v61  ;;  %v620_v43 = vadd.f32 %v619_v37, %v2594_v28  ;;  %v2680_v23 = vmul.f32 %v119_v27, %v119_v27  ;;  %v130_v57 = vld [vmem:[#allocation2 + $0x300] sm:$0xff]  ;;  %v131_v27 = vld [vmem:[#allocation2 + $0x308] sm:$0xff]  ;;  %v132_v29 = vld [vmem:[#allocation2 + $0x310] sm:$0xff] }
  0x42   :  { %v2682_v39 = vadd.f32 %v586_v24, %v585_v45  ;;  %v2684_v54 = vmul.f32 %v120_v38, %v120_v38  ;;  %v2686_v19 = vmul.f32 %v121_v47, %v121_v47  ;;  %v2688_v10 = vmul.f32 %v122_v51, %v122_v51  ;;  %v133_v37 = vld [vmem:[#allocation2 + $0x318] sm:$0xff]  ;;  %v134_v38 = vld [vmem:[#allocation2 + $0x320] sm:$0xff]  ;;  %v135_v24 = vld [vmem:[#allocation2 + $0x328] sm:$0xff] }
  0x43   :  { %v600_v61 = vadd.f32 %v599_v17, %v2600_v53  ;;  %v621_v28 = vadd.f32 %v620_v43, %v2604_v22  ;;  %2044 = vrsqrt.f32 %v2676_v59  ;;  %v2693_v45 = vmul.f32 %v123_v16, %v123_v16  ;;  %v136_v17 = vld [vmem:[#allocation2 + $0x330] sm:$0xff]  ;;  %v137_v43 = vld [vmem:[#allocation2 + $0x338] sm:$0xff]  ;;  %v139_v30 = vld [vmem:[#allocation2 + $0x348] sm:$0xff] }
  0x44   :  { %2046 = vrsqrt.f32 %v2682_v39  ;;  %v2696_v47 = vmul.f32 %v124_v52, %v124_v52  ;;  %v2698_v51 = vmul.f32 %v125_v14, %v125_v14  ;;  %v2700_v1 = vmul.f32 %v126_v60, %v126_v60 }
  0x45   :  { %v601_v53 = vadd.f32 %v600_v61, %v2608_v7  ;;  %v622_v22 = vadd.f32 %v621_v28, %v2612_v41  ;;  %v2704_v16 = vmul.f32 %v127_v3, %v127_v3  ;;  %v2706_v26 = vmul.f32 %v128_v32, %v128_v32  ;;  %v141_v61 = vld [vmem:[#allocation2 + $0x358] sm:$0xff]  ;;  %v142_v28 = vld [vmem:[#allocation2 + $0x360] sm:$0xff] }
  0x46   :  { %v2708_v15 = vmul.f32 %v129_v12, %v129_v12  ;;  %v2710_v52 = vmul.f32 %v130_v57, %v130_v57  ;;  %v2712_v14 = vmul.f32 %v131_v27, %v131_v27  ;;  %v2714_v60 = vmul.f32 %v132_v29, %v132_v29 }
  0x47   :  { %v602_v7 = vadd.f32 %v601_v53, %v2618_v18  ;;  %v623_v41 = vadd.f32 %v622_v22, %v2622_v50  ;;  %v2718_v3 = vmul.f32 %v133_v37, %v133_v37  ;;  %v2720_v32 = vmul.f32 %v134_v38, %v134_v38 }
  0x48   :  { %v2722_v20 = vmul.f32 %v135_v24, %v135_v24  ;;  %v2724_v12 = vmul.f32 %v136_v17, %v136_v17  ;;  %v2726_v57 = vmul.f32 %v137_v43, %v137_v43  ;;  %v2728_v27 = vmul.f32 %v138_v49, %v138_v49 }
  0x49   :  { %v603_v29 = vrot.slane %v602_v7, 4  ;;  %v624_v2 = vrot.slane %v623_v41, 4  ;;  %v2730_v11 = vmul.f32 %v139_v30, %v139_v30  ;;  %v2732_v18 = vmul.f32 %v140_v9, %v140_v9 }
  0x4a   :  { %vm884_vm0 = vcmp.eq.f32.partialorder %v2676_v59, inf  ;;  %vm886_vm1 = vcmp.eq.f32.partialorder %v2676_v59, 0.0  ;;  %v2736_v50 = vmul.f32 %v141_v61, %v141_v61  ;;  %v2738_v37 = vmul.f32 %v142_v28, %v142_v28 }
  0x4b   :  { %v604_v38 = vadd.f32 %v603_v29, %v602_v7  ;;  %v625_v24 = vadd.f32 %v624_v2, %v623_v41  ;;  %v887_v53 = vand.u32 2147483648, %v2676_v59  ;;  %v630_v49 = vadd.f32 %v2634_v46, %v2624_v13  ;;  %v144_v29 = vld [vmem:[#allocation2 + $0x370] sm:$0xff] }
  0x4c   :  { %vm891_vm2 = vcmp.eq.f32.partialorder %v2682_v39, inf  ;;  %v651_v9 = vadd.f32 %v2638_v36, %v2628_v4  ;;  %v672_v30 = vadd.f32 %v2640_v44, %v2630_v62  ;;  %v693_v22 = vadd.f32 %v2642_v63, %v2632_v56  ;;  %v143_v63 = vld [vmem:[#allocation2 + $0x368] sm:$0xff] }
  0x4d   :  { %v2045_v17 = vpop.eup %2044  ;;  %v605_v43 = vrot.slane %v604_v38, 2  ;;  %v626_v7 = vrot.slane %v625_v24, 2  ;;  %vm893_vm3 = vcmp.eq.f32.partialorder %v2682_v39, 0.0  ;;  %v631_v2 = vadd.f32 %v630_v49, %v2644_v8  ;;  %v145_v49 = vld [vmem:[#allocation2 + $0x378] sm:$0xff] }
  0x4e   :  { %v2047_v41 = vpop.eup %2046  ;;  %v883_v13 = vmul.f32 %v2045_v17, %v2676_v59  ;;  %v652_v46 = vadd.f32 %v651_v9, %v2648_v58  ;;  %v673_v36 = vadd.f32 %v672_v30, %v2650_v33  ;;  %v694_v4 = vadd.f32 %v693_v22, %v2652_v21  ;;  %v146_v30 = vld [vmem:[#allocation2 + $0x380] sm:$0xff] }
  0x4f   :  { %v606_v44 = vadd.f32 %v605_v43, %v604_v38  ;;  %v627_v62 = vadd.f32 %v626_v7, %v625_v24  ;;  %v890_v56 = vmul.f32 %v2047_v41, %v2682_v39  ;;  %v632_v61 = vadd.f32 %v631_v2, %v2654_v40  ;;  %v147_v7 = vld [vmem:[#allocation2 + $0x388] sm:$0xff]  ;;  %v148_v2 = vld [vmem:[#allocation2 + $0x390] sm:$0xff]  ;;  %v149_v41 = vld [vmem:[#allocation2 + $0x398] sm:$0xff] }
  0x50   :  { %v885_v8 = vsel %vm884_vm0, %v2676_v59, %v883_v13  ;;  %v894_v28 = vand.u32 2147483648, %v2682_v39  ;;  %v653_v58 = vadd.f32 %v652_v46, %v2658_v55  ;;  %v674_v33 = vadd.f32 %v673_v36, %v2660_v34  ;;  %v151_v46 = vld [vmem:[#allocation2 + $0x3a8] sm:$0xff] }
  0x51   :  { %v607_v21 = vrot.slane %v606_v44, 1  ;;  %v628_v38 = vrot.slane %v627_v62, 1  ;;  %v892_v24 = vsel %vm891_vm2, %v2682_v39, %v890_v56  ;;  %v695_v40 = vadd.f32 %v694_v4, %v2662_v48  ;;  %v154_v39 = vld [vmem:[#allocation2 + $0x3c0] sm:$0xff] }
  0x52   :  { %v888_v9 = vsel %vm886_vm1, %v887_v53, %v885_v8  ;;  %v2770_v22 = vmul.f32 %v143_v63, %v143_v63  ;;  %v633_v17 = vadd.f32 %v632_v61, %v2664_v5  ;;  %v654_v55 = vadd.f32 %v653_v58, %v2668_v31  ;;  %v150_v53 = vld [vmem:[#allocation2 + $0x3a0] sm:$0xff]  ;;  %v155_v61 = vld [vmem:[#allocation2 + $0x3c8] sm:$0xff]  ;;  %v156_v8 = vld [vmem:[#allocation2 + $0x3d0] sm:$0xff] }
  0x53   :  { %v2774_v43 = vadd.f32 %v607_v21, %v606_v44  ;;  %v2776_v34 = vadd.f32 %v628_v38, %v627_v62  ;;  %v2778_v13 = vmul.f32 %v144_v29, %v144_v29  ;;  %v2780_v48 = vmul.f32 %v145_v49, %v145_v49  ;;  %v152_v44 = vld [vmem:[#allocation2 + $0x3b0] sm:$0xff]  ;;  %v153_v62 = vld [vmem:[#allocation2 + $0x3b8] sm:$0xff]  ;;  %v158_v49 = vld [vmem:[#allocation2 + $0x3e0] sm:$0xff] }
  0x54   :  { %v895_v59 = vsel %vm893_vm3, %v894_v28, %v892_v24  ;;  %v634_v5 = vadd.f32 %v633_v17, %v2674_v35  ;;  %v655_v31 = vadd.f32 %v654_v55, %v2680_v23  ;;  %v675_v36 = vadd.f32 %v674_v33, %v2670_v42  ;;  %v157_v29 = vld [vmem:[#allocation2 + $0x3d8] sm:$0xff]  ;;  %v159_v58 = vld [vmem:[#allocation2 + $0x3e8] sm:$0xff]  ;;  %v160_v38 = vld [vmem:[#allocation2 + $0x3f0] sm:$0xff] }
  0x55   :  { %2048 = vrsqrt.f32 %v2774_v43  ;;  %v994_v4 = vmax.f32 %v888_v9, 1e-12  ;;  %v2788_v56 = vmul.f32 %v146_v30, %v146_v30  ;;  %v696_v63 = vadd.f32 %v695_v40, %v2672_v25  ;;  %v161_v24 = vld [vmem:[#allocation2 + $0x3f8] sm:$0xff] }
  0x56   :  { %2050 = vrsqrt.f32 %v2776_v34  ;;  %v2792_v28 = vmul.f32 %v147_v7, %v147_v7  ;;  %v2794_v35 = vmul.f32 %v148_v2, %v148_v2  ;;  %v2796_v23 = vmul.f32 %v149_v41, %v149_v41  ;;  %v162_v41 = vld [vmem:[#allocation2 + $0x400] sm:$0xff] }
  0x57   :  { %v995_v42 = vmax.f32 %v895_v59, 1e-12  ;;  %v2798_v33 = vmul.f32 %v150_v53, %v150_v53  ;;  %v2800_v21 = vmul.f32 %v151_v46, %v151_v46  ;;  %v635_v25 = vadd.f32 %v634_v5, %v2688_v10  ;;  %v163_v59 = vld [vmem:[#allocation2 + $0x408] sm:$0xff] }
  0x58   :  { %4733 = vst [vmem:[#allocation70_spill] sm:$0xff] %v2796_v23  ;;  %v2803_v40 = vmul.f32 %v152_v44, %v152_v44  ;;  %v2805_v9 = vmul.f32 %v153_v62, %v153_v62  ;;  %v656_v30 = vadd.f32 %v655_v31, %v2693_v45  ;;  %v676_v17 = vadd.f32 %v675_v36, %v2684_v54  ;;  %v164_v36 = vld [vmem:[#allocation2 + $0x410] sm:$0xff]  ;;  %v165_v44 = vld [vmem:[#allocation2 + $0x418] sm:$0xff]  ;;  %v166_v62 = vld [vmem:[#allocation2 + $0x420] sm:$0xff] }
  0x59   :  { %2052 = vrcp.f32 %v994_v4  ;;  %v2809_v55 = vmul.f32 %v154_v39, %v154_v39  ;;  %v2811_v7 = vmul.f32 %v155_v61, %v155_v61  ;;  %v697_v2 = vadd.f32 %v696_v63, %v2686_v19  ;;  %v167_v63 = vld [vmem:[#allocation2 + $0x428] sm:$0xff] }
  0x5a   :  { %4734 = vst [vmem:[#allocation71_spill] sm:$0xff] %v2803_v40  ;;  %4735 = vst [vmem:[#allocation72_spill] sm:$0xff] %v2805_v9  ;;  %v2814_v10 = vmul.f32 %v156_v8, %v156_v8  ;;  %v2816_v53 = vmul.f32 %v157_v29, %v157_v29  ;;  %v2818_v46 = vmul.f32 %v158_v49, %v158_v49  ;;  %2054 = vrcp.f32 %v995_v42  ;;  %v168_v42 = vld [vmem:[#allocation2 + $0x430] sm:$0xff]  ;;  %v170_v29 = vld [vmem:[#allocation2 + $0x440] sm:$0xff] }
  0x5b   :  { %4736 = vst [vmem:[#allocation73_spill] sm:$0xff] %v2811_v7  ;;  %v2820_v5 = vmul.f32 %v159_v58, %v159_v58  ;;  %v2822_v45 = vmul.f32 %v160_v38, %v160_v38  ;;  %v2824_v54 = vmul.f32 %v161_v24, %v161_v24  ;;  %v636_v31 = vadd.f32 %v635_v25, %v2700_v1  ;;  %v171_v38 = vld [vmem:[#allocation2 + $0x448] sm:$0xff]  ;;  %v172_v24 = vld [vmem:[#allocation2 + $0x450] sm:$0xff] }
  0x5c   :  { %4737 = vst [vmem:[#allocation74_spill] sm:$0xff] %v2814_v10  ;;  %4738 = vst [vmem:[#allocation75_spill] sm:$0xff] %v2816_v53  ;;  %v657_v19 = vadd.f32 %v656_v30, %v2704_v16  ;;  %v677_v4 = vadd.f32 %v676_v17, %v2696_v47  ;;  %v2829_v39 = vmul.f32 %v162_v41, %v162_v41  ;;  %vm898_vm4 = vcmp.eq.f32.partialorder %v2774_v43, inf  ;;  %v169_v16 = vld [vmem:[#allocation2 + $0x438] sm:$0xff] }
  0x5d   :  { %4739 = vst [vmem:[#allocation76_spill] sm:$0xff] %v2818_v46  ;;  %4740 = vst [vmem:[#allocation77_spill] sm:$0xff] %v2820_v5  ;;  %v2831_v61 = vmul.f32 %v163_v59, %v163_v59  ;;  %vm900_vm5 = vcmp.eq.f32.partialorder %v2774_v43, 0.0  ;;  %v901_v8 = vand.u32 2147483648, %v2774_v43  ;;  %v698_v1 = vadd.f32 %v697_v2, %v2698_v51  ;;  %v173_v30 = vld [vmem:[#allocation2 + $0x458] sm:$0xff] }
  0x5e   :  { %4741 = vst [vmem:[#allocation78_spill] sm:$0xff] %v2822_v45  ;;  %4742 = vst [vmem:[#allocation79_spill] sm:$0xff] %v2824_v54  ;;  %vm905_vm6 = vcmp.eq.f32.partialorder %v2776_v34, inf  ;;  %vm907_vm7 = vcmp.eq.f32.partialorder %v2776_v34, 0.0  ;;  %v908_v47 = vand.u32 2147483648, %v2776_v34  ;;  %v2840_v49 = vmul.f32 %v164_v36, %v164_v36  ;;  %v4797_v46 = vld [vmem:[#allocation38_spill] sm:$0xff] }
  0x5f   :  { %4743 = vst [vmem:[#allocation80_spill] sm:$0xff] %v2829_v39  ;;  %4744 = vst [vmem:[#allocation81_spill] sm:$0xff] %v2831_v61  ;;  %v2049_v58 = vpop.eup %2048  ;;  %v637_v25 = vadd.f32 %v636_v31, %v2710_v52  ;;  %v2843_v17 = vmul.f32 %v165_v44, %v165_v44  ;;  %v2845_v51 = vmul.f32 %v166_v62, %v166_v62 }
  0x60   :  { %4745 = vst [vmem:[#allocation82_spill] sm:$0xff] %v2840_v49  ;;  %v2847_v2 = vmul.f32 %v167_v63, %v167_v63  ;;  %v2051_v41 = vpop.eup %2050  ;;  %v897_v59 = vmul.f32 %v2049_v58, %v2774_v43  ;;  %v658_v61 = vadd.f32 %v657_v19, %v2712_v14  ;;  %v678_v36 = vadd.f32 %v677_v4, %v2706_v26  ;;  %v174_v49 = vld [vmem:[#allocation2 + $0x460] sm:$0xff]  ;;  %v175_v58 = vld [vmem:[#allocation2 + $0x468] sm:$0xff] }
  0x61   :  { %4746 = vst [vmem:[#allocation83_spill] sm:$0xff] %v2843_v17  ;;  %4747 = vst [vmem:[#allocation84_spill] sm:$0xff] %v2845_v51  ;;  %v2852_v39 = vmul.f32 %v168_v42, %v168_v42  ;;  %v904_v52 = vmul.f32 %v2051_v41, %v2776_v34  ;;  %v699_v31 = vadd.f32 %v698_v1, %v2708_v15  ;;  %v176_v17 = vld [vmem:[#allocation2 + $0x470] sm:$0xff] }
  0x62   :  { %4748 = vst [vmem:[#allocation85_spill] sm:$0xff] %v2847_v2  ;;  %v2856_v44 = vmul.f32 %v169_v16, %v169_v16  ;;  %v2858_v62 = vmul.f32 %v170_v29, %v170_v29  ;;  %v899_v63 = vsel %vm898_vm4, %v2774_v43, %v897_v59  ;;  %v2863_v14 = vmul.f32 %v171_v38, %v171_v38 }
  0x63   :  { %4749 = vst [vmem:[#allocation86_spill] sm:$0xff] %v2852_v39  ;;  %v2865_v26 = vmul.f32 %v172_v24, %v172_v24  ;;  %v2867_v19 = vmul.f32 %v173_v30, %v173_v30  ;;  %v2869_v4 = vpop.eup %2052  ;;  %v902_v15 = vsel %vm900_vm5, %v901_v8, %v899_v63  ;;  %v906_v1 = vsel %vm905_vm6, %v2776_v34, %v904_v52  ;;  %v4762_v52 = vld [vmem:[#allocation11_spill] sm:$0xff]  ;;  %v4777_v39 = vld [vmem:[#allocation46_spill] sm:$0xff] }
  0x64   :  { %4750 = vst [vmem:[#allocation87_spill] sm:$0xff] %v2856_v44  ;;  %4751 = vst [vmem:[#allocation88_spill] sm:$0xff] %v2858_v62  ;;  %v2877_v42 = vadd.f32 %v637_v25, %v2720_v32  ;;  %v2879_v16 = vmul.f32 %v174_v49, %v174_v49  ;;  %v909_v29 = vsel %vm907_vm7, %v908_v47, %v906_v1  ;;  %v996_v38 = vmax.f32 %v902_v15, 1e-12  ;;  %v2889_v43 = vpop.eup %2054  ;;  %v4759_v47 = vld [vmem:[#allocation9_spill] sm:$0xff]  ;;  %v4765_v15 = vld [vmem:[#allocation31_spill] sm:$0xff] }
  0x65   :  { %4752 = vst [vmem:[#allocation89_spill] sm:$0xff] %v2863_v14  ;;  %4753 = vst [vmem:[#allocation90_spill] sm:$0xff] %v2865_v26  ;;  %v2884_v24 = vadd.f32 %v658_v61, %v2722_v20  ;;  %v2887_v30 = vadd.f32 %v678_v36, %v2714_v60  ;;  %v997_v8 = vmax.f32 %v909_v29, 1e-12  ;;  %v2892_v41 = vadd.f32 %v699_v31, %v2718_v3  ;;  %v4758_v61 = vld [vmem:[#allocation12_spill] sm:$0xff]  ;;  %v4761_v36 = vld [vmem:[#allocation14_spill] sm:$0xff] }
  0x66   :  { %4754 = vst [vmem:[#allocation91_spill] sm:$0xff] %v2867_v19  ;;  %4755 = vst [vmem:[#allocation92_spill] sm:$0xff] %v2879_v16  ;;  %v2894_v32 = vmul.f32 %v175_v58, %v175_v58  ;;  %v2896_v49 = vmul.f32 %v176_v17, %v176_v17  ;;  %2056 = vrcp.f32 %v996_v38  ;;  %v1035_v34 = vmul.f32 %v2869_v4, %v2323_v6  ;;  %v4760_v3 = vld [vmem:[#allocation16_spill] sm:$0xff] }
  0x67   :  { %v1027_v20 = vmul.f32 %v2869_v4, %v2311_v0  ;;  %v1039_v60 = vmul.f32 %v2869_v4, %v4758_v61  ;;  %2058 = vrcp.f32 %v997_v8  ;;  %v1031_v25 = vmul.f32 %v2869_v4, %v4759_v47  ;;  %v4763_v6 = vld [vmem:[#allocation20_spill] sm:$0xff]  ;;  %v4764_v0 = vld [vmem:[#allocation18_spill] sm:$0xff]  ;;  %v4767_v8 = vld [vmem:[#allocation13_spill] sm:$0xff] }
  0x68   :  { %4756 = vst [vmem:[#allocation93_spill] sm:$0xff] %v2894_v32  ;;  %4757 = vst [vmem:[#allocation94_spill] sm:$0xff] %v2896_v49  ;;  %v1047_v59 = vmul.f32 %v2869_v4, %v4760_v3  ;;  %v1043_v17 = vmul.f32 %v2869_v4, %v4761_v36  ;;  %v1036_v31 = vmul.f32 %v2889_v43, %v4762_v52  ;;  %v4766_v29 = vld [vmem:[#allocation8_spill] sm:$0xff]  ;;  %v4768_v47 = vld [vmem:[#allocation10_spill] sm:$0xff] }
  0x69   :  { %v1055_v63 = vmul.f32 %v2869_v4, %v4763_v6  ;;  %v1051_v58 = vmul.f32 %v2869_v4, %v4764_v0  ;;  %v1063_v1 = vmul.f32 %v2869_v4, %v4765_v15  ;;  %v1028_v38 = vmul.f32 %v2889_v43, %v4766_v29  ;;  %v4769_v36 = vld [vmem:[#allocation17_spill] sm:$0xff]  ;;  %v177_v49 = vld [vmem:[#allocation2 + $0x478] sm:$0xff] }
  0x6a   :  { %v1040_v61 = vmul.f32 %v2889_v43, %v4767_v8  ;;  %v1032_v3 = vmul.f32 %v2889_v43, %v4768_v47  ;;  %v1048_v52 = vmul.f32 %v2889_v43, %v4769_v36  ;;  %v4770_v6 = vld [vmem:[#allocation15_spill] sm:$0xff]  ;;  %v4771_v0 = vld [vmem:[#allocation22_spill] sm:$0xff]  ;;  %v4774_v8 = vld [vmem:[#allocation25_spill] sm:$0xff]  ;;  %v1293_v2 = vadd.f32 %v1036_v31, %v1035_v34 }
  0x6b   :  { %v1044_v32 = vmul.f32 %v2889_v43, %v4770_v6  ;;  %v1056_v16 = vmul.f32 %v2889_v43, %v4771_v0  ;;  %v4772_v15 = vld [vmem:[#allocation19_spill] sm:$0xff]  ;;  %v4773_v29 = vld [vmem:[#allocation34_spill] sm:$0xff]  ;;  %v1059_v14 = vmul.f32 %v2869_v4, %v4774_v8  ;;  %v4775_v47 = vld [vmem:[#allocation28_spill] sm:$0xff]  ;;  %v1072_v6 = vmul.f32 %v2889_v43, %v4777_v39 }
  0x6c   :  { %v1052_v19 = vmul.f32 %v2889_v43, %v4772_v15  ;;  %v1064_v26 = vmul.f32 %v2889_v43, %v4773_v29  ;;  %v1060_v62 = vmul.f32 %v2889_v43, %v4775_v47  ;;  %v4776_v36 = vld [vmem:[#allocation43_spill] sm:$0xff]  ;;  %v4778_v0 = vld [vmem:[#allocation37_spill] sm:$0xff]  ;;  %v4779_v15 = vld [vmem:[#allocation40_spill] sm:$0xff]  ;;  %v2946_v29 = vmul.f32 %v177_v49, %v177_v49 }
  0x6d   :  { %v1071_v44 = vmul.f32 %v2869_v4, %v4776_v36  ;;  %v1067_v51 = vmul.f32 %v2869_v4, %v4778_v0  ;;  %v1068_v54 = vmul.f32 %v2889_v43, %v4779_v15  ;;  %v1283_v45 = vadd.f32 %v1028_v38, %v1027_v20  ;;  %v4781_v34 = vld [vmem:[#allocation51_spill] sm:$0xff]  ;;  %v4782_v0 = vld [vmem:[#allocation54_spill] sm:$0xff] }
  0x6e   :  { %4780 = vst [vmem:[#allocation12_spill] sm:$0xff] %v2946_v29  ;;  %v1298_v8 = vadd.f32 %v1040_v61, %v1039_v60  ;;  %v1288_v53 = vadd.f32 %v1032_v3, %v1031_v25  ;;  %v1308_v10 = vadd.f32 %v1048_v52, %v1047_v59  ;;  %v1303_v47 = vadd.f32 %v1044_v32, %v1043_v17  ;;  %v4783_v60 = vld [vmem:[#allocation47_spill] sm:$0xff]  ;;  %v4787_v59 = vld [vmem:[#allocation21_spill] sm:$0xff]  ;;  %v4792_v52 = vld [vmem:[#allocation32_spill] sm:$0xff] }
  0x6f   :  { %v1318_v5 = vadd.f32 %v1056_v16, %v1055_v63  ;;  %v1313_v9 = vadd.f32 %v1052_v19, %v1051_v58  ;;  %v1328_v36 = vadd.f32 %v1064_v26, %v1063_v1  ;;  %v2948_v40 = vadd.f32 %v1060_v62, %v1059_v14  ;;  %v4784_v16 = vld [vmem:[#allocation50_spill] sm:$0xff]  ;;  %v4785_v62 = vld [vmem:[#allocation59_spill] sm:$0xff]  ;;  %v4790_v1 = vld [vmem:[#allocation29_spill] sm:$0xff] }
  0x70   :  { %v2950_v39 = vadd.f32 %v1072_v6, %v1071_v44  ;;  %v1079_v31 = vmul.f32 %v2869_v4, %v4781_v34  ;;  %v1080_v15 = vmul.f32 %v2889_v43, %v4782_v0  ;;  %v2956_v49 = vpop.eup %2056  ;;  %v2958_v20 = vadd.f32 %v1068_v54, %v1067_v51  ;;  %v4786_v19 = vld [vmem:[#allocation27_spill] sm:$0xff]  ;;  %v4788_v63 = vld [vmem:[#allocation30_spill] sm:$0xff]  ;;  %v4789_v51 = vld [vmem:[#allocation24_spill] sm:$0xff] }
  0x71   :  { %v1075_v32 = vmul.f32 %v2869_v4, %v4783_v60  ;;  %v1076_v26 = vmul.f32 %v2889_v43, %v4784_v16  ;;  %v1087_v44 = vmul.f32 %v2869_v4, %v4785_v62  ;;  %v2966_v14 = vpop.eup %2058  ;;  %v1037_v25 = vmul.f32 %v2956_v49, %v4786_v19  ;;  %v4791_v61 = vld [vmem:[#allocation23_spill] sm:$0xff]  ;;  %v4793_v34 = vld [vmem:[#allocation26_spill] sm:$0xff] }
  0x72   :  { %v1029_v17 = vmul.f32 %v2956_v49, %v4787_v59  ;;  %v1041_v54 = vmul.f32 %v2956_v49, %v4788_v63  ;;  %v1033_v58 = vmul.f32 %v2956_v49, %v4789_v51  ;;  %v1038_v38 = vmul.f32 %v2966_v14, %v4790_v1  ;;  %v4794_v59 = vld [vmem:[#allocation36_spill] sm:$0xff]  ;;  %v4795_v51 = vld [vmem:[#allocation33_spill] sm:$0xff]  ;;  %v4796_v1 = vld [vmem:[#allocation62_spill] sm:$0xff] }
  0x73   :  { %v1030_v3 = vmul.f32 %v2966_v14, %v4791_v61  ;;  %v1042_v6 = vmul.f32 %v2966_v14, %v4792_v52  ;;  %v1034_v0 = vmul.f32 %v2966_v14, %v4793_v34  ;;  %v1294_v60 = vadd.f32 %v1293_v2, %v1037_v25  ;;  %v4799_v34 = vld [vmem:[#allocation42_spill] sm:$0xff] }
  0x74   :  { %v1284_v16 = vadd.f32 %v1283_v45, %v1029_v17  ;;  %v1299_v62 = vadd.f32 %v1298_v8, %v1041_v54  ;;  %v1289_v19 = vadd.f32 %v1288_v53, %v1033_v58  ;;  %v1049_v63 = vmul.f32 %v2956_v49, %v4794_v59  ;;  %v4798_v17 = vld [vmem:[#allocation35_spill] sm:$0xff] }
  0x75   :  { %v1045_v29 = vmul.f32 %v2956_v49, %v4795_v51  ;;  %v1088_v7 = vmul.f32 %v2889_v43, %v4796_v1  ;;  %v639_v61 = vadd.f32 %v2877_v42, %v2728_v27  ;;  %v1295_v52 = vadd.f32 %v1294_v60, %v1038_v38  ;;  %v4800_v27 = vld [vmem:[#allocation39_spill] sm:$0xff]  ;;  %v4801_v38 = vld [vmem:[#allocation49_spill] sm:$0xff] }
  0x76   :  { %v1285_v23 = vadd.f32 %v1284_v16, %v1030_v3  ;;  %v1050_v2 = vmul.f32 %v2966_v14, %v4797_v46  ;;  %v2994_v45 = vadd.f32 %v1080_v15, %v1079_v31  ;;  %v1300_v53 = vadd.f32 %v1299_v62, %v1042_v6  ;;  %v4802_v31 = vld [vmem:[#allocation55_spill] sm:$0xff]  ;;  %v4803_v3 = vld [vmem:[#allocation58_spill] sm:$0xff]  ;;  %v4804_v16 = vld [vmem:[#allocation44_spill] sm:$0xff] }
  0x77   :  { %v1290_v8 = vadd.f32 %v1289_v19, %v1034_v0  ;;  %v1309_v25 = vadd.f32 %v1308_v10, %v1049_v63  ;;  %v1046_v54 = vmul.f32 %v2966_v14, %v4798_v17  ;;  %1296 = vadd.xlane.f32.xlu1 %v1295_v52  ;;  %v1304_v58 = vadd.f32 %v1303_v47, %v1045_v29  ;;  %v4809_v51 = vld [vmem:[#allocation53_spill] sm:$0xff]  ;;  %v4811_v17 = vld [vmem:[#allocation60_spill] sm:$0xff] }
  0x78   :  { %1286 = vadd.xlane.f32.xlu0 %v1285_v23  ;;  %v1057_v59 = vmul.f32 %v2956_v49, %v4799_v34  ;;  %v1053_v42 = vmul.f32 %v2956_v49, %v4800_v27  ;;  %v1065_v46 = vmul.f32 %v2956_v49, %v4801_v38  ;;  %v1083_v15 = vmul.f32 %v2869_v4, %v4802_v31  ;;  %v4805_v4 = vld [vmem:[#allocation41_spill] sm:$0xff]  ;;  %v4813_v34 = vld [vmem:[#allocation64_spill] sm:$0xff] }
  0x79   :  { %v1084_v10 = vmul.f32 %v2889_v43, %v4803_v3  ;;  %v640_v6 = vadd.f32 %v639_v61, %v2738_v37  ;;  %v1343_v0 = vadd.f32 %v1076_v26, %v1075_v32  ;;  %v660_v23 = vadd.f32 %v2884_v24, %v2730_v11  ;;  %v4806_v43 = vld [vmem:[#allocation45_spill] sm:$0xff]  ;;  %v4807_v26 = vld [vmem:[#allocation52_spill] sm:$0xff] }
  0x7a   :  { %v680_v29 = vadd.f32 %v2887_v30, %v2724_v12  ;;  %v701_v47 = vadd.f32 %v2892_v41, %v2726_v57  ;;  %v1310_v60 = vadd.f32 %v1309_v25, %v1050_v2  ;;  %v1058_v62 = vmul.f32 %v2966_v14, %v4804_v16  ;;  %v4808_v57 = vld [vmem:[#allocation57_spill] sm:$0xff] }
  0x7b   :  { %v1054_v19 = vmul.f32 %v2966_v14, %v4805_v4  ;;  %v1061_v37 = vmul.f32 %v2956_v49, %v4806_v43  ;;  %1301 = vadd.xlane.f32.xlu1 %v1300_v53  ;;  %v1305_v32 = vadd.f32 %v1304_v58, %v1046_v54  ;;  %v1319_v11 = vadd.f32 %v1318_v5, %v1057_v59  ;;  %v4810_v53 = vld [vmem:[#allocation48_spill] sm:$0xff]  ;;  %v4814_v38 = vld [vmem:[#allocation61_spill] sm:$0xff] }
  0x7c   :  { %1291 = vadd.xlane.f32.xlu0 %v1290_v8  ;;  %v1314_v24 = vadd.f32 %v1313_v9, %v1053_v42  ;;  %v1066_v12 = vmul.f32 %v2966_v14, %v4807_v26  ;;  %v1329_v30 = vadd.f32 %v1328_v36, %v1065_v46  ;;  %v1073_v41 = vmul.f32 %v2956_v49, %v4808_v57  ;;  %v179_v43 = vld [vmem:[#allocation2 + $0x488] sm:$0xff]  ;;  %v4823_v26 = vld [vmem:[#allocation66_spill] sm:$0xff] }
  0x7d   :  { %v641_v63 = vadd.f32 %v640_v6, %v2788_v56  ;;  %v1069_v1 = vmul.f32 %v2956_v49, %v4809_v51  ;;  %v1358_v61 = vadd.f32 %v1088_v7, %v1087_v44  ;;  %v661_v52 = vadd.f32 %v660_v23, %v2770_v22  ;;  %v4812_v44 = vld [vmem:[#allocation56_spill] sm:$0xff]  ;;  %v4825_v57 = vld [vmem:[#allocation74_spill] sm:$0xff]  ;;  %v4826_v51 = vld [vmem:[#allocation75_spill] sm:$0xff] }
  0x7e   :  { %v681_v2 = vadd.f32 %v680_v29, %v2732_v18  ;;  %v1062_v9 = vmul.f32 %v2966_v14, %v4810_v53  ;;  %v1324_v5 = vadd.f32 %v2948_v40, %v1061_v37  ;;  %v1353_v8 = vadd.f32 %v1084_v10, %v1083_v15  ;;  %v4816_v10 = vld [vmem:[#allocation63_spill] sm:$0xff]  ;;  %v4817_v6 = vld [vmem:[#allocation76_spill] sm:$0xff]  ;;  %v4818_v29 = vld [vmem:[#allocation70_spill] sm:$0xff] }
  0x7f   :  { %v702_v36 = vadd.f32 %v701_v47, %v2736_v50  ;;  %1311 = vadd.xlane.f32.xlu1 %v1310_v60  ;;  %v1320_v25 = vadd.f32 %v1319_v11, %v1058_v62  ;;  %v1315_v56 = vadd.f32 %v1314_v24, %v1054_v19  ;;  %v1074_v54 = vmul.f32 %v2966_v14, %v4811_v17  ;;  %v4819_v60 = vld [vmem:[#allocation73_spill] sm:$0xff]  ;;  %v4820_v62 = vld [vmem:[#allocation71_spill] sm:$0xff]  ;;  %v4821_v37 = vld [vmem:[#allocation68_spill] sm:$0xff] }
  0x80   :  { %1306 = vadd.xlane.f32.xlu0 %v1305_v32  ;;  %v1330_v7 = vadd.f32 %v1329_v30, %v1066_v12  ;;  %v1339_v22 = vadd.f32 %v2950_v39, %v1073_v41  ;;  %v1070_v18 = vmul.f32 %v2966_v14, %v4812_v44  ;;  %v642_v58 = vadd.f32 %v641_v63, %v2798_v33  ;;  %v4815_v33 = vld [vmem:[#allocation65_spill] sm:$0xff]  ;;  %v178_v19 = vld [vmem:[#allocation2 + $0x480] sm:$0xff] }
  0x81   :  { %v1334_v40 = vadd.f32 %v2958_v20, %v1069_v1  ;;  %v1081_v50 = vmul.f32 %v2956_v49, %v4813_v34  ;;  %v662_v59 = vadd.f32 %v661_v52, %v2792_v28  ;;  %v682_v27 = vadd.f32 %v681_v2, %v2778_v13  ;;  %v4822_v11 = vld [vmem:[#allocation72_spill] sm:$0xff]  ;;  %v4824_v30 = vld [vmem:[#allocation77_spill] sm:$0xff]  ;;  %v4830_v44 = vld [vmem:[#allocation79_spill] sm:$0xff] }
  0x82   :  { %v1325_v42 = vadd.f32 %v1324_v5, %v1062_v9  ;;  %v1077_v46 = vmul.f32 %v2956_v49, %v4814_v38  ;;  %v643_v39 = vadd.f32 %v642_v58, %v2809_v55  ;;  %v703_v31 = vadd.f32 %v702_v36, %v2780_v48  ;;  %v4827_v53 = vld [vmem:[#allocation69_spill] sm:$0xff]  ;;  %v4828_v36 = vld [vmem:[#allocation78_spill] sm:$0xff]  ;;  %v182_v58 = vld [vmem:[#allocation2 + $0x4a0] sm:$0xff] }
  0x83   :  { %1321 = vadd.xlane.f32.xlu1 %v1320_v25  ;;  %v1082_v20 = vmul.f32 %v2966_v14, %v4815_v33  ;;  %v663_v15 = vadd.f32 %v662_v59, %v2800_v21  ;;  %v683_v3 = vadd.f32 %v682_v27, %v2794_v35  ;;  %v1340_v28 = vadd.f32 %v1339_v22, %v1074_v54  ;;  %v4829_v54 = vld [vmem:[#allocation67_spill] sm:$0xff] }
  0x84   :  { %1316 = vadd.xlane.f32.xlu0 %v1315_v56  ;;  %v1078_v13 = vmul.f32 %v2966_v14, %v4816_v10  ;;  %v644_v23 = vadd.f32 %v643_v39, %v4817_v6  ;;  %v704_v47 = vadd.f32 %v703_v31, %v4818_v29  ;;  %v1335_v55 = vadd.f32 %v1334_v40, %v1070_v18  ;;  %v180_v56 = vld [vmem:[#allocation2 + $0x490] sm:$0xff]  ;;  %v183_v40 = vld [vmem:[#allocation2 + $0x4a8] sm:$0xff]  ;;  %v185_v39 = vld [vmem:[#allocation2 + $0x4b8] sm:$0xff] }
  0x85   :  { %v1349_v48 = vadd.f32 %v2994_v45, %v1081_v50  ;;  %v664_v16 = vadd.f32 %v663_v15, %v4819_v60  ;;  %v684_v4 = vadd.f32 %v683_v3, %v4820_v62  ;;  %v1344_v21 = vadd.f32 %v1343_v0, %v1077_v46  ;;  %v187_v15 = vld [vmem:[#allocation2 + $0x4c8] sm:$0xff]  ;;  %v188_v6 = vld [vmem:[#allocation2 + $0x4d0] sm:$0xff]  ;;  %v190_v60 = vld [vmem:[#allocation2 + $0x4e0] sm:$0xff] }
  0x86   :  { %v1089_v35 = vmul.f32 %v2956_v49, %v4821_v37  ;;  %v645_v32 = vrot.slane %v644_v23, 4  ;;  %v705_v24 = vadd.f32 %v704_v47, %v4822_v11  ;;  %v1085_v12 = vmul.f32 %v2956_v49, %v4823_v26  ;;  %v181_v49 = vld [vmem:[#allocation2 + $0x498] sm:$0xff]  ;;  %v195_v26 = vld [vmem:[#allocation2 + $0x508] sm:$0xff] }
  0x87   :  { %1331 = vadd.xlane.f32.xlu1 %v1330_v7  ;;  %v665_v45 = vadd.f32 %v664_v16, %v4824_v30  ;;  %v685_v41 = vadd.f32 %v684_v4, %v4825_v57  ;;  %v3068_v52 = vmul.f32 %v178_v19, %v178_v19  ;;  %v3070_v0 = vmul.f32 %v179_v43, %v179_v43  ;;  %v191_v16 = vld [vmem:[#allocation2 + $0x4e8] sm:$0xff]  ;;  %v192_v43 = vld [vmem:[#allocation2 + $0x4f0] sm:$0xff] }
  0x88   :  { %1326 = vadd.xlane.f32.xlu0 %v1325_v42  ;;  %v646_v63 = vadd.f32 %v645_v32, %v644_v23  ;;  %v706_v1 = vadd.f32 %v705_v24, %v4826_v51  ;;  %v1350_v2 = vadd.f32 %v1349_v48, %v1082_v20  ;;  %v1090_v9 = vmul.f32 %v2966_v14, %v4827_v53  ;;  %v184_v42 = vld [vmem:[#allocation2 + $0x4b0] sm:$0xff]  ;;  %v186_v20 = vld [vmem:[#allocation2 + $0x4c0] sm:$0xff]  ;;  %v189_v23 = vld [vmem:[#allocation2 + $0x4d8] sm:$0xff] }
  0x89   :  { %v666_v5 = vrot.slane %v665_v45, 4  ;;  %v686_v25 = vadd.f32 %v685_v41, %v4828_v36  ;;  %v1359_v17 = vadd.f32 %v1358_v61, %v1089_v35  ;;  %v1086_v7 = vmul.f32 %v2966_v14, %v4829_v54  ;;  %v194_v24 = vld [vmem:[#allocation2 + $0x500] sm:$0xff]  ;;  %v197_v41 = vld [vmem:[#allocation2 + $0x518] sm:$0xff]  ;;  %v199_v51 = vld [vmem:[#allocation2 + $0x528] sm:$0xff] }
  0x8a   :  { %v647_v22 = vrot.slane %v646_v63, 2  ;;  %v707_v18 = vadd.f32 %v706_v1, %v4830_v44  ;;  %v1345_v34 = vadd.f32 %v1344_v21, %v1078_v13  ;;  %v1354_v50 = vadd.f32 %v1353_v8, %v1085_v12  ;;  %v193_v21 = vld [vmem:[#allocation2 + $0x4f8] sm:$0xff]  ;;  %v196_v12 = vld [vmem:[#allocation2 + $0x510] sm:$0xff]  ;;  %v203_v54 = vld [vmem:[#allocation2 + $0x548] sm:$0xff] }
  0x8b   :  { %1341 = vadd.xlane.f32.xlu1 %v1340_v28  ;;  %v667_v59 = vadd.f32 %v666_v5, %v665_v45  ;;  %v687_v27 = vrot.slane %v686_v25, 4  ;;  %v3078_v31 = vmul.f32 %v180_v56, %v180_v56  ;;  %v3080_v61 = vmul.f32 %v181_v49, %v181_v49  ;;  %v200_v5 = vld [vmem:[#allocation2 + $0x530] sm:$0xff]  ;;  %v201_v36 = vld [vmem:[#allocation2 + $0x538] sm:$0xff] }
  0x8c   :  { %1336 = vadd.xlane.f32.xlu0 %v1335_v55  ;;  %v648_v38 = vadd.f32 %v647_v22, %v646_v63  ;;  %v708_v46 = vrot.slane %v707_v18, 4  ;;  %v3082_v3 = vmul.f32 %v182_v58, %v182_v58  ;;  %v3084_v28 = vmul.f32 %v183_v40, %v183_v40  ;;  %v198_v63 = vld [vmem:[#allocation2 + $0x520] sm:$0xff]  ;;  %v205_v22 = vld [vmem:[#allocation2 + $0x558] sm:$0xff] }
  0x8d   :  { %v668_v14 = vrot.slane %v667_v59, 2  ;;  %v688_v33 = vadd.f32 %v687_v27, %v686_v25  ;;  %v1360_v10 = vadd.f32 %v1359_v17, %v1090_v9  ;;  %v3086_v29 = vmul.f32 %v184_v42, %v184_v42  ;;  %v202_v25 = vld [vmem:[#allocation2 + $0x540] sm:$0xff] }
  0x8e   :  { %v649_v8 = vrot.slane %v648_v38, 1  ;;  %v709_v13 = vadd.f32 %v708_v46, %v707_v18  ;;  %v1355_v47 = vadd.f32 %v1354_v50, %v1086_v7  ;;  %v3088_v62 = vmul.f32 %v185_v39, %v185_v39  ;;  %v204_v7 = vld [vmem:[#allocation2 + $0x550] sm:$0xff]  ;;  %v207_v50 = vld [vmem:[#allocation2 + $0x568] sm:$0xff]  ;;  %v209_v46 = vld [vmem:[#allocation2 + $0x578] sm:$0xff] }
  0x8f   :  { %1351 = vadd.xlane.f32.xlu1 %v1350_v2  ;;  %v669_v55 = vadd.f32 %v668_v14, %v667_v59  ;;  %v689_v48 = vrot.slane %v688_v33, 2  ;;  %v3092_v37 = vmul.f32 %v186_v20, %v186_v20  ;;  %v3094_v35 = vmul.f32 %v187_v15, %v187_v15  ;;  %v208_v59 = vld [vmem:[#allocation2 + $0x570] sm:$0xff]  ;;  %v210_v39 = vld [vmem:[#allocation2 + $0x580] sm:$0xff]  ;;  %v211_v14 = vld [vmem:[#allocation2 + $0x588] sm:$0xff] }
  0x90   :  { %1346 = vadd.xlane.f32.xlu0 %v1345_v34  ;;  %v3090_v4 = vadd.f32 %v649_v8, %v648_v38  ;;  %v710_v19 = vrot.slane %v709_v13, 2  ;;  %v3096_v30 = vmul.f32 %v188_v6, %v188_v6  ;;  %v3098_v45 = vmul.f32 %v189_v23, %v189_v23  ;;  %v206_v34 = vld [vmem:[#allocation2 + $0x560] sm:$0xff] }
  0x91   :  { %v670_v32 = vrot.slane %v669_v55, 1  ;;  %v690_v11 = vadd.f32 %v689_v48, %v688_v33  ;;  %v3101_v1 = vmul.f32 %v190_v60, %v190_v60  ;;  %v3103_v2 = vmul.f32 %v191_v16, %v191_v16 }
  0x92   :  { %v711_v57 = vadd.f32 %v710_v19, %v709_v13  ;;  %2060 = vrsqrt.f32 %v3090_v4  ;;  %v3107_v56 = vmul.f32 %v192_v43, %v192_v43  ;;  %v3109_v49 = vmul.f32 %v193_v21, %v193_v21 }
  0x93   :  { %1361 = vadd.xlane.f32.xlu1 %v1360_v10  ;;  %v3105_v53 = vadd.f32 %v670_v32, %v669_v55  ;;  %v691_v9 = vrot.slane %v690_v11, 1  ;;  %v3111_v44 = vmul.f32 %v194_v24, %v194_v24  ;;  %v3113_v18 = vmul.f32 %v195_v26, %v195_v26  ;;  %v212_v10 = vld [vmem:[#allocation2 + $0x590] sm:$0xff]  ;;  %v4831_v32 = vld [vmem:[#allocation80_spill] sm:$0xff] }
  0x94   :  { %1356 = vadd.xlane.f32.xlu0 %v1355_v47  ;;  %v712_v17 = vrot.slane %v711_v57, 1  ;;  %v3115_v58 = vmul.f32 %v196_v12, %v196_v12  ;;  %v3120_v27 = vmul.f32 %v197_v41, %v197_v41  ;;  %v3122_v42 = vmul.f32 %v198_v63, %v198_v63  ;;  %v4833_v26 = vld [vmem:[#allocation81_spill] sm:$0xff]  ;;  %v4835_v41 = vld [vmem:[#allocation82_spill] sm:$0xff] }
  0x95   :  { %v3117_v40 = vadd.f32 %v691_v9, %v690_v11  ;;  %2062 = vrsqrt.f32 %v3105_v53  ;;  %v3126_v33 = vmul.f32 %v199_v51, %v199_v51  ;;  %v3128_v20 = vmul.f32 %v200_v5, %v200_v5  ;;  %v4832_v11 = vld [vmem:[#allocation84_spill] sm:$0xff]  ;;  %v4834_v12 = vld [vmem:[#allocation85_spill] sm:$0xff]  ;;  %v4836_v63 = vld [vmem:[#allocation86_spill] sm:$0xff] }
  0x96   :  { %v3124_v38 = vadd.f32 %v712_v17, %v711_v57  ;;  %v3130_v15 = vmul.f32 %v201_v36, %v201_v36  ;;  %v3133_v8 = vmul.f32 %v202_v25, %v202_v25  ;;  %v3135_v13 = vmul.f32 %v203_v54, %v203_v54  ;;  %v4837_v9 = vld [vmem:[#allocation83_spill] sm:$0xff] }
  0x97   :  { %2064 = vrsqrt.f32 %v3117_v40  ;;  %v3137_v6 = vmul.f32 %v204_v7, %v204_v7  ;;  %v3140_v23 = vmul.f32 %v205_v22, %v205_v22  ;;  %v3142_v47 = vmul.f32 %v206_v34, %v206_v34  ;;  %v4838_v5 = vld [vmem:[#allocation87_spill] sm:$0xff]  ;;  %v4839_v7 = vld [vmem:[#allocation88_spill] sm:$0xff]  ;;  %v4840_v34 = vld [vmem:[#allocation89_spill] sm:$0xff] }
  0x98   :  { %2066 = vrsqrt.f32 %v3124_v38  ;;  %v3144_v55 = vmul.f32 %v207_v50, %v207_v50  ;;  %v3146_v48 = vmul.f32 %v208_v59, %v208_v59  ;;  %v3148_v60 = vmul.f32 %v209_v46, %v209_v46  ;;  %v4841_v59 = vld [vmem:[#allocation90_spill] sm:$0xff] }
  0x99   :  { %v3150_v16 = vmul.f32 %v210_v39, %v210_v39  ;;  %v3152_v19 = vmul.f32 %v211_v14, %v211_v14  ;;  %vm912_vm8 = vcmp.eq.f32.partialorder %v3090_v4, inf  ;;  %vm914_vm9 = vcmp.eq.f32.partialorder %v3090_v4, 0.0  ;;  %v4842_v14 = vld [vmem:[#allocation91_spill] sm:$0xff] }
  0x9a   :  { %v915_v43 = vand.u32 2147483648, %v3090_v4  ;;  %v3157_v21 = vmul.f32 %v212_v10, %v212_v10  ;;  %v714_v24 = vadd.f32 %v4832_v11, %v4831_v32  ;;  %v735_v57 = vadd.f32 %v4834_v12, %v4833_v26  ;;  %v4843_v26 = vld [vmem:[#allocation92_spill] sm:$0xff] }
  0x9b   :  { %v756_v51 = vadd.f32 %v4836_v63, %v4835_v41  ;;  %v777_v36 = vadd.f32 %v4838_v5, %v4837_v9  ;;  %vm919_vm10 = vcmp.eq.f32.partialorder %v3105_v53, inf  ;;  %vm921_vm11 = vcmp.eq.f32.partialorder %v3105_v53, 0.0  ;;  %v4846_v5 = vld [vmem:[#allocation12_spill] sm:$0xff] }
  0x9c   :  { %v2061_v25 = vpop.eup %2060  ;;  %v922_v17 = vand.u32 2147483648, %v3105_v53  ;;  %vm926_vm12 = vcmp.eq.f32.partialorder %v3117_v40, inf  ;;  %v715_v22 = vadd.f32 %v714_v24, %v4839_v7  ;;  %v736_v50 = vadd.f32 %v735_v57, %v4840_v34  ;;  %v4844_v24 = vld [vmem:[#allocation93_spill] sm:$0xff]  ;;  %v4845_v57 = vld [vmem:[#allocation94_spill] sm:$0xff] }
  0x9d   :  { %v911_v54 = vmul.f32 %v2061_v25, %v3090_v4  ;;  %v757_v46 = vadd.f32 %v756_v51, %v4841_v59  ;;  %vm928_vm13 = vcmp.eq.f32.partialorder %v3117_v40, 0.0  ;;  %v929_v39 = vand.u32 2147483648, %v3117_v40 }
  0x9e   :  { %vm933_vm14 = vcmp.eq.f32.partialorder %v3124_v38, inf  ;;  %v778_v10 = vadd.f32 %v777_v36, %v4842_v14  ;;  %v716_v12 = vadd.f32 %v715_v22, %v4843_v26  ;;  %v737_v41 = vadd.f32 %v736_v50, %v4844_v24  ;;  %v214_v26 = vld [vmem:[#allocation2 + $0x5a0] sm:$0xff] }
  0x9f   :  { %v2063_v32 = vpop.eup %2062  ;;  %v913_v11 = vsel %vm912_vm8, %v3090_v4, %v911_v54  ;;  %v758_v63 = vadd.f32 %v757_v46, %v4845_v57  ;;  %vm935_vm15 = vcmp.eq.f32.partialorder %v3124_v38, 0.0  ;;  %v936_v59 = vand.u32 2147483648, %v3124_v38  ;;  %v217_v57 = vld [vmem:[#allocation2 + $0x5b8] sm:$0xff] }
  0xa0   :  { %v916_v51 = vsel %vm914_vm9, %v915_v43, %v913_v11  ;;  %v918_v9 = vmul.f32 %v2063_v32, %v3105_v53  ;;  %v779_v36 = vadd.f32 %v778_v10, %v4846_v5  ;;  %v717_v34 = vadd.f32 %v716_v12, %v3068_v52 }
  0xa1   :  { %v2065_v25 = vpop.eup %2064  ;;  %v998_v7 = vmax.f32 %v916_v51, 1e-12  ;;  %v738_v54 = vadd.f32 %v737_v41, %v3070_v0  ;;  %v759_v22 = vadd.f32 %v758_v63, %v3078_v31 }
  0xa2   :  { %v2067_v50 = vpop.eup %2066  ;;  %v920_v4 = vsel %vm919_vm10, %v3105_v53, %v918_v9  ;;  %v925_v43 = vmul.f32 %v2065_v25, %v3117_v40  ;;  %v780_v46 = vadd.f32 %v779_v36, %v3080_v61  ;;  %v718_v0 = vadd.f32 %v717_v34, %v3082_v3  ;;  %v220_v36 = vld [vmem:[#allocation2 + $0x5d0] sm:$0xff]  ;;  %v221_v25 = vld [vmem:[#allocation2 + $0x5d8] sm:$0xff]  ;;  %v222_v34 = vld [vmem:[#allocation2 + $0x5e0] sm:$0xff] }
  0xa3   :  { %v923_v14 = vsel %vm921_vm11, %v922_v17, %v920_v4  ;;  %v932_v52 = vmul.f32 %v2067_v50, %v3124_v38  ;;  %2068 = vrcp.f32 %v998_v7  ;;  %v739_v32 = vadd.f32 %v738_v54, %v3084_v28  ;;  %v213_v17 = vld [vmem:[#allocation2 + $0x598] sm:$0xff]  ;;  %v224_v4 = vld [vmem:[#allocation2 + $0x5f0] sm:$0xff] }
  0xa4   :  { %v927_v31 = vsel %vm926_vm12, %v3117_v40, %v925_v43  ;;  %v999_v10 = vmax.f32 %v923_v14, 1e-12  ;;  %v760_v11 = vadd.f32 %v759_v22, %v3086_v29  ;;  %v719_v3 = vadd.f32 %v718_v0, %v3092_v37  ;;  %v215_v40 = vld [vmem:[#allocation2 + $0x5a8] sm:$0xff]  ;;  %v218_v37 = vld [vmem:[#allocation2 + $0x5c0] sm:$0xff] }
  0xa5   :  { %v930_v61 = vsel %vm928_vm13, %v929_v39, %v927_v31  ;;  %v934_v53 = vsel %vm933_vm14, %v3124_v38, %v932_v52  ;;  %v781_v12 = vadd.f32 %v780_v46, %v3088_v62  ;;  %v740_v28 = vadd.f32 %v739_v32, %v3094_v35  ;;  %v216_v39 = vld [vmem:[#allocation2 + $0x5b0] sm:$0xff]  ;;  %v219_v35 = vld [vmem:[#allocation2 + $0x5c8] sm:$0xff]  ;;  %v225_v31 = vld [vmem:[#allocation2 + $0x5f8] sm:$0xff] }
  0xa6   :  { %v937_v24 = vsel %vm935_vm15, %v936_v59, %v934_v53  ;;  %v1000_v41 = vmax.f32 %v930_v61, 1e-12  ;;  %2070 = vrcp.f32 %v999_v10  ;;  %v720_v63 = vadd.f32 %v719_v3, %v3101_v1  ;;  %v3251_v32 = vld [vmem:[#allocation2 + $0x600] sm:$0xff] }
  0xa7   :  { %v1001_v29 = vmax.f32 %v937_v24, 1e-12  ;;  %v761_v51 = vadd.f32 %v760_v11, %v3096_v30  ;;  %v782_v9 = vadd.f32 %v781_v12, %v3098_v45  ;;  %v3221_v62 = vmul.f32 %v213_v17, %v213_v17  ;;  %4847 = vst [vmem:[#allocation9_spill] sm:$0xff] %v3251_v32  ;;  %v2108_v11 = vld [vmem:[#allocation2 + $0x220] sm:$0xff] }
  0xa8   :  { %2072 = vrcp.f32 %v1000_v41  ;;  %v3223_v38 = vmul.f32 %v214_v26, %v214_v26  ;;  %v741_v5 = vadd.f32 %v740_v28, %v3103_v2  ;;  %v721_v7 = vadd.f32 %v720_v63, %v3111_v44  ;;  %v223_v2 = vld [vmem:[#allocation2 + $0x5e8] sm:$0xff]  ;;  %v2109_v26 = vld [vmem:[#allocation2 + $0x200] sm:$0xff] }
  0xa9   :  { %2074 = vrcp.f32 %v1001_v29  ;;  %v762_v1 = vadd.f32 %v761_v51, %v3107_v56  ;;  %v783_v30 = vadd.f32 %v782_v9, %v3109_v49  ;;  %v3229_v45 = vmul.f32 %v215_v40, %v215_v40  ;;  %v2110_v29 = vld [vmem:[#allocation2 + $0x228] sm:$0xff]  ;;  %v2112_v51 = vld [vmem:[#allocation2 + $0x240] sm:$0xff] }
  0xaa   :  { %v3231_v54 = vmul.f32 %v216_v39, %v216_v39  ;;  %v3233_v22 = vmul.f32 %v217_v57, %v217_v57  ;;  %v742_v50 = vadd.f32 %v741_v5, %v3113_v18  ;;  %v474_v43 = vmul.f32 %v218_v37, %v218_v37  ;;  %v2113_v37 = vld [vmem:[#allocation2 + $0x248] sm:$0xff] }
  0xab   :  { %v722_v59 = vadd.f32 %v721_v7, %v3122_v42  ;;  %v763_v44 = vadd.f32 %v762_v1, %v3115_v58  ;;  %v784_v56 = vadd.f32 %v783_v30, %v3120_v27  ;;  %v475_v46 = vmul.f32 %v219_v35, %v219_v35  ;;  %v3253_v27 = vld [vmem:[#allocation2 + $0x608] sm:$0xff]  ;;  %v2115_v7 = vld [vmem:[#allocation2 + $0x210] sm:$0xff] }
  0xac   :  { %v3239_v49 = vmul.f32 %v220_v36, %v220_v36  ;;  %v3241_v14 = vmul.f32 %v221_v25, %v221_v25  ;;  %v743_v52 = vadd.f32 %v742_v50, %v3126_v33  ;;  %v3246_v18 = vmul.f32 %v222_v34, %v222_v34  ;;  %4848 = vst [vmem:[#allocation16_spill] sm:$0xff] %v3253_v27  ;;  %v2114_v36 = vld [vmem:[#allocation2 + $0x230] sm:$0xff]  ;;  %v2117_v34 = vld [vmem:[#allocation2 + $0x218] sm:$0xff] }
  0xad   :  { %v3244_v0 = vpop.eup %2068  ;;  %v723_v10 = vadd.f32 %v722_v59, %v3133_v8  ;;  %v764_v42 = vadd.f32 %v763_v44, %v3128_v20  ;;  %v785_v58 = vadd.f32 %v784_v56, %v3130_v15  ;;  %v479_v53 = vmul.f32 %v223_v2, %v223_v2  ;;  %v3290_v30 = vld [vmem:[#allocation2 + $0x610] sm:$0xff] }
  0xae   :  { %v1095_v61 = vmul.f32 %v2108_v11, %v3244_v0  ;;  %v3256_v33 = vmul.f32 %v224_v4, %v224_v4  ;;  %v744_v17 = vadd.f32 %v743_v52, %v3135_v13  ;;  %v1091_v3 = vmul.f32 %v2109_v26, %v3244_v0  ;;  %4851 = vst [vmem:[#allocation20_spill] sm:$0xff] %v3290_v30  ;;  %v3299_v11 = vld [vmem:[#allocation2 + $0x618] sm:$0xff] }
  0xaf   :  { %v724_v8 = vadd.f32 %v723_v10, %v3142_v47  ;;  %v765_v20 = vadd.f32 %v764_v42, %v3137_v6  ;;  %v786_v15 = vadd.f32 %v785_v58, %v3140_v23  ;;  %v3265_v24 = vmul.f32 %v225_v31, %v225_v31  ;;  %v2111_v6 = vld [vmem:[#allocation2 + $0x208] sm:$0xff]  ;;  %v2118_v42 = vld [vmem:[#allocation2 + $0x250] sm:$0xff]  ;;  %4852 = vst [vmem:[#allocation18_spill] sm:$0xff] %v3299_v11 }
  0xb0   :  { %v3263_v12 = vpop.eup %2070  ;;  %v745_v41 = vadd.f32 %v744_v17, %v3144_v55  ;;  %v3270_v28 = vmul.f32 %v3251_v32, %v3251_v32  ;;  %v3274_v13 = vmul.f32 %v3253_v27, %v3253_v27  ;;  %v1099_v9 = vmul.f32 %v2112_v51, %v3244_v0 }
  0xb1   :  { %v1096_v47 = vmul.f32 %v2110_v29, %v3263_v12  ;;  %v1092_v23 = vmul.f32 %v2111_v6, %v3263_v12  ;;  %v725_v40 = vadd.f32 %v724_v8, %v3150_v16  ;;  %v766_v39 = vadd.f32 %v765_v20, %v3146_v48  ;;  %v3311_v20 = vld [vmem:[#allocation2 + $0x628] sm:$0xff] }
  0xb2   :  { %v3280_v57 = vpop.eup %2072  ;;  %v746_v55 = vadd.f32 %v745_v41, %v3152_v19  ;;  %v787_v63 = vadd.f32 %v786_v15, %v3148_v60  ;;  %v1100_v5 = vmul.f32 %v2113_v37, %v3263_v12  ;;  %v2116_v19 = vld [vmem:[#allocation2 + $0x238] sm:$0xff]  ;;  %4854 = vst [vmem:[#allocation8_spill] sm:$0xff] %v3311_v20 }
  0xb3   :  { %4849 = vst [vmem:[#allocation14_spill] sm:$0xff] %v3280_v57  ;;  %v3286_v35 = vpop.eup %2074  ;;  %v1097_v25 = vmul.f32 %v2114_v36, %v3280_v57  ;;  %v1368_v16 = vadd.f32 %v1096_v47, %v1095_v61  ;;  %v1093_v48 = vmul.f32 %v2115_v7, %v3280_v57  ;;  %v1363_v1 = vadd.f32 %v1092_v23, %v1091_v3  ;;  %v3321_v47 = vld [vmem:[#allocation2 + $0x638] sm:$0xff] }
  0xb4   :  { %4850 = vst [vmem:[#allocation11_spill] sm:$0xff] %v3286_v35  ;;  %v1098_v60 = vmul.f32 %v2116_v19, %v3286_v35  ;;  %v1094_v50 = vmul.f32 %v2117_v34, %v3286_v35  ;;  %v726_v2 = vadd.f32 %v725_v40, %v3223_v38  ;;  %v747_v4 = vadd.f32 %v746_v55, %v3229_v45  ;;  %v3332_v55 = vld [vmem:[#allocation2 + $0x648] sm:$0xff] }
  0xb5   :  { %v1369_v59 = vadd.f32 %v1368_v16, %v1097_v25  ;;  %v1364_v44 = vadd.f32 %v1363_v1, %v1093_v48  ;;  %v767_v56 = vadd.f32 %v766_v39, %v3157_v21  ;;  %v788_v52 = vadd.f32 %v787_v63, %v3221_v62  ;;  %v3307_v21 = vld [vmem:[#allocation2 + $0x620] sm:$0xff]  ;;  %4856 = vst [vmem:[#allocation10_spill] sm:$0xff] %v3321_v47  ;;  %v3353_v34 = vld [vmem:[#allocation2 + $0x668] sm:$0xff] }
  0xb6   :  { %v727_v31 = vadd.f32 %v726_v2, %v474_v43  ;;  %v748_v10 = vadd.f32 %v747_v4, %v475_v46  ;;  %v1101_v58 = vmul.f32 %v2118_v42, %v3280_v57  ;;  %v3303_v61 = vmul.f32 %v3290_v30, %v3290_v30  ;;  %4853 = vst [vmem:[#allocation31_spill] sm:$0xff] %v3307_v21  ;;  %v2119_v46 = vld [vmem:[#allocation2 + $0x258] sm:$0xff]  ;;  %v3330_v39 = vld [vmem:[#allocation2 + $0x640] sm:$0xff] }
  0xb7   :  { %v1370_v38 = vadd.f32 %v1369_v59, %v1098_v60  ;;  %v1365_v17 = vadd.f32 %v1364_v44, %v1094_v50  ;;  %v768_v45 = vadd.f32 %v767_v56, %v3231_v54  ;;  %v789_v26 = vadd.f32 %v788_v52, %v3233_v22  ;;  %4857 = vst [vmem:[#allocation17_spill] sm:$0xff] %v3330_v39  ;;  %v3351_v60 = vld [vmem:[#allocation2 + $0x660] sm:$0xff]  ;;  %v3363_v44 = vld [vmem:[#allocation2 + $0x670] sm:$0xff]  ;;  %v3365_v56 = vld [vmem:[#allocation2 + $0x678] sm:$0xff] }
  0xb8   :  { %v728_v62 = vadd.f32 %v727_v31, %v3246_v18  ;;  %v749_v43 = vadd.f32 %v748_v10, %v479_v53  ;;  %v1102_v3 = vmul.f32 %v2119_v46, %v3286_v35  ;;  %v1373_v8 = vadd.f32 %v1100_v5, %v1099_v9  ;;  %v3319_v53 = vld [vmem:[#allocation2 + $0x630] sm:$0xff]  ;;  %4858 = vst [vmem:[#allocation15_spill] sm:$0xff] %v3332_v55  ;;  %v2121_v5 = vld [vmem:[#allocation2 + $0x268] sm:$0xff] }
  0xb9   :  { %1371 = vadd.xlane.f32.xlu1 %v1370_v38  ;;  %1366 = vadd.xlane.f32.xlu0 %v1365_v17  ;;  %v769_v15 = vadd.f32 %v768_v45, %v3239_v49  ;;  %v790_v41 = vadd.f32 %v789_v26, %v3241_v14  ;;  %v3317_v54 = vmul.f32 %v3299_v11, %v3299_v11  ;;  %v2120_v14 = vld [vmem:[#allocation2 + $0x260] sm:$0xff]  ;;  %v3378_v26 = vld [vmem:[#allocation2 + $0x688] sm:$0xff] }
  0xba   :  { %v729_v22 = vrot.slane %v728_v62, 4  ;;  %v750_v29 = vrot.slane %v749_v43, 4  ;;  %v1374_v18 = vadd.f32 %v1373_v8, %v1101_v58  ;;  %4855 = vst [vmem:[#allocation13_spill] sm:$0xff] %v3319_v53  ;;  %v3325_v6 = vmul.f32 %v3307_v21, %v3307_v21  ;;  %4861 = vst [vmem:[#allocation34_spill] sm:$0xff] %v3351_v60  ;;  %v2122_v58 = vld [vmem:[#allocation2 + $0x270] sm:$0xff]  ;;  %v3376_v45 = vld [vmem:[#allocation2 + $0x680] sm:$0xff] }
  0xbb   :  { %v770_v23 = vadd.f32 %v769_v15, %v3256_v33  ;;  %v791_v49 = vadd.f32 %v790_v41, %v3265_v24  ;;  %v1103_v40 = vmul.f32 %v2120_v14, %v3244_v0  ;;  %v3336_v63 = vmul.f32 %v3311_v20, %v3311_v20  ;;  %v3339_v33 = vld [vmem:[#allocation2 + $0x650] sm:$0xff]  ;;  %v3341_v24 = vld [vmem:[#allocation2 + $0x658] sm:$0xff]  ;;  %4862 = vst [vmem:[#allocation25_spill] sm:$0xff] %v3353_v34  ;;  %v3400_v14 = vld [vmem:[#allocation2 + $0x6a0] sm:$0xff] }
  0xbc   :  { %v730_v51 = vadd.f32 %v729_v22, %v728_v62  ;;  %v751_v9 = vadd.f32 %v750_v29, %v749_v43  ;;  %v1375_v37 = vadd.f32 %v1374_v18, %v1102_v3  ;;  %v1104_v36 = vmul.f32 %v2121_v5, %v3263_v12  ;;  %4859 = vst [vmem:[#allocation22_spill] sm:$0xff] %v3339_v33  ;;  %v3388_v41 = vld [vmem:[#allocation2 + $0x690] sm:$0xff]  ;;  %v3390_v22 = vld [vmem:[#allocation2 + $0x698] sm:$0xff]  ;;  %v3498_v11 = vld [vmem:[#allocation2 + $0x740] sm:$0xff] }
  0xbd   :  { %4860 = vst [vmem:[#allocation19_spill] sm:$0xff] %v3341_v24  ;;  %v771_v25 = vrot.slane %v770_v23, 4  ;;  %v792_v16 = vrot.slane %v791_v49, 4  ;;  %v3345_v7 = vmul.f32 %v3319_v53, %v3319_v53  ;;  %v3349_v48 = vmul.f32 %v3321_v47, %v3321_v47  ;;  %4863 = vst [vmem:[#allocation28_spill] sm:$0xff] %v3363_v44  ;;  %v3584_v20 = vld [vmem:[#allocation2 + $0x768] sm:$0xff] }
  0xbe   :  { %v731_v1 = vrot.slane %v730_v51, 2  ;;  %v752_v19 = vrot.slane %v751_v9, 2  ;;  %1376 = vadd.xlane.f32.xlu0 %v1375_v37  ;;  %v3357_v50 = vmul.f32 %v3330_v39, %v3330_v39  ;;  %v3361_v2 = vmul.f32 %v3332_v55, %v3332_v55  ;;  %4864 = vst [vmem:[#allocation43_spill] sm:$0xff] %v3365_v56  ;;  %4865 = vst [vmem:[#allocation46_spill] sm:$0xff] %v3376_v45  ;;  %v3582_v39 = vld [vmem:[#allocation2 + $0x760] sm:$0xff] }
  0xbf   :  { %v772_v4 = vadd.f32 %v771_v25, %v770_v23  ;;  %v793_v59 = vadd.f32 %v792_v16, %v791_v49  ;;  %v3369_v52 = vmul.f32 %v3339_v33, %v3339_v33  ;;  %v3373_v31 = vmul.f32 %v3341_v24, %v3341_v24  ;;  %4866 = vst [vmem:[#allocation37_spill] sm:$0xff] %v3378_v26  ;;  %v2123_v25 = vld [vmem:[#allocation2 + $0x278] sm:$0xff] }
  0xc0   :  { %v732_v10 = vadd.f32 %v731_v1, %v730_v51  ;;  %v753_v42 = vadd.f32 %v752_v19, %v751_v9  ;;  %v1105_v38 = vmul.f32 %v2122_v58, %v3280_v57  ;;  %v1378_v17 = vadd.f32 %v1104_v36, %v1103_v40  ;;  %4867 = vst [vmem:[#allocation40_spill] sm:$0xff] %v3388_v41  ;;  %v3402_v40 = vld [vmem:[#allocation2 + $0x6a8] sm:$0xff]  ;;  %v3404_v51 = vld [vmem:[#allocation2 + $0x6b0] sm:$0xff]  ;;  %v3419_v19 = vld [vmem:[#allocation2 + $0x6b8] sm:$0xff] }
  0xc1   :  { %v773_v62 = vrot.slane %v772_v4, 2  ;;  %v794_v43 = vrot.slane %v793_v59, 2  ;;  %v3382_v46 = vmul.f32 %v3351_v60, %v3351_v60  ;;  %v3386_v3 = vmul.f32 %v3353_v34, %v3353_v34  ;;  %4868 = vst [vmem:[#allocation51_spill] sm:$0xff] %v3390_v22  ;;  %4869 = vst [vmem:[#allocation54_spill] sm:$0xff] %v3400_v14  ;;  %v3527_v60 = vld [vmem:[#allocation2 + $0x750] sm:$0xff] }
  0xc2   :  { %v733_v8 = vrot.slane %v732_v10, 1  ;;  %v754_v15 = vrot.slane %v753_v42, 1  ;;  %v3394_v29 = vmul.f32 %v3363_v44, %v3363_v44  ;;  %v3398_v18 = vmul.f32 %v3365_v56, %v3365_v56  ;;  %4870 = vst [vmem:[#allocation47_spill] sm:$0xff] %v3402_v40  ;;  %4871 = vst [vmem:[#allocation50_spill] sm:$0xff] %v3404_v51  ;;  %v3427_v56 = vld [vmem:[#allocation2 + $0x6d8] sm:$0xff] }
  0xc3   :  { %v774_v23 = vadd.f32 %v773_v62, %v772_v4  ;;  %v795_v49 = vadd.f32 %v794_v43, %v793_v59  ;;  %v3408_v9 = vmul.f32 %v3376_v45, %v3376_v45  ;;  %v3412_v37 = vmul.f32 %v3378_v26, %v3378_v26  ;;  %4872 = vst [vmem:[#allocation59_spill] sm:$0xff] %v3419_v19  ;;  %v3421_v4 = vld [vmem:[#allocation2 + $0x6c0] sm:$0xff]  ;;  %v3423_v59 = vld [vmem:[#allocation2 + $0x6c8] sm:$0xff]  ;;  %v3425_v43 = vld [vmem:[#allocation2 + $0x6d0] sm:$0xff] }
  0xc4   :  { %v3414_v5 = vadd.f32 %v733_v8, %v732_v10  ;;  %v3416_v36 = vadd.f32 %v754_v15, %v753_v42  ;;  %v1106_v16 = vmul.f32 %v2123_v25, %v3286_v35  ;;  %v1379_v1 = vadd.f32 %v1378_v17, %v1105_v38  ;;  %4873 = vst [vmem:[#allocation27_spill] sm:$0xff] %v3421_v4  ;;  %v3429_v10 = vld [vmem:[#allocation2 + $0x6e0] sm:$0xff]  ;;  %v3440_v17 = vld [vmem:[#allocation2 + $0x6e8] sm:$0xff]  ;;  %v3442_v8 = vld [vmem:[#allocation2 + $0x6f0] sm:$0xff] }
  0xc5   :  { %4874 = vst [vmem:[#allocation21_spill] sm:$0xff] %v3423_v59  ;;  %v775_v58 = vrot.slane %v774_v23, 1  ;;  %v796_v62 = vrot.slane %v795_v49, 1  ;;  %4875 = vst [vmem:[#allocation30_spill] sm:$0xff] %v3425_v43  ;;  %v3433_v42 = vmul.f32 %v3388_v41, %v3388_v41  ;;  %v3437_v38 = vmul.f32 %v3390_v22, %v3390_v22  ;;  %v3444_v15 = vld [vmem:[#allocation2 + $0x6f8] sm:$0xff]  ;;  %v3463_v26 = vld [vmem:[#allocation2 + $0x700] sm:$0xff] }
  0xc6   :  { %4876 = vst [vmem:[#allocation24_spill] sm:$0xff] %v3427_v56  ;;  %4877 = vst [vmem:[#allocation29_spill] sm:$0xff] %v3429_v10  ;;  %2076 = vrsqrt.f32 %v3414_v5  ;;  %v3448_v25 = vmul.f32 %v3400_v14, %v3400_v14  ;;  %v3452_v41 = vmul.f32 %v3402_v40, %v3402_v40  ;;  %v3456_v22 = vmul.f32 %v3404_v51, %v3404_v51  ;;  %v3465_v45 = vld [vmem:[#allocation2 + $0x708] sm:$0xff]  ;;  %v3467_v14 = vld [vmem:[#allocation2 + $0x710] sm:$0xff] }
  0xc7   :  { %4878 = vst [vmem:[#allocation23_spill] sm:$0xff] %v3440_v17  ;;  %4879 = vst [vmem:[#allocation32_spill] sm:$0xff] %v3442_v8  ;;  %v3458_v24 = vadd.f32 %v775_v58, %v774_v23  ;;  %v3460_v44 = vadd.f32 %v796_v62, %v795_v49  ;;  %2078 = vrsqrt.f32 %v3416_v36  ;;  %v3471_v40 = vmul.f32 %v3419_v19, %v3419_v19  ;;  %v3475_v51 = vld [vmem:[#allocation2 + $0x718] sm:$0xff]  ;;  %v3477_v23 = vld [vmem:[#allocation2 + $0x720] sm:$0xff] }
  0xc8   :  { %4880 = vst [vmem:[#allocation26_spill] sm:$0xff] %v3444_v15  ;;  %4881 = vst [vmem:[#allocation36_spill] sm:$0xff] %v3463_v26  ;;  %v3473_v47 = vadd.f32 %v1379_v1, %v1106_v16  ;;  %v3479_v49 = vld [vmem:[#allocation2 + $0x728] sm:$0xff]  ;;  %v3483_v58 = vmul.f32 %v3421_v4, %v3421_v4  ;;  %v3487_v62 = vmul.f32 %v3423_v59, %v3423_v59  ;;  %v3494_v16 = vld [vmem:[#allocation2 + $0x730] sm:$0xff]  ;;  %vm940_vm0 = vcmp.eq.f32.partialorder %v3414_v5, inf }
  0xc9   :  { %4882 = vst [vmem:[#allocation33_spill] sm:$0xff] %v3465_v45  ;;  %4883 = vst [vmem:[#allocation62_spill] sm:$0xff] %v3467_v14  ;;  %v3491_v19 = vmul.f32 %v3425_v43, %v3425_v43  ;;  %2080 = vrsqrt.f32 %v3458_v24  ;;  %v3496_v1 = vld [vmem:[#allocation2 + $0x738] sm:$0xff]  ;;  %v3502_v4 = vmul.f32 %v3427_v56, %v3427_v56  ;;  %v3506_v59 = vmul.f32 %v3429_v10, %v3429_v10  ;;  %v3525_v10 = vld [vmem:[#allocation2 + $0x748] sm:$0xff] }
  0xca   :  { %4884 = vst [vmem:[#allocation38_spill] sm:$0xff] %v3473_v47  ;;  %4885 = vst [vmem:[#allocation35_spill] sm:$0xff] %v3475_v51  ;;  %v3510_v43 = vmul.f32 %v3440_v17, %v3440_v17  ;;  %2082 = vrsqrt.f32 %v3460_v44  ;;  %v3515_v33 = vmul.f32 %v3442_v8, %v3442_v8  ;;  %v3519_v34 = vmul.f32 %v3444_v15, %v3444_v15 }
  0xcb   :  { %4886 = vst [vmem:[#allocation42_spill] sm:$0xff] %v3477_v23  ;;  %4887 = vst [vmem:[#allocation39_spill] sm:$0xff] %v3479_v49  ;;  %v3523_v56 = vmul.f32 %v3463_v26, %v3463_v26  ;;  %v3531_v17 = vmul.f32 %v3465_v45, %v3465_v45  ;;  %v3535_v8 = vmul.f32 %v3467_v14, %v3467_v14  ;;  %vm942_vm1 = vcmp.eq.f32.partialorder %v3414_v5, 0.0 }
  0xcc   :  { %4888 = vst [vmem:[#allocation49_spill] sm:$0xff] %v3494_v16  ;;  %4889 = vst [vmem:[#allocation55_spill] sm:$0xff] %v3496_v1  ;;  %v3539_v15 = vmul.f32 %v3475_v51, %v3475_v51  ;;  %v3543_v26 = vmul.f32 %v3477_v23, %v3477_v23  ;;  %v3547_v53 = vmul.f32 %v3479_v49, %v3479_v49  ;;  %v943_v23 = vand.u32 2147483648, %v3414_v5  ;;  %v3567_v49 = vld [vmem:[#allocation2 + $0x758] sm:$0xff] }
  0xcd   :  { %4890 = vst [vmem:[#allocation58_spill] sm:$0xff] %v3498_v11  ;;  %4891 = vst [vmem:[#allocation44_spill] sm:$0xff] %v3525_v10  ;;  %v3551_v45 = vmul.f32 %v3494_v16, %v3494_v16  ;;  %v3555_v14 = vmul.f32 %v3496_v1, %v3496_v1  ;;  %v3559_v51 = vmul.f32 %v3498_v11, %v3498_v11  ;;  %vm947_vm2 = vcmp.eq.f32.partialorder %v3416_v36, inf }
  0xce   :  { %4892 = vst [vmem:[#allocation41_spill] sm:$0xff] %v3527_v60  ;;  %vm949_vm3 = vcmp.eq.f32.partialorder %v3416_v36, 0.0  ;;  %v950_v16 = vand.u32 2147483648, %v3416_v36  ;;  %v3571_v1 = vmul.f32 %v3525_v10, %v3525_v10  ;;  %v3575_v11 = vmul.f32 %v3527_v60, %v3527_v60 }
  0xcf   :  { %vm954_vm4 = vcmp.eq.f32.partialorder %v3458_v24, inf  ;;  %vm956_vm5 = vcmp.eq.f32.partialorder %v3458_v24, 0.0  ;;  %v957_v30 = vand.u32 2147483648, %v3458_v24  ;;  %vm961_vm6 = vcmp.eq.f32.partialorder %v3460_v44, inf }
  0xd0   :  { %v2077_v55 = vpop.eup %2076  ;;  %vm963_vm7 = vcmp.eq.f32.partialorder %v3460_v44, 0.0  ;;  %v798_v10 = vadd.f32 %v3325_v6, %v3270_v28  ;;  %v819_v60 = vadd.f32 %v3336_v63, %v3274_v13  ;;  %v840_v27 = vadd.f32 %v3345_v7, %v3303_v61 }
  0xd1   :  { %v2079_v21 = vpop.eup %2078  ;;  %v939_v32 = vmul.f32 %v2077_v55, %v3414_v5  ;;  %v964_v35 = vand.u32 2147483648, %v3460_v44  ;;  %v3596_v57 = vmul.f32 %v3567_v49, %v3567_v49  ;;  %v861_v47 = vadd.f32 %v3349_v48, %v3317_v54 }
  0xd2   :  { %v946_v28 = vmul.f32 %v2079_v21, %v3416_v36  ;;  %v799_v6 = vadd.f32 %v798_v10, %v3357_v50  ;;  %v820_v13 = vadd.f32 %v819_v60, %v3361_v2  ;;  %v841_v61 = vadd.f32 %v840_v27, %v3369_v52 }
  0xd3   :  { %v2081_v63 = vpop.eup %2080  ;;  %v941_v55 = vsel %vm940_vm0, %v3414_v5, %v939_v32  ;;  %v3609_v7 = vmul.f32 %v3582_v39, %v3582_v39  ;;  %v3613_v54 = vmul.f32 %v3584_v20, %v3584_v20  ;;  %v862_v21 = vadd.f32 %v861_v47, %v3373_v31 }
  0xd4   :  { %v2083_v48 = vpop.eup %2082  ;;  %v944_v60 = vsel %vm942_vm1, %v943_v23, %v941_v55  ;;  %v948_v27 = vsel %vm947_vm2, %v3416_v36, %v946_v28  ;;  %v953_v32 = vmul.f32 %v2081_v63, %v3458_v24  ;;  %v800_v50 = vadd.f32 %v799_v6, %v3382_v46  ;;  %v3649_v63 = vld [vmem:[#allocation2 + $0x790] sm:$0xff] }
  0xd5   :  { %v951_v2 = vsel %vm949_vm3, %v950_v16, %v948_v27  ;;  %v960_v52 = vmul.f32 %v2083_v48, %v3460_v44  ;;  %v1002_v10 = vmax.f32 %v944_v60, 1e-12  ;;  %v821_v47 = vadd.f32 %v820_v13, %v3386_v3  ;;  %v3637_v16 = vld [vmem:[#allocation2 + $0x770] sm:$0xff]  ;;  %v3639_v3 = vld [vmem:[#allocation2 + $0x778] sm:$0xff]  ;;  %v3665_v27 = vld [vmem:[#allocation2 + $0x7a0] sm:$0xff] }
  0xd6   :  { %v955_v31 = vsel %vm954_vm4, %v3458_v24, %v953_v32  ;;  %v1003_v5 = vmax.f32 %v951_v2, 1e-12  ;;  %v801_v23 = vadd.f32 %v800_v50, %v3408_v9  ;;  %v842_v28 = vadd.f32 %v841_v61, %v3394_v29  ;;  %v3647_v61 = vld [vmem:[#allocation2 + $0x788] sm:$0xff]  ;;  %4893 = vst [vmem:[#allocation45_spill] sm:$0xff] %v3665_v27  ;;  %v3674_v50 = vld [vmem:[#allocation2 + $0x7b8] sm:$0xff] }
  0xd7   :  { %v958_v46 = vsel %vm956_vm5, %v957_v30, %v955_v31  ;;  %v962_v36 = vsel %vm961_vm6, %v3460_v44, %v960_v52  ;;  %2084 = vrcp.f32 %v1002_v10  ;;  %v822_v6 = vadd.f32 %v821_v47, %v3412_v37  ;;  %v3645_v30 = vld [vmem:[#allocation2 + $0x780] sm:$0xff]  ;;  %v3654_v44 = vld [vmem:[#allocation2 + $0x798] sm:$0xff]  ;;  %4896 = vst [vmem:[#allocation53_spill] sm:$0xff] %v3674_v50 }
  0xd8   :  { %v965_v13 = vsel %vm963_vm7, %v964_v35, %v962_v36  ;;  %v1004_v9 = vmax.f32 %v958_v46, 1e-12  ;;  %2086 = vrcp.f32 %v1003_v5  ;;  %v802_v29 = vadd.f32 %v801_v23, %v3448_v25 }
  0xd9   :  { %v1005_v24 = vmax.f32 %v965_v13, 1e-12  ;;  %v823_v55 = vadd.f32 %v822_v6, %v3452_v41  ;;  %v843_v48 = vadd.f32 %v842_v28, %v3433_v42  ;;  %v863_v37 = vadd.f32 %v862_v21, %v3398_v18  ;;  %v3667_v41 = vld [vmem:[#allocation2 + $0x7a8] sm:$0xff]  ;;  %v3669_v42 = vld [vmem:[#allocation2 + $0x7b0] sm:$0xff]  ;;  %v3700_v28 = vld [vmem:[#allocation2 + $0x7e0] sm:$0xff] }
  0xda   :  { %2088 = vrcp.f32 %v1004_v9  ;;  %v3658_v35 = vmul.f32 %v3637_v16, %v3637_v16  ;;  %v3662_v25 = vmul.f32 %v3639_v3, %v3639_v3  ;;  %v803_v60 = vadd.f32 %v802_v29, %v3483_v58  ;;  %4894 = vst [vmem:[#allocation52_spill] sm:$0xff] %v3667_v41  ;;  %4895 = vst [vmem:[#allocation57_spill] sm:$0xff] %v3669_v42 }
  0xdb   :  { %2090 = vrcp.f32 %v1005_v24  ;;  %v824_v18 = vadd.f32 %v823_v55, %v3487_v62  ;;  %v844_v21 = vadd.f32 %v843_v48, %v3456_v22  ;;  %v864_v32 = vadd.f32 %v863_v37, %v3437_v38  ;;  %v3687_v62 = vld [vmem:[#allocation2 + $0x7c0] sm:$0xff]  ;;  %v3689_v22 = vld [vmem:[#allocation2 + $0x7c8] sm:$0xff]  ;;  %v3691_v38 = vld [vmem:[#allocation2 + $0x7d0] sm:$0xff]  ;;  %4900 = vst [vmem:[#allocation64_spill] sm:$0xff] %v3700_v28 }
  0xdc   :  { %v530_v2 = vmul.f32 %v3645_v30, %v3645_v30  ;;  %v3680_v58 = vmul.f32 %v3647_v61, %v3647_v61  ;;  %v3684_v52 = vmul.f32 %v3649_v63, %v3649_v63  ;;  %v804_v10 = vadd.f32 %v803_v60, %v3506_v59  ;;  %4897 = vst [vmem:[#allocation48_spill] sm:$0xff] %v3687_v62 }
  0xdd   :  { %4898 = vst [vmem:[#allocation60_spill] sm:$0xff] %v3689_v22  ;;  %4899 = vst [vmem:[#allocation56_spill] sm:$0xff] %v3691_v38  ;;  %v3695_v47 = vmul.f32 %v3654_v44, %v3654_v44  ;;  %v825_v31 = vadd.f32 %v824_v18, %v3510_v43  ;;  %v845_v5 = vadd.f32 %v844_v21, %v3491_v19  ;;  %v3713_v43 = vld [vmem:[#allocation2 + $0x7e8] sm:$0xff]  ;;  %v2124_v18 = vld [vmem:[#allocation2 + $0x400] sm:$0xff]  ;;  %vm1678_vm0 = vcmask 130112  }
  0xde   :  { %v865_v23 = vadd.f32 %v864_v32, %v3471_v40  ;;  %v534_v59 = vmul.f32 %v3665_v27, %v3665_v27  ;;  %v3706_v46 = vmul.f32 %v3667_v41, %v3667_v41  ;;  %v3710_v36 = vmul.f32 %v3669_v42, %v3669_v42  ;;  %4901 = vst [vmem:[#allocation61_spill] sm:$0xff] %v3713_v43  ;;  %v2125_v32 = vld [vmem:[#allocation2 + $0x420] sm:$0xff]  ;;  %v2201_v42 = vld [vmem:[#allocation2 + $0x388] sm:$0xff] }
  0xdf   :  { %v805_v6 = vadd.f32 %v804_v10, %v3523_v56  ;;  %v3717_v40 = vmul.f32 %v3674_v50, %v3674_v50  ;;  %v826_v19 = vadd.f32 %v825_v31, %v3531_v17  ;;  %v846_v13 = vadd.f32 %v845_v5, %v3515_v33  ;;  %v2126_v5 = vld [vmem:[#allocation2 + $0x408] sm:$0xff]  ;;  %v4930_v50 = vld [vmem:[#allocation47_spill] sm:$0xff] }
  0xe0   :  { %v866_v9 = vadd.f32 %v865_v23, %v3502_v4  ;;  %v538_v29 = vmul.f32 %v3687_v62, %v3687_v62  ;;  %v3726_v24 = vmul.f32 %v3689_v22, %v3689_v22  ;;  %v3730_v56 = vmul.f32 %v3691_v38, %v3691_v38  ;;  %v4939_v41 = vld [vmem:[#allocation27_spill] sm:$0xff] }
  0xe1   :  { %v806_v55 = vadd.f32 %v805_v6, %v3543_v26  ;;  %v3733_v48 = vpop.eup %2084  ;;  %v3737_v33 = vmul.f32 %v3700_v28, %v3700_v28  ;;  %v827_v4 = vadd.f32 %v826_v19, %v3547_v53  ;;  %v847_v17 = vadd.f32 %v846_v13, %v3535_v8  ;;  %v2127_v8 = vld [vmem:[#allocation2 + $0x428] sm:$0xff]  ;;  %v2132_v28 = vld [vmem:[#allocation2 + $0x418] sm:$0xff] }
  0xe2   :  { %v867_v37 = vadd.f32 %v866_v9, %v3519_v34  ;;  %v3742_v60 = vpop.eup %2086  ;;  %v1155_v21 = vmul.f32 %v2124_v18, %v3733_v48  ;;  %v1159_v26 = vmul.f32 %v2125_v32, %v3733_v48  ;;  %v3748_v10 = vmul.f32 %v3713_v43, %v3713_v43  ;;  %v2128_v18 = vld [vmem:[#allocation2 + $0x440] sm:$0xff]  ;;  %v2130_v43 = vld [vmem:[#allocation2 + $0x410] sm:$0xff] }
  0xe3   :  { %v807_v31 = vadd.f32 %v806_v55, %v3559_v51  ;;  %v1156_v53 = vmul.f32 %v2126_v5, %v3742_v60  ;;  %v1160_v34 = vmul.f32 %v2127_v8, %v3742_v60  ;;  %v828_v23 = vadd.f32 %v827_v4, %v3571_v1  ;;  %v2129_v51 = vld [vmem:[#allocation2 + $0x448] sm:$0xff]  ;;  %v2131_v4 = vld [vmem:[#allocation2 + $0x430] sm:$0xff] }
  0xe4   :  { %v848_v6 = vadd.f32 %v847_v17, %v3551_v45  ;;  %v3755_v19 = vpop.eup %2088  ;;  %v868_v9 = vadd.f32 %v867_v37, %v3539_v15  ;;  %v1163_v32 = vmul.f32 %v2128_v18, %v3733_v48  ;;  %v1164_v55 = vmul.f32 %v2129_v51, %v3742_v60  ;;  %v2133_v15 = vld [vmem:[#allocation2 + $0x438] sm:$0xff] }
  0xe5   :  { %v808_v13 = vadd.f32 %v807_v31, %v3609_v7  ;;  %v3761_v5 = vpop.eup %2090  ;;  %v1157_v8 = vmul.f32 %v2130_v43, %v3755_v19  ;;  %v1443_v1 = vadd.f32 %v1156_v53, %v1155_v21  ;;  %v1161_v45 = vmul.f32 %v2131_v4, %v3755_v19  ;;  %v2134_v4 = vld [vmem:[#allocation2 + $0x450] sm:$0xff] }
  0xe6   :  { %v1448_v17 = vadd.f32 %v1160_v34, %v1159_v26  ;;  %v1158_v7 = vmul.f32 %v2132_v28, %v3761_v5  ;;  %v1162_v37 = vmul.f32 %v2133_v15, %v3761_v5  ;;  %v829_v18 = vadd.f32 %v828_v23, %v3613_v54  ;;  %v2135_v34 = vld [vmem:[#allocation2 + $0x280] sm:$0xff]  ;;  %v3775_v23 = vld [vmem:[#allocation2 + $0x7d8] sm:$0xff] }
  0xe7   :  { %v809_v31 = vadd.f32 %v808_v13, %v530_v2  ;;  %v1444_v51 = vadd.f32 %v1443_v1, %v1157_v8  ;;  %v849_v22 = vadd.f32 %v848_v6, %v3575_v11  ;;  %v869_v43 = vadd.f32 %v868_v9, %v3555_v14  ;;  %4902 = vst [vmem:[#allocation65_spill] sm:$0xff] %v3775_v23  ;;  %v3777_v11 = vld [vmem:[#allocation2 + $0x7f0] sm:$0xff]  ;;  %v3781_v9 = vld [vmem:[#allocation2 + $0x7f8] sm:$0xff] }
  0xe8   :  { %v1449_v38 = vadd.f32 %v1448_v17, %v1161_v45  ;;  %v830_v53 = vadd.f32 %v829_v18, %v3680_v58  ;;  %v1165_v26 = vmul.f32 %v2134_v4, %v3755_v19  ;;  %v1107_v28 = vmul.f32 %v2135_v34, %v3244_v0  ;;  %4903 = vst [vmem:[#allocation63_spill] sm:$0xff] %v3777_v11  ;;  %v2136_v58 = vld [vmem:[#allocation2 + $0x458] sm:$0xff] }
  0xe9   :  { %v810_v21 = vadd.f32 %v809_v31, %v534_v59  ;;  %v1445_v62 = vadd.f32 %v1444_v51, %v1158_v7  ;;  %v850_v2 = vadd.f32 %v849_v22, %v3658_v35  ;;  %v870_v54 = vadd.f32 %v869_v43, %v3596_v57  ;;  %4904 = vst [vmem:[#allocation76_spill] sm:$0xff] %v3781_v9  ;;  %v2137_v57 = vld [vmem:[#allocation2 + $0x288] sm:$0xff]  ;;  %v4905_v17 = vld [vmem:[#allocation38_spill] sm:$0xff]  ;;  %v4907_v4 = vld [vmem:[#allocation11_spill] sm:$0xff] }
  0xea   :  { %v1450_v15 = vadd.f32 %v1449_v38, %v1162_v37  ;;  %v831_v59 = vadd.f32 %v830_v53, %v3706_v46  ;;  %v1166_v6 = vmul.f32 %v2136_v58, %v3761_v5  ;;  %v1453_v13 = vadd.f32 %v1164_v55, %v1163_v32  ;;  %v2138_v37 = vld [vmem:[#allocation2 + $0x290] sm:$0xff]  ;;  %v2139_v53 = vld [vmem:[#allocation2 + $0x298] sm:$0xff] }
  0xeb   :  { %v811_v14 = vadd.f32 %v810_v21, %v538_v29  ;;  %1446 = vadd.xlane.f32.xlu1 %v1445_v62  ;;  %v851_v38 = vadd.f32 %v850_v2, %v3684_v52  ;;  %v871_v35 = vadd.f32 %v870_v54, %v3662_v25  ;;  %v1108_v22 = vmul.f32 %v2137_v57, %v3263_v12  ;;  %v4906_v31 = vld [vmem:[#allocation14_spill] sm:$0xff]  ;;  %v2141_v2 = vld [vmem:[#allocation2 + $0x2a8] sm:$0xff] }
  0xec   :  { %1451 = vadd.xlane.f32.xlu0 %v1450_v15  ;;  %v832_v29 = vadd.f32 %v831_v59, %v3726_v24  ;;  %v1454_v46 = vadd.f32 %v1453_v13, %v1165_v26  ;;  %v541_v1 = vmul.f32 %v3775_v23, %v3775_v23  ;;  %v544_v62 = vmul.f32 %v3777_v11, %v3777_v11  ;;  %v2140_v15 = vld [vmem:[#allocation2 + $0x2a0] sm:$0xff]  ;;  %v2142_v59 = vld [vmem:[#allocation2 + $0x2b0] sm:$0xff]  ;;  %v2144_v57 = vld [vmem:[#allocation2 + $0x468] sm:$0xff] }
  0xed   :  { %v812_v8 = vadd.f32 %v811_v14, %v3737_v33  ;;  %v852_v32 = vadd.f32 %v851_v38, %v3710_v36  ;;  %v872_v52 = vadd.f32 %v871_v35, %v3695_v47  ;;  %v545_v25 = vmul.f32 %v3781_v9, %v3781_v9  ;;  %v2143_v38 = vld [vmem:[#allocation2 + $0x460] sm:$0xff]  ;;  %v4927_v11 = vld [vmem:[#allocation46_spill] sm:$0xff] }
  0xee   :  { %v833_v45 = vadd.f32 %v832_v29, %v3748_v10  ;;  %v1455_v33 = vadd.f32 %v1454_v46, %v1166_v6  ;;  %v1109_v18 = vmul.f32 %v2138_v37, %v4906_v31  ;;  %v1383_v51 = vadd.f32 %v1108_v22, %v1107_v28  ;;  %v2145_v46 = vld [vmem:[#allocation2 + $0x480] sm:$0xff] }
  0xef   :  { %v813_v55 = vrot.slane %v812_v8, 4  ;;  %1381 = vadd.xlane.f32.xlu1 %v4905_v17  ;;  %v853_v24 = vadd.f32 %v852_v32, %v3730_v56  ;;  %v873_v7 = vadd.f32 %v872_v52, %v3717_v40  ;;  %v3802_v26 = vmul.f32 %v2139_v53, %v4907_v4 }
  0xf0   :  { %v834_v43 = vrot.slane %v833_v45, 4  ;;  %1456 = vadd.xlane.f32.xlu0 %v1455_v33  ;;  %v1111_v56 = vmul.f32 %v2140_v15, %v3244_v0  ;;  %v1112_v40 = vmul.f32 %v2141_v2, %v3263_v12  ;;  %v3806_v28 = vadd.f32 %v1383_v51, %v1109_v18  ;;  %v2149_v18 = vld [vmem:[#allocation2 + $0x2c8] sm:$0xff]  ;;  %v2151_v15 = vld [vmem:[#allocation2 + $0x490] sm:$0xff] }
  0xf1   :  { %v814_v36 = vadd.f32 %v813_v55, %v812_v8  ;;  %v854_v47 = vadd.f32 %v853_v24, %v544_v62  ;;  %v874_v21 = vadd.f32 %v873_v7, %v541_v1  ;;  %v1113_v58 = vmul.f32 %v2142_v59, %v4906_v31  ;;  %v2146_v62 = vld [vmem:[#allocation2 + $0x488] sm:$0xff]  ;;  %v2147_v55 = vld [vmem:[#allocation2 + $0x2b8] sm:$0xff]  ;;  %v2148_v7 = vld [vmem:[#allocation2 + $0x2c0] sm:$0xff] }
  0xf2   :  { %v835_v34 = vadd.f32 %v834_v43, %v833_v45  ;;  %v1167_v35 = vmul.f32 %v2143_v38, %v3733_v48  ;;  %v1168_v22 = vmul.f32 %v2144_v57, %v3742_v60  ;;  %v1171_v1 = vmul.f32 %v2145_v46, %v3733_v48  ;;  %v2153_v59 = vld [vmem:[#allocation2 + $0x4a8] sm:$0xff] }
  0xf3   :  { %v815_v10 = vrot.slane %v814_v36, 2  ;;  %v855_v54 = vrot.slane %v854_v47, 4  ;;  %v875_v14 = vadd.f32 %v874_v21, %v545_v25  ;;  %v1172_v32 = vmul.f32 %v2146_v62, %v3742_v60 }
  0xf4   :  { %v836_v13 = vrot.slane %v835_v34, 2  ;;  %v1114_v45 = vmul.f32 %v2147_v55, %v4907_v4  ;;  %v1388_v33 = vadd.f32 %v1112_v40, %v1111_v56  ;;  %v1115_v37 = vmul.f32 %v2148_v7, %v3244_v0  ;;  %v2157_v55 = vld [vmem:[#allocation2 + $0x4c8] sm:$0xff]  ;;  %v2159_v7 = vld [vmem:[#allocation2 + $0x4b0] sm:$0xff] }
  0xf5   :  { %v816_v6 = vadd.f32 %v815_v10, %v814_v36  ;;  %v856_v8 = vadd.f32 %v855_v54, %v854_v47  ;;  %v876_v29 = vrot.slane %v875_v14, 4  ;;  %v1116_v51 = vmul.f32 %v2149_v18, %v3263_v12  ;;  %v2150_v47 = vld [vmem:[#allocation2 + $0x470] sm:$0xff]  ;;  %v2152_v54 = vld [vmem:[#allocation2 + $0x4a0] sm:$0xff] }
  0xf6   :  { %v837_v25 = vadd.f32 %v836_v13, %v835_v34  ;;  %v1169_v21 = vmul.f32 %v2150_v47, %v3755_v19  ;;  %v1458_v53 = vadd.f32 %v1168_v22, %v1167_v35  ;;  %v1173_v56 = vmul.f32 %v2151_v15, %v3755_v19  ;;  %v2154_v35 = vld [vmem:[#allocation2 + $0x2d0] sm:$0xff] }
  0xf7   :  { %v817_v52 = vrot.slane %v816_v6, 1  ;;  %v857_v17 = vrot.slane %v856_v8, 2  ;;  %v877_v24 = vadd.f32 %v876_v29, %v875_v14  ;;  %v1463_v2 = vadd.f32 %v1172_v32, %v1171_v1 }
  0xf8   :  { %v838_v43 = vrot.slane %v837_v25, 1  ;;  %v1175_v14 = vmul.f32 %v2152_v54, %v3733_v48  ;;  %v1389_v57 = vadd.f32 %v1388_v33, %v1113_v58  ;;  %v1117_v22 = vmul.f32 %v2154_v35, %v4906_v31  ;;  %v2158_v58 = vld [vmem:[#allocation2 + $0x498] sm:$0xff] }
  0xf9   :  { %v3816_v36 = vadd.f32 %v817_v52, %v816_v6  ;;  %v858_v10 = vadd.f32 %v857_v17, %v856_v8  ;;  %v878_v34 = vrot.slane %v877_v24, 2  ;;  %v1176_v6 = vmul.f32 %v2153_v59, %v3742_v60  ;;  %v2155_v8 = vld [vmem:[#allocation2 + $0x478] sm:$0xff]  ;;  %v2156_v52 = vld [vmem:[#allocation2 + $0x4c0] sm:$0xff] }
  0xfa   :  { %v3820_v40 = vadd.f32 %v838_v43, %v837_v25  ;;  %v1170_v29 = vmul.f32 %v2155_v8, %v3761_v5  ;;  %v1459_v46 = vadd.f32 %v1458_v53, %v1169_v21  ;;  %v1393_v1 = vadd.f32 %v1116_v51, %v1115_v37  ;;  %v2160_v51 = vld [vmem:[#allocation2 + $0x2d8] sm:$0xff] }
  0xfb   :  { %2092 = vrsqrt.f32 %v3816_v36  ;;  %v859_v13 = vrot.slane %v858_v10, 1  ;;  %v879_v38 = vadd.f32 %v878_v34, %v877_v24  ;;  %v1179_v25 = vmul.f32 %v2156_v52, %v3733_v48  ;;  %v2161_v34 = vld [vmem:[#allocation2 + $0x2e0] sm:$0xff] }
  0xfc   :  { %2094 = vrsqrt.f32 %v3820_v40  ;;  %v1180_v17 = vmul.f32 %v2157_v55, %v3742_v60  ;;  %v1174_v33 = vmul.f32 %v2158_v58, %v3761_v5  ;;  %v1464_v24 = vadd.f32 %v1463_v2, %v1173_v56  ;;  %v2162_v56 = vld [vmem:[#allocation2 + $0x2e8] sm:$0xff] }
  0xfd   :  { %v3828_v62 = vadd.f32 %v859_v13, %v858_v10  ;;  %v880_v32 = vrot.slane %v879_v38, 1  ;;  %v1177_v18 = vmul.f32 %v2159_v7, %v3755_v19  ;;  %v1468_v43 = vadd.f32 %v1176_v6, %v1175_v14  ;;  %v2164_v6 = vld [vmem:[#allocation2 + $0x4b8] sm:$0xff]  ;;  %v2169_v7 = vld [vmem:[#allocation2 + $0x308] sm:$0xff] }
  0xfe   :  { %v3839_v37 = vadd.f32 %v3806_v28, %v3802_v26  ;;  %v3842_v21 = vmul.f32 %v2160_v51, %v4907_v4  ;;  %v3844_v53 = vadd.f32 %v1459_v46, %v1170_v29  ;;  %v3846_v10 = vadd.f32 %v1389_v57, %v1114_v45  ;;  %v2163_v26 = vld [vmem:[#allocation2 + $0x4d0] sm:$0xff] }
  0xff   :  { %v3834_v47 = vadd.f32 %v880_v32, %v879_v38  ;;  %2096 = vrsqrt.f32 %v3828_v62  ;;  %v1119_v15 = vmul.f32 %v2161_v34, %v3244_v0  ;;  %v1120_v2 = vmul.f32 %v2162_v56, %v3263_v12  ;;  %v2165_v38 = vld [vmem:[#allocation2 + $0x4d8] sm:$0xff]  ;;  %v2166_v29 = vld [vmem:[#allocation2 + $0x2f0] sm:$0xff] }
 0x100   :  { %v3851_v54 = vadd.f32 %v1393_v1, %v1117_v22  ;;  %v1181_v28 = vmul.f32 %v2163_v26, %v3755_v19  ;;  %v1473_v14 = vadd.f32 %v1180_v17, %v1179_v25  ;;  %v3854_v59 = vadd.f32 %v1464_v24, %v1174_v33  ;;  %v2167_v25 = vld [vmem:[#allocation2 + $0x2f8] sm:$0xff]  ;;  %v2168_v17 = vld [vmem:[#allocation2 + $0x300] sm:$0xff]  ;;  %v2170_v34 = vld [vmem:[#allocation2 + $0x310] sm:$0xff] }
 0x101   :  { %2098 = vrsqrt.f32 %v3834_v47  ;;  %v3857_v45 = vmul.f32 %v2164_v6, %v3761_v5  ;;  %v3859_v13 = vadd.f32 %v1468_v43, %v1177_v18  ;;  %v3862_v57 = vmul.f32 %v2165_v38, %v3761_v5  ;;  %v2171_v38 = vld [vmem:[#allocation2 + $0x4e0] sm:$0xff] }
 0x102   :  { %vm968_vm8 = vcmp.eq.f32.partialorder %v3816_v36, inf  ;;  %vm970_vm9 = vcmp.eq.f32.partialorder %v3816_v36, 0.0  ;;  %v971_v35 = vand.u32 2147483648, %v3816_v36  ;;  %vm975_vm10 = vcmp.eq.f32.partialorder %v3820_v40, inf }
 0x103   :  { %vm977_vm11 = vcmp.eq.f32.partialorder %v3820_v40, 0.0  ;;  %v978_v8 = vand.u32 2147483648, %v3820_v40  ;;  %v1121_v46 = vmul.f32 %v2166_v29, %v4906_v31  ;;  %v1398_v1 = vadd.f32 %v1120_v2, %v1119_v15  ;;  %v2172_v29 = vld [vmem:[#allocation2 + $0x4e8] sm:$0xff] }
 0x104   :  { %v3872_v52 = vadd.f32 %v1473_v14, %v1181_v28  ;;  %v3875_v55 = vmul.f32 %v2167_v25, %v4907_v4  ;;  %v1123_v58 = vmul.f32 %v2168_v17, %v3244_v0  ;;  %vm982_vm12 = vcmp.eq.f32.partialorder %v3828_v62, inf  ;;  %v2173_v25 = vld [vmem:[#allocation2 + $0x500] sm:$0xff] }
 0x105   :  { %v2093_v22 = vpop.eup %2092  ;;  %vm984_vm13 = vcmp.eq.f32.partialorder %v3828_v62, 0.0  ;;  %v985_v24 = vand.u32 2147483648, %v3828_v62  ;;  %v1124_v18 = vmul.f32 %v2169_v7, %v3263_v12  ;;  %vm989_vm14 = vcmp.eq.f32.partialorder %v3834_v47, inf }
 0x106   :  { %v967_v32 = vmul.f32 %v2093_v22, %v3816_v36  ;;  %v2095_v33 = vpop.eup %2094  ;;  %v1125_v15 = vmul.f32 %v2170_v34, %v4906_v31  ;;  %vm991_vm15 = vcmp.eq.f32.partialorder %v3834_v47, 0.0  ;;  %v992_v2 = vand.u32 2147483648, %v3834_v47  ;;  %v2176_v34 = vld [vmem:[#allocation2 + $0x328] sm:$0xff] }
 0x107   :  { %v974_v51 = vmul.f32 %v2095_v33, %v3820_v40  ;;  %v3892_v26 = vadd.f32 %v1398_v1, %v1121_v46  ;;  %v1183_v22 = vmul.f32 %v2171_v38, %v3733_v48  ;;  %v1187_v46 = vmul.f32 %v2173_v25, %v3733_v48  ;;  %v2174_v1 = vld [vmem:[#allocation2 + $0x508] sm:$0xff] }
 0x108   :  { %v969_v43 = vsel %vm968_vm8, %v3816_v36, %v967_v32  ;;  %v1184_v32 = vmul.f32 %v2172_v29, %v3742_v60  ;;  %v1188_v17 = vmul.f32 %v2174_v1, %v3742_v60  ;;  %v2179_v25 = vld [vmem:[#allocation2 + $0x348] sm:$0xff]  ;;  %vm1685_vm1 = vcmask 195712  }
 0x109   :  { %v972_v56 = vsel %vm970_vm9, %v971_v35, %v969_v43  ;;  %v2097_v28 = vpop.eup %2096  ;;  %v976_v14 = vsel %vm975_vm10, %v3820_v40, %v974_v51  ;;  %v2175_v43 = vld [vmem:[#allocation2 + $0x320] sm:$0xff]  ;;  %v1132_v1 = vmul.f32 %v2179_v25, %v3263_v12  ;;  %vm1692_vm2 = vcmask 261312  }
 0x10a   :  { %v1006_v6 = vmax.f32 %v972_v56, 1e-12  ;;  %v979_v36 = vsel %vm977_vm11, %v978_v8, %v976_v14  ;;  %v981_v35 = vmul.f32 %v2097_v28, %v3828_v62  ;;  %v1127_v51 = vmul.f32 %v2175_v43, %v3244_v0  ;;  %v2177_v14 = vld [vmem:[#allocation2 + $0x4f0] sm:$0xff] }
 0x10b   :  { %v2099_v33 = vpop.eup %2098  ;;  %v1007_v7 = vmax.f32 %v979_v36, 1e-12  ;;  %v1128_v56 = vmul.f32 %v2176_v34, %v3263_v12  ;;  %v1403_v28 = vadd.f32 %v1124_v18, %v1123_v58  ;;  %v1185_v38 = vmul.f32 %v2177_v14, %v3755_v19  ;;  %v2180_v58 = vld [vmem:[#allocation2 + $0x510] sm:$0xff] }
 0x10c   :  { %2100 = vrcp.f32 %v1006_v6  ;;  %v983_v40 = vsel %vm982_vm12, %v3828_v62, %v981_v35  ;;  %v988_v8 = vmul.f32 %v2099_v33, %v3834_v47  ;;  %v2178_v6 = vld [vmem:[#allocation2 + $0x340] sm:$0xff]  ;;  %v1478_v33 = vadd.f32 %v1184_v32, %v1183_v22 }
 0x10d   :  { %v986_v29 = vsel %vm984_vm13, %v985_v24, %v983_v40  ;;  %2102 = vrcp.f32 %v1007_v7  ;;  %v1131_v36 = vmul.f32 %v2178_v6, %v3244_v0  ;;  %v1189_v18 = vmul.f32 %v2180_v58, %v3755_v19  ;;  %v2181_v7 = vld [vmem:[#allocation2 + $0x330] sm:$0xff]  ;;  %v2182_v6 = vld [vmem:[#allocation2 + $0x318] sm:$0xff] }
 0x10e   :  { %v990_v35 = vsel %vm989_vm14, %v3834_v47, %v988_v8  ;;  %v1008_v43 = vmax.f32 %v986_v29, 1e-12  ;;  %v1483_v24 = vadd.f32 %v1188_v17, %v1187_v46  ;;  %v1129_v34 = vmul.f32 %v2181_v7, %v4906_v31  ;;  %v2183_v8 = vld [vmem:[#allocation2 + $0x350] sm:$0xff]  ;;  %v2184_v29 = vld [vmem:[#allocation2 + $0x520] sm:$0xff]  ;;  %v2185_v47 = vld [vmem:[#allocation2 + $0x528] sm:$0xff] }
 0x10f   :  { %v993_v62 = vsel %vm991_vm15, %v992_v2, %v990_v35  ;;  %v1408_v40 = vadd.f32 %v1128_v56, %v1127_v51  ;;  %v1126_v25 = vmul.f32 %v2182_v6, %v4907_v4  ;;  %v1404_v9 = vadd.f32 %v1403_v28, %v1125_v15  ;;  %v2186_v17 = vld [vmem:[#allocation2 + $0x4f8] sm:$0xff] }
 0x110   :  { %v1009_v14 = vmax.f32 %v993_v62, 1e-12  ;;  %2104 = vrcp.f32 %v1008_v43  ;;  %v1133_v22 = vmul.f32 %v2183_v8, %v4906_v31  ;;  %v1413_v32 = vadd.f32 %v1132_v1, %v1131_v36  ;;  %v2187_v56 = vld [vmem:[#allocation2 + $0x518] sm:$0xff] }
 0x111   :  { %v1191_v58 = vmul.f32 %v2184_v29, %v3733_v48  ;;  %v1192_v2 = vmul.f32 %v2185_v47, %v3742_v60  ;;  %v3928_v46 = vadd.f32 %v3851_v54, %v3842_v21  ;;  %v1186_v51 = vmul.f32 %v2186_v17, %v3761_v5  ;;  %v2188_v36 = vld [vmem:[#allocation2 + $0x338] sm:$0xff]  ;;  %v4914_v47 = vld [vmem:[#allocation16_spill] sm:$0xff] }
 0x112   :  { %2106 = vrcp.f32 %v1009_v14  ;;  %v1190_v15 = vmul.f32 %v2187_v56, %v3761_v5  ;;  %v1479_v28 = vadd.f32 %v1478_v33, %v1185_v38  ;;  %v1484_v35 = vadd.f32 %v1483_v24, %v1189_v18  ;;  %v2189_v33 = vld [vmem:[#allocation2 + $0x358] sm:$0xff]  ;;  %v4915_v17 = vld [vmem:[#allocation8_spill] sm:$0xff] }
 0x113   :  { %v1130_v1 = vmul.f32 %v2188_v36, %v4907_v4  ;;  %v1409_v43 = vadd.f32 %v1408_v40, %v1129_v34  ;;  %v3935_v62 = vadd.f32 %v3859_v13, %v3857_v45  ;;  %v3939_v21 = vadd.f32 %v3872_v52, %v3862_v57  ;;  %v2190_v34 = vld [vmem:[#allocation2 + $0x530] sm:$0xff]  ;;  %v4910_v52 = vld [vmem:[#allocation31_spill] sm:$0xff] }
 0x114   :  { %v3943_v54 = vadd.f32 %v3892_v26, %v3875_v55  ;;  %v3945_v7 = vadd.f32 %v1404_v9, %v1126_v25  ;;  %v1134_v18 = vmul.f32 %v2189_v33, %v4907_v4  ;;  %v1414_v24 = vadd.f32 %v1413_v32, %v1133_v22  ;;  %v4909_v40 = vld [vmem:[#allocation9_spill] sm:$0xff]  ;;  %v2191_v55 = vld [vmem:[#allocation2 + $0x540] sm:$0xff]  ;;  %v2193_v29 = vld [vmem:[#allocation2 + $0x538] sm:$0xff] }
 0x115   :  { %v1193_v45 = vmul.f32 %v2190_v34, %v3755_v19  ;;  %v1488_v13 = vadd.f32 %v1192_v2, %v1191_v58  ;;  %v1195_v9 = vmul.f32 %v2191_v55, %v3733_v48  ;;  %v2192_v26 = vld [vmem:[#allocation2 + $0x548] sm:$0xff]  ;;  %v3959_v8 = vadd.f32 %v1479_v28, %v1186_v51  ;;  %v4917_v34 = vld [vmem:[#allocation15_spill] sm:$0xff] }
 0x116   :  { %4908 = vst [vmem:[#allocation70_spill] sm:$0xff] %v3945_v7  ;;  %v3947_v38 = vpop.eup %2100  ;;  %v1196_v6 = vmul.f32 %v2192_v26, %v3742_v60  ;;  %v3961_v22 = vadd.f32 %v1484_v35, %v1190_v15  ;;  %v3963_v32 = vadd.f32 %v1409_v43, %v1130_v1  ;;  %v1194_v58 = vmul.f32 %v2193_v29, %v3761_v5  ;;  %v4916_v36 = vld [vmem:[#allocation17_spill] sm:$0xff]  ;;  %v2195_v43 = vld [vmem:[#allocation2 + $0x558] sm:$0xff] }
 0x117   :  { %v1219_v57 = vmul.f32 %v3947_v38, %v4909_v40  ;;  %v1223_v14 = vmul.f32 %v3947_v38, %v4910_v52  ;;  %v3957_v25 = vpop.eup %2102  ;;  %4911 = vst [vmem:[#allocation73_spill] sm:$0xff] %v3959_v8  ;;  %v1227_v33 = vmul.f32 %v3947_v38, %v4916_v36  ;;  %v3974_v28 = vadd.f32 %v1414_v24, %v1134_v18  ;;  %v2194_v35 = vld [vmem:[#allocation2 + $0x550] sm:$0xff]  ;;  %v3983_v36 = vpop.xlane.xlu0 %1286  ;;  %v4920_v18 = vld [vmem:[#allocation20_spill] sm:$0xff] }
 0x118   :  { %4912 = vst [vmem:[#allocation71_spill] sm:$0xff] %v3961_v22  ;;  %4913 = vst [vmem:[#allocation68_spill] sm:$0xff] %v3963_v32  ;;  %v1220_v2 = vmul.f32 %v3957_v25, %v4914_v47  ;;  %v1224_v56 = vmul.f32 %v3957_v25, %v4915_v17  ;;  %v1228_v51 = vmul.f32 %v3957_v25, %v4917_v34  ;;  %v2196_v47 = vld [vmem:[#allocation2 + $0x360] sm:$0xff]  ;;  %v4922_v34 = vld [vmem:[#allocation34_spill] sm:$0xff]  ;;  %vm1699_vm3 = vcmask 326912  }
 0x119   :  { %4918 = vst [vmem:[#allocation72_spill] sm:$0xff] %v3974_v28  ;;  %v1489_v15 = vadd.f32 %v1488_v13, %v1193_v45  ;;  %v1197_v1 = vmul.f32 %v2194_v35, %v3755_v19  ;;  %v3978_v40 = vmul.f32 %v2195_v43, %v3761_v5  ;;  %v1493_v29 = vadd.f32 %v1196_v6, %v1195_v9  ;;  %v4921_v45 = vld [vmem:[#allocation13_spill] sm:$0xff] }
 0x11a   :  { %v3980_v52 = vpop.eup %2104  ;;  %v1523_v55 = vadd.f32 %v1220_v2, %v1219_v57  ;;  %v1528_v26 = vadd.f32 %v1224_v56, %v1223_v14  ;;  %v1135_v17 = vmul.f32 %v2196_v47, %v3244_v0  ;;  %4919 = vst [vmem:[#allocation66_spill] sm:$0xff] %v3983_v36  ;;  %v1231_v35 = vmul.f32 %v3947_v38, %v4922_v34  ;;  %v4923_v43 = vld [vmem:[#allocation25_spill] sm:$0xff]  ;;  %v4924_v14 = vld [vmem:[#allocation22_spill] sm:$0xff] }
 0x11b   :  { %v1221_v24 = vmul.f32 %v3980_v52, %v4920_v18  ;;  %v1225_v13 = vmul.f32 %v3980_v52, %v4921_v45  ;;  %v1232_v28 = vmul.f32 %v3957_v25, %v4923_v43  ;;  %v1229_v9 = vmul.f32 %v3980_v52, %v4924_v14  ;;  %v2197_v2 = vld [vmem:[#allocation2 + $0x368] sm:$0xff]  ;;  %v2198_v47 = vld [vmem:[#allocation2 + $0x370] sm:$0xff] }
 0x11c   :  { %v3993_v57 = vpop.eup %2106  ;;  %v1533_v6 = vadd.f32 %v1228_v51, %v1227_v33  ;;  %v1136_v56 = vmul.f32 %v2197_v2, %v3263_v12  ;;  %v3999_v18 = vmul.f32 %v2198_v47, %v4906_v31  ;;  %v4925_v45 = vld [vmem:[#allocation18_spill] sm:$0xff]  ;;  %v1235_v23 = vmul.f32 %v3947_v38, %v4927_v11  ;;  %v4928_v14 = vld [vmem:[#allocation37_spill] sm:$0xff] }
 0x11d   :  { %v1222_v22 = vmul.f32 %v3993_v57, %v4925_v45  ;;  %v1524_v34 = vadd.f32 %v1523_v55, %v1221_v24  ;;  %v4926_v36 = vld [vmem:[#allocation10_spill] sm:$0xff]  ;;  %v1529_v32 = vadd.f32 %v1528_v26, %v1225_v13  ;;  %v1236_v33 = vmul.f32 %v3957_v25, %v4928_v14  ;;  %v4931_v45 = vld [vmem:[#allocation28_spill] sm:$0xff] }
 0x11e   :  { %v1226_v43 = vmul.f32 %v3993_v57, %v4926_v36  ;;  %v4929_v51 = vld [vmem:[#allocation54_spill] sm:$0xff]  ;;  %v1240_v47 = vmul.f32 %v3957_v25, %v4930_v50  ;;  %v1233_v55 = vmul.f32 %v3980_v52, %v4931_v45  ;;  %v1538_v24 = vadd.f32 %v1232_v28, %v1231_v35  ;;  %v4015_v36 = vpop.xlane.xlu1 %1296  ;;  %v2200_v14 = vld [vmem:[#allocation2 + $0x380] sm:$0xff] }
 0x11f   :  { %v1239_v2 = vmul.f32 %v3947_v38, %v4929_v51  ;;  %v1525_v8 = vadd.f32 %v1524_v34, %v1222_v22  ;;  %4932 = vst [vmem:[#allocation77_spill] sm:$0xff] %v4015_v36  ;;  %v4017_v26 = vadd.f32 %v1489_v15, %v1194_v58  ;;  %v2199_v11 = vld [vmem:[#allocation2 + $0x378] sm:$0xff]  ;;  %v1139_v51 = vmul.f32 %v2200_v14, %v3244_v0  ;;  %v4024_v22 = vpop.xlane.xlu0 %1291  ;;  %v4936_v15 = vld [vmem:[#allocation40_spill] sm:$0xff] }
 0x120   :  { %v1530_v7 = vadd.f32 %v1529_v32, %v1226_v43  ;;  %v4020_v13 = vmul.f32 %v2199_v11, %v4907_v4  ;;  %v1140_v50 = vmul.f32 %v2201_v42, %v3263_v12  ;;  %4934 = vst [vmem:[#allocation75_spill] sm:$0xff] %v4024_v22  ;;  %v4935_v32 = vld [vmem:[#allocation19_spill] sm:$0xff]  ;;  %v1534_v35 = vadd.f32 %v1533_v6, %v1229_v9  ;;  %v2202_v11 = vld [vmem:[#allocation2 + $0x390] sm:$0xff] }
 0x121   :  { %4933 = vst [vmem:[#allocation74_spill] sm:$0xff] %v4017_v26  ;;  %1526 = vadd.xlane.f32.xlu1 %v1525_v8  ;;  %v1230_v28 = vmul.f32 %v3993_v57, %v4935_v32  ;;  %v1494_v58 = vadd.f32 %v1493_v29, %v1197_v1  ;;  %v1237_v34 = vmul.f32 %v3980_v52, %v4936_v15  ;;  %v4937_v26 = vld [vmem:[#allocation43_spill] sm:$0xff]  ;;  %v4938_v22 = vld [vmem:[#allocation50_spill] sm:$0xff]  ;;  %v4940_v1 = vld [vmem:[#allocation21_spill] sm:$0xff]  ;;  %vm1706_vm4 = vcmask 392512  }
 0x122   :  { %1531 = vadd.xlane.f32.xlu0 %v1530_v7  ;;  %v1543_v43 = vadd.f32 %v1236_v33, %v1235_v23  ;;  %v1418_v45 = vadd.f32 %v1136_v56, %v1135_v17  ;;  %v1141_v14 = vmul.f32 %v2202_v11, %v4906_v31  ;;  %v1234_v42 = vmul.f32 %v3993_v57, %v4937_v26  ;;  %v2203_v6 = vld [vmem:[#allocation2 + $0x398] sm:$0xff]  ;;  %v4941_v33 = vld [vmem:[#allocation29_spill] sm:$0xff] }
 0x123   :  { %v1539_v36 = vadd.f32 %v1538_v24, %v1233_v55  ;;  %v1241_v7 = vmul.f32 %v3980_v52, %v4938_v22  ;;  %v1548_v8 = vadd.f32 %v1240_v47, %v1239_v2  ;;  %v1243_v9 = vmul.f32 %v3947_v38, %v4939_v41  ;;  %v4942_v2 = vld [vmem:[#allocation23_spill] sm:$0xff]  ;;  %v4048_v41 = vpop.xlane.xlu1 %1301 }
 0x124   :  { %v1244_v29 = vmul.f32 %v3957_v25, %v4940_v1  ;;  %v4040_v23 = vmul.f32 %v2203_v6, %v4907_v4  ;;  %v1423_v17 = vadd.f32 %v1140_v50, %v1139_v51  ;;  %v1535_v56 = vadd.f32 %v1534_v35, %v1230_v28  ;;  %4943 = vst [vmem:[#allocation69_spill] sm:$0xff] %v4048_v41  ;;  %v4944_v24 = vld [vmem:[#allocation51_spill] sm:$0xff]  ;;  %v2205_v51 = vld [vmem:[#allocation2 + $0x568] sm:$0xff]  ;;  %v2206_v50 = vld [vmem:[#allocation2 + $0x570] sm:$0xff]  ;;  %v4057_v28 = vpop.xlane.xlu0 %1306 }
 0x125   :  { %1386 = vadd.xlane.f32.xlu1 %v3839_v37  ;;  %v1247_v55 = vmul.f32 %v3947_v38, %v4941_v33  ;;  %v1248_v47 = vmul.f32 %v3957_v25, %v4942_v2  ;;  %v1238_v26 = vmul.f32 %v3993_v57, %v4944_v24  ;;  %v2204_v22 = vld [vmem:[#allocation2 + $0x560] sm:$0xff]  ;;  %v1200_v37 = vmul.f32 %v2205_v51, %v3742_v60  ;;  %v4947_v33 = vld [vmem:[#allocation30_spill] sm:$0xff] }
 0x126   :  { %1461 = vadd.xlane.f32.xlu0 %v3844_v53  ;;  %v1199_v32 = vmul.f32 %v2204_v22, %v3733_v48  ;;  %v4055_v53 = vmul.f32 %v2206_v50, %v3755_v19  ;;  %4945 = vst [vmem:[#allocation78_spill] sm:$0xff] %v4057_v28  ;;  %v1540_v35 = vadd.f32 %v1539_v36, %v1234_v42  ;;  %v4946_v11 = vld [vmem:[#allocation59_spill] sm:$0xff]  ;;  %v4948_v22 = vld [vmem:[#allocation58_spill] sm:$0xff]  ;;  %v4949_v51 = vld [vmem:[#allocation44_spill] sm:$0xff]  ;;  %vm1713_vm5 = vcmask 458112  }
 0x127   :  { %v1544_v15 = vadd.f32 %v1543_v43, %v1237_v34  ;;  %v1242_v1 = vmul.f32 %v3993_v57, %v4946_v11  ;;  %v1549_v6 = vadd.f32 %v1548_v8, %v1241_v7  ;;  %v1245_v2 = vmul.f32 %v3980_v52, %v4947_v33  ;;  %v4950_v50 = vld [vmem:[#allocation32_spill] sm:$0xff]  ;;  %v4951_v43 = vld [vmem:[#allocation41_spill] sm:$0xff] }
 0x128   :  { %v1553_v24 = vadd.f32 %v1244_v29, %v1243_v9  ;;  %v1259_v41 = vmul.f32 %v3947_v38, %v4948_v22  ;;  %v1260_v27 = vmul.f32 %v3957_v25, %v4949_v51  ;;  %v1249_v36 = vmul.f32 %v3980_v52, %v4950_v50  ;;  %v4952_v7 = vld [vmem:[#allocation36_spill] sm:$0xff]  ;;  %v4953_v9 = vld [vmem:[#allocation33_spill] sm:$0xff]  ;;  %v4955_v51 = vld [vmem:[#allocation42_spill] sm:$0xff] }
 0x129   :  { %1536 = vadd.xlane.f32.xlu1 %v1535_v56  ;;  %v1558_v34 = vadd.f32 %v1248_v47, %v1247_v55  ;;  %v1261_v42 = vmul.f32 %v3980_v52, %v4951_v43  ;;  %v1251_v8 = vmul.f32 %v3947_v38, %v4952_v7  ;;  %v1252_v29 = vmul.f32 %v3957_v25, %v4953_v9  ;;  %v4954_v22 = vld [vmem:[#allocation24_spill] sm:$0xff]  ;;  %v4956_v47 = vld [vmem:[#allocation39_spill] sm:$0xff]  ;;  %v4086_v43 = vpop.xlane.xlu1 %1311  ;;  %v4958_v9 = vld [vmem:[#allocation26_spill] sm:$0xff] }
 0x12a   :  { %1391 = vadd.xlane.f32.xlu0 %v3846_v10  ;;  %v1262_v11 = vmul.f32 %v3993_v57, %v3567_v49  ;;  %v1573_v33 = vadd.f32 %v1260_v27, %v1259_v41  ;;  %v1545_v56 = vadd.f32 %v1544_v15, %v1238_v26  ;;  %v4080_v10 = vmul.f32 %v3993_v57, %v4954_v22  ;;  %v4959_v49 = vld [vmem:[#allocation62_spill] sm:$0xff]  ;;  %v4096_v26 = vpop.xlane.xlu0 %1316  ;;  %v4960_v22 = vld [vmem:[#allocation35_spill] sm:$0xff] }
 0x12b   :  { %v1255_v55 = vmul.f32 %v3947_v38, %v4955_v51  ;;  %v1256_v50 = vmul.f32 %v3957_v25, %v4956_v47  ;;  %4957 = vst [vmem:[#allocation67_spill] sm:$0xff] %v4086_v43  ;;  %v4088_v7 = vadd.f32 %v1549_v6, %v1242_v1  ;;  %v4092_v28 = vmul.f32 %v3993_v57, %v4958_v9 }
 0x12c   :  { %v1253_v27 = vmul.f32 %v3980_v52, %v4959_v49  ;;  %v1574_v41 = vadd.f32 %v1573_v33, %v1261_v42  ;;  %v1554_v15 = vadd.f32 %v1553_v24, %v1245_v2  ;;  %v4101_v51 = vmul.f32 %v3993_v57, %v4960_v22  ;;  %v4961_v33 = vld [vmem:[#allocation49_spill] sm:$0xff] }
 0x12d   :  { %1466 = vadd.xlane.f32.xlu1 %v3854_v59  ;;  %v4104_v1 = vadd.f32 %v1494_v58, %v3978_v40  ;;  %v1559_v6 = vadd.f32 %v1558_v34, %v1249_v36  ;;  %v1563_v47 = vadd.f32 %v1252_v29, %v1251_v8  ;;  %v1419_v9 = vadd.f32 %v1418_v45, %v3999_v18  ;;  %v2208_v24 = vld [vmem:[#allocation2 + $0x3a8] sm:$0xff]  ;;  %v4123_v29 = vpop.xlane.xlu1 %1321 }
 0x12e   :  { %1541 = vadd.xlane.f32.xlu0 %v1540_v35  ;;  %v4107_v43 = vadd.f32 %v1574_v41, %v1262_v11  ;;  %v1424_v42 = vadd.f32 %v1423_v17, %v1141_v14  ;;  %v1257_v49 = vmul.f32 %v3980_v52, %v4961_v33  ;;  %v1568_v59 = vadd.f32 %v1256_v50, %v1255_v55  ;;  %v2207_v35 = vld [vmem:[#allocation2 + $0x3a0] sm:$0xff]  ;;  %v2210_v36 = vld [vmem:[#allocation2 + $0x588] sm:$0xff]  ;;  %v2211_v55 = vld [vmem:[#allocation2 + $0x3b0] sm:$0xff] }
 0x12f   :  { %v1143_v2 = vmul.f32 %v2207_v35, %v3244_v0  ;;  %v1144_v22 = vmul.f32 %v2208_v24, %v3263_v12  ;;  %v1263_v40 = vmul.f32 %v3947_v38, %v3582_v39  ;;  %v1264_v58 = vmul.f32 %v3957_v25, %v3584_v20  ;;  %v2209_v14 = vld [vmem:[#allocation2 + $0x580] sm:$0xff]  ;;  %v2213_v24 = vld [vmem:[#allocation2 + $0x590] sm:$0xff] }
 0x130   :  { %v1265_v18 = vmul.f32 %v3980_v52, %v3637_v16  ;;  %v1498_v45 = vadd.f32 %v1200_v37, %v1199_v32  ;;  %v1203_v17 = vmul.f32 %v2209_v14, %v3733_v48  ;;  %v1204_v34 = vmul.f32 %v2210_v36, %v3742_v60  ;;  %v4962_v37 = vld [vmem:[#allocation55_spill] sm:$0xff] }
 0x131   :  { %1396 = vadd.xlane.f32.xlu1 %v3928_v46  ;;  %v1667_v8 = vlaneseq  ;;  %v1266_v20 = vmul.f32 %v3993_v57, %v3639_v3  ;;  %v1578_v39 = vadd.f32 %v1264_v58, %v1263_v40  ;;  %v1267_v16 = vmul.f32 %v3947_v38, %v3645_v30  ;;  %v4154_v36 = vpop.xlane.xlu1 %1331 }
 0x132   :  { %1471 = vadd.xlane.f32.xlu0 %v3935_v62  ;;  %v1268_v46 = vmul.f32 %v3957_v25, %v3647_v61  ;;  %v4131_v62 = vpop.xlane.xlu0 %1326  ;;  %v1564_v32 = vadd.f32 %v1563_v47, %v1253_v27  ;;  %v1258_v11 = vmul.f32 %v3993_v57, %v4962_v37  ;;  %v1145_v50 = vmul.f32 %v2211_v55, %v4906_v31  ;;  %v2212_v27 = vld [vmem:[#allocation2 + $0x578] sm:$0xff]  ;;  %v4964_v37 = vld [vmem:[#allocation52_spill] sm:$0xff] }
 0x133   :  { %v1269_v41 = vmul.f32 %v3980_v52, %v3649_v63  ;;  %v1428_v3 = vadd.f32 %v1144_v22, %v1143_v2  ;;  %v1579_v33 = vadd.f32 %v1578_v39, %v1265_v18  ;;  %v1270_v30 = vmul.f32 %v3993_v57, %v3654_v44  ;;  %v2219_v55 = vld [vmem:[#allocation2 + $0x5a0] sm:$0xff] }
 0x134   :  { %v1583_v35 = vadd.f32 %v1268_v46, %v1267_v16  ;;  %v1569_v61 = vadd.f32 %v1568_v59, %v1257_v49  ;;  %v1202_v47 = vmul.f32 %v2212_v27, %v3761_v5  ;;  %v1205_v40 = vmul.f32 %v2213_v24, %v3755_v19  ;;  %v2215_v59 = vld [vmem:[#allocation2 + $0x3c8] sm:$0xff] }
 0x135   :  { %1546 = vadd.xlane.f32.xlu1 %v1545_v56  ;;  %v4143_v58 = vand.u32 127, %v1667_v8  ;;  %v1499_v63 = vadd.f32 %v1498_v45, %v4055_v53  ;;  %v1503_v2 = vadd.f32 %v1204_v34, %v1203_v17  ;;  %v4146_v22 = vadd.f32 %v1579_v33, %v1266_v20  ;;  %v2216_v53 = vld [vmem:[#allocation2 + $0x3b8] sm:$0xff]  ;;  %v4965_v33 = vld [vmem:[#allocation57_spill] sm:$0xff] }
 0x136   :  { %1401 = vadd.xlane.f32.xlu0 %v3943_v54  ;;  %v1584_v18 = vadd.f32 %v1583_v35, %v1269_v41  ;;  %v1555_v44 = vadd.f32 %v1554_v15, %v4080_v10  ;;  %v4150_v56 = vadd.f32 %v1419_v9, %v4020_v13  ;;  %v2214_v54 = vld [vmem:[#allocation2 + $0x3c0] sm:$0xff]  ;;  %v1148_v14 = vmul.f32 %v2215_v59, %v3263_v12  ;;  %v4162_v10 = vpop.xlane.xlu0 %1336  ;;  %v2220_v41 = vld [vmem:[#allocation2 + $0x5a8] sm:$0xff]  ;;  %v4966_v35 = vld [vmem:[#allocation70_spill] sm:$0xff] }
 0x137   :  { %v1147_v49 = vmul.f32 %v2214_v54, %v3244_v0  ;;  %v4157_v39 = vadd.f32 %v1559_v6, %v4092_v28  ;;  %v1146_v45 = vmul.f32 %v2216_v53, %v4907_v4  ;;  %v1429_v17 = vadd.f32 %v1428_v3, %v1145_v50  ;;  %v2217_v28 = vld [vmem:[#allocation2 + $0x598] sm:$0xff]  ;;  %v4968_v27 = vld [vmem:[#allocation53_spill] sm:$0xff]  ;;  %v4970_v59 = vld [vmem:[#allocation60_spill] sm:$0xff] }
 0x138   :  { %v4160_v34 = vadd.f32 %v1584_v18, %v1270_v30  ;;  %v4167_v13 = vadd.f32 %v1564_v32, %v4101_v51  ;;  %v4170_v15 = vadd.f32 %v1424_v42, %v4040_v23  ;;  %v4173_v6 = vmul.f32 %v2217_v28, %v3761_v5  ;;  %v4963_v42 = vld [vmem:[#allocation45_spill] sm:$0xff]  ;;  %v4210_v18 = vpop.xlane.xlu1 %1341  ;;  %v4971_v53 = vld [vmem:[#allocation56_spill] sm:$0xff] }
 0x139   :  { %1476 = vadd.xlane.f32.xlu1 %v3939_v21  ;;  %v4175_v9 = vshrl.u32 %v1667_v8, 7  ;;  %v4177_v20 = vadd.f32 %v1569_v61, %v1258_v11  ;;  %v4179_v16 = vadd.f32 %v1499_v63, %v1202_v47  ;;  %v4181_v46 = vadd.f32 %v1503_v2, %v1205_v40  ;;  %v4967_v61 = vld [vmem:[#allocation73_spill] sm:$0xff]  ;;  %v4969_v40 = vld [vmem:[#allocation48_spill] sm:$0xff] }
 0x13a   :  { %1551 = vadd.xlane.f32.xlu0 %v4088_v7  ;;  %v1680_v21 = vadd.s32 4294967280, %v4143_v58  ;;  %v2218_v7 = vld [vmem:[#allocation2 + $0x3d0] sm:$0xff]  ;;  %v4187_v23 = vadd.f32 %v1148_v14, %v1147_v49  ;;  %v1271_v32 = vmul.f32 %v3947_v38, %v4963_v42  ;;  %v1272_v8 = vmul.f32 %v3957_v25, %v4964_v37  ;;  %v4220_v28 = vpop.xlane.xlu0 %1346  ;;  %v4972_v42 = vld [vmem:[#allocation64_spill] sm:$0xff] }
 0x13b   :  { %v4185_v51 = vmul.f32 %v2218_v7, %v4906_v31  ;;  %v4193_v11 = vadd.f32 %v1429_v17, %v1146_v45  ;;  %v4196_v50 = vmul.f32 %v2219_v55, %v3733_v48  ;;  %v4199_v3 = vmul.f32 %v2220_v41, %v3742_v60  ;;  %v2221_v54 = vld [vmem:[#allocation2 + $0x5b0] sm:$0xff] }
 0x13c   :  { %v1273_v30 = vmul.f32 %v3980_v52, %v4965_v33  ;;  %v1274_v47 = vmul.f32 %v3993_v57, %v4968_v27  ;;  %v1588_v24 = vadd.f32 %v1272_v8, %v1271_v32  ;;  %v1275_v63 = vmul.f32 %v3947_v38, %v4969_v40  ;;  %v4973_v37 = vld [vmem:[#allocation61_spill] sm:$0xff]  ;;  %v4976_v27 = vld [vmem:[#allocation76_spill] sm:$0xff] }
 0x13d   :  { %1406 = vadd.xlane.f32.xlu1 %v4966_v35  ;;  %v1687_v2 = vadd.s32 4294967272, %v4143_v58  ;;  %v4213_v49 = vmul.f32 %v2221_v54, %v3755_v19  ;;  %v1276_v14 = vmul.f32 %v3957_v25, %v4970_v59  ;;  %v1277_v45 = vmul.f32 %v3980_v52, %v4971_v53  ;;  %v4974_v55 = vld [vmem:[#allocation65_spill] sm:$0xff]  ;;  %v4975_v35 = vld [vmem:[#allocation63_spill] sm:$0xff]  ;;  %v4977_v54 = vld [vmem:[#allocation68_spill] sm:$0xff]  ;;  %v4254_v53 = vpop.xlane.xlu1 %1351 }
 0x13e   :  { %1481 = vadd.xlane.f32.xlu0 %v4967_v61  ;;  %v1673_v17 = vadd.s32 4294967288, %v4143_v58  ;;  %v1589_v7 = vadd.f32 %v1588_v24, %v1273_v30  ;;  %v1279_v32 = vmul.f32 %v3947_v38, %v4972_v42  ;;  %v1280_v8 = vmul.f32 %v3957_v25, %v4973_v37 }
 0x13f   :  { %v1278_v41 = vmul.f32 %v3993_v57, %v4974_v55  ;;  %v1593_v33 = vadd.f32 %v1276_v14, %v1275_v63  ;;  %v1281_v61 = vmul.f32 %v3980_v52, %v4975_v35  ;;  %v1282_v40 = vmul.f32 %v3993_v57, %v4976_v27  ;;  %v4982_v55 = vld [vmem:[#allocation71_spill] sm:$0xff] }
 0x140   :  { %v4233_v30 = vadd.f32 %v1589_v7, %v1274_v47  ;;  %v1598_v38 = vadd.f32 %v1280_v8, %v1279_v32  ;;  %v4236_v24 = vsub.s32 %v1680_v21, %v4175_v9  ;;  %v1701_v25 = vadd.s32 4294967256, %v4143_v58  ;;  %v4978_v47 = vld [vmem:[#allocation77_spill] sm:$0xff]  ;;  %v4979_v7 = vld [vmem:[#allocation66_spill] sm:$0xff]  ;;  %v4264_v8 = vpop.xlane.xlu0 %1356 }
 0x141   :  { %1556 = vadd.xlane.f32.xlu1 %v1555_v44  ;;  %v1594_v59 = vadd.f32 %v1593_v33, %v1277_v45  ;;  %v4241_v63 = vsub.s32 %v4143_v58, %v4175_v9  ;;  %v4244_v52 = vsub.s32 %v1687_v2, %v4175_v9  ;;  %v4247_v57 = vsub.s32 %v1673_v17, %v4175_v9  ;;  %v4980_v2 = vld [vmem:[#allocation69_spill] sm:$0xff]  ;;  %v4981_v17 = vld [vmem:[#allocation75_spill] sm:$0xff] }
 0x142   :  { %1411 = vadd.xlane.f32.xlu0 %v4977_v54  ;;  %v1599_v44 = vadd.f32 %v1598_v38, %v1281_v61  ;;  %v1684_v14 = vrot.slane %v4978_v47, %v4236_v24  ;;  %v4252_v21 = vsub.s32 %v1701_v25, %v4175_v9  ;;  %v1694_v61 = vadd.s32 4294967264, %v4143_v58 }
 0x143   :  { %v4256_v45 = vadd.f32 %v1594_v59, %v1278_v41  ;;  %v1672_v42 = vrot.slane %v4979_v7, %v4241_v63  ;;  %v1691_v32 = vrot.slane %v4980_v2, %v4244_v52  ;;  %v1677_v37 = vrot.slane %v4981_v17, %v4247_v57  ;;  %v4983_v41 = vld [vmem:[#allocation67_spill] sm:$0xff]  ;;  %v4984_v7 = vld [vmem:[#allocation72_spill] sm:$0xff] }
 0x144   :  { %v4268_v33 = vadd.f32 %v1599_v44, %v1282_v40  ;;  %v1705_v35 = vrot.slane %v4983_v41, %v4252_v21  ;;  %v1715_v54 = vadd.s32 4294967240, %v4143_v58  ;;  %v1708_v38 = vadd.s32 4294967248, %v4143_v58 }
 0x145   :  { %1486 = vadd.xlane.f32.xlu1 %v4982_v55  ;;  %v1679_v27 = vsel %vm1678_vm0, %v1677_v37, %v1672_v42  ;;  %v4278_v59 = vsub.s32 %v1694_v61, %v4175_v9  ;;  %v4985_v42 = vld [vmem:[#allocation74_spill] sm:$0xff]  ;;  %vm1720_vm6 = vcmask 523712   ;;  %v4296_v37 = vpop.xlane.xlu1 %1361  ;;  %vm1727_vm7 = vcmask 589312  }
 0x146   :  { %1561 = vadd.xlane.f32.xlu0 %v4157_v39  ;;  %v1686_v25 = vsel %vm1685_vm1, %v1684_v14, %v1679_v27  ;;  %v1729_v39 = vadd.s32 4294967224, %v4143_v58  ;;  %v4283_v44 = vsub.s32 %v1715_v54, %v4175_v9  ;;  %v4286_v47 = vsub.s32 %v1708_v38, %v4175_v9  ;;  %v4986_v14 = vld [vmem:[#allocation78_spill] sm:$0xff]  ;;  %v1367_v27 = vpop.xlane.xlu0 %1366 }
 0x147   :  { %v1693_v40 = vsel %vm1692_vm2, %v1691_v32, %v1686_v25  ;;  %v1698_v2 = vrot.slane %v4986_v14, %v4278_v59  ;;  %v1722_v32 = vadd.s32 4294967232, %v4143_v58  ;;  %v1743_v61 = vadd.s32 4294967208, %v4143_v58 }
 0x148   :  { %v4293_v17 = vsub.s32 %v1729_v39, %v4175_v9  ;;  %v1719_v55 = vrot.slane %v4123_v29, %v4283_v44  ;;  %v1712_v41 = vrot.slane %v4096_v26, %v4286_v47  ;;  %vm1734_vm8 = vcmask 654912  }
 0x149   :  { %1416 = vadd.xlane.f32.xlu1 %v4984_v7  ;;  %v1700_v54 = vsel %vm1699_vm3, %v1698_v2, %v1693_v40  ;;  %v4305_v38 = vsub.s32 %v1722_v32, %v4175_v9  ;;  %v1736_v25 = vadd.s32 4294967216, %v4143_v58  ;;  %v4312_v7 = vsub.s32 %v1743_v61, %v4175_v9 }
 0x14a   :  { %1491 = vadd.xlane.f32.xlu0 %v4985_v42  ;;  %v1707_v39 = vsel %vm1706_vm4, %v1705_v35, %v1700_v54  ;;  %v1733_v29 = vrot.slane %v4154_v36, %v4293_v17  ;;  %v1757_v26 = vadd.s32 4294967192, %v4143_v58  ;;  %vm1741_vm9 = vcmask 720512  }
 0x14b   :  { %v1714_v40 = vsel %vm1713_vm5, %v1712_v41, %v1707_v39  ;;  %v1726_v42 = vrot.slane %v4131_v62, %v4305_v38  ;;  %v4321_v14 = vsub.s32 %v1736_v25, %v4175_v9  ;;  %v1747_v35 = vrot.slane %v4210_v18, %v4312_v7  ;;  %v1372_v41 = vpop.xlane.xlu1 %1371  ;;  %v1377_v54 = vpop.xlane.xlu0 %1376 }
 0x14c   :  { %v1721_v36 = vsel %vm1720_vm6, %v1719_v55, %v1714_v40  ;;  %v4327_v2 = vsub.s32 %v1757_v26, %v4175_v9  ;;  %vm1748_vm10 = vcmask 786112   ;;  %v1771_v62 = vadd.s32 4294967176, %v4143_v58  ;;  %v2222_v26 = vld [vmem:[#allocation2 + $0x3e0] sm:$0xff] }
 0x14d   :  { %1566 = vadd.xlane.f32.xlu1 %v4167_v13  ;;  %v1750_v13 = vadd.s32 4294967200, %v4143_v58  ;;  %v1740_v32 = vrot.slane %v4162_v10, %v4321_v14  ;;  %v1508_v55 = vadd.f32 %v4199_v3, %v4196_v50  ;;  %vm1755_vm11 = vcmask 851712  }
 0x14e   :  { %1421 = vadd.xlane.f32.xlu0 %v4150_v56  ;;  %v1728_v56 = vsel %vm1727_vm7, %v1726_v42, %v1721_v36  ;;  %v1761_v25 = vrot.slane %v4254_v53, %v4327_v2  ;;  %v4346_v39 = vsub.s32 %v1771_v62, %v4175_v9  ;;  %v1764_v50 = vadd.s32 4294967184, %v4143_v58  ;;  %v2223_v36 = vld [vmem:[#allocation2 + $0x3e8] sm:$0xff] }
 0x14f   :  { %v1735_v61 = vsel %vm1734_vm8, %v1733_v29, %v1728_v56  ;;  %v4338_v18 = vsub.s32 %v1750_v13, %v4175_v9  ;;  %vm1762_vm12 = vcmask 917312   ;;  %v1781_v53 = vrot.slane %v1367_v27, %v4241_v63 }
 0x150   :  { %v1742_v10 = vsel %vm1741_vm9, %v1740_v32, %v1735_v61  ;;  %v4355_v40 = vsub.s32 %v1764_v50, %v4175_v9  ;;  %v1790_v42 = vrot.slane %v1377_v54, %v4236_v24  ;;  %v1152_v58 = vmul.f32 %v2223_v36, %v3263_v12  ;;  %v2225_v32 = vld [vmem:[#allocation2 + $0x5b8] sm:$0xff]  ;;  %v2227_v61 = vld [vmem:[#allocation2 + $0x5c8] sm:$0xff]  ;;  %v2229_v50 = vld [vmem:[#allocation2 + $0x5d0] sm:$0xff] }
 0x151   :  { %1496 = vadd.xlane.f32.xlu1 %v4104_v1  ;;  %v1749_v3 = vsel %vm1748_vm10, %v1747_v35, %v1742_v10  ;;  %v1754_v29 = vrot.slane %v4220_v28, %v4338_v18  ;;  %v1785_v1 = vrot.slane %v1372_v41, %v4247_v57  ;;  %v1775_v28 = vrot.slane %v4296_v37, %v4346_v39  ;;  %v2224_v37 = vld [vmem:[#allocation2 + $0x3d8] sm:$0xff]  ;;  %v2234_v36 = vld [vmem:[#allocation2 + $0x5f0] sm:$0xff] }
 0x152   :  { %1571 = vadd.xlane.f32.xlu0 %v4177_v20  ;;  %v1151_v20 = vmul.f32 %v2222_v26, %v3244_v0  ;;  %vm1769_vm13 = vcmask 982912   ;;  %vm1776_vm14 = vcmask 1048512   ;;  %v1768_v9 = vrot.slane %v4264_v8, %v4355_v40  ;;  %v2226_v8 = vld [vmem:[#allocation2 + $0x5c0] sm:$0xff] }
 0x153   :  { %v1756_v35 = vsel %vm1755_vm11, %v1754_v29, %v1749_v3  ;;  %v1786_v27 = vsel %vm1678_vm0, %v1785_v1, %v1781_v53  ;;  %v1505_v13 = vadd.f32 %v4181_v46, %v4173_v6  ;;  %v1150_v56 = vmul.f32 %v2224_v37, %v4907_v4  ;;  %v2228_v46 = vld [vmem:[#allocation2 + $0x3f0] sm:$0xff]  ;;  %v2230_v1 = vld [vmem:[#allocation2 + $0x3f8] sm:$0xff]  ;;  %v2231_v53 = vld [vmem:[#allocation2 + $0x5e0] sm:$0xff] }
 0x154   :  { %v1763_v0 = vsel %vm1762_vm12, %v1761_v25, %v1756_v35  ;;  %v4370_v12 = vsel %vm1685_vm1, %v1790_v42, %v1786_v27  ;;  %v1210_v62 = vmul.f32 %v2225_v32, %v3761_v5  ;;  %v1211_v41 = vmul.f32 %v2226_v8, %v3733_v48 }
 0x155   :  { %1426 = vadd.xlane.f32.xlu1 %v4170_v15  ;;  %v1434_v15 = vadd.f32 %v4187_v23, %v4185_v51  ;;  %v1212_v54 = vmul.f32 %v2227_v61, %v3742_v60  ;;  %v1509_v6 = vadd.f32 %v1508_v55, %v4213_v49  ;;  %v1153_v51 = vmul.f32 %v2228_v46, %v4906_v31  ;;  %v2232_v49 = vld [vmem:[#allocation2 + $0x5e8] sm:$0xff]  ;;  %v2233_v55 = vld [vmem:[#allocation2 + $0x5d8] sm:$0xff] }
 0x156   :  { %1501 = vadd.xlane.f32.xlu0 %v4179_v16  ;;  %v1770_v16 = vsel %vm1769_vm13, %v1768_v9, %v1763_v0  ;;  %v1438_v23 = vadd.f32 %v1152_v58, %v1151_v20  ;;  %v1213_v3 = vmul.f32 %v2229_v50, %v3755_v19  ;;  %v1154_v26 = vmul.f32 %v2230_v1, %v4907_v4 }
 0x157   :  { %v4382_v10 = vsel %vm1776_vm14, %v1775_v28, %v1770_v16  ;;  %v1435_v25 = vadd.f32 %v1434_v15, %v1150_v56  ;;  %v1513_v29 = vadd.f32 %v1212_v54, %v1211_v41  ;;  %v1215_v42 = vmul.f32 %v2231_v53, %v3733_v48 }
 0x158   :  { %v1216_v31 = vmul.f32 %v2232_v49, %v3742_v60  ;;  %v1214_v20 = vmul.f32 %v2233_v55, %v3761_v5  ;;  %v1217_v58 = vmul.f32 %v2234_v36, %v3755_v19  ;;  %vm2015_vm15 = vcmask 1041409  }
 0x159   :  { %1576 = vadd.xlane.f32.xlu1 %v4107_v43  ;;  %v1510_v43 = vadd.f32 %v1509_v6, %v1210_v62  ;;  %v1514_v4 = vadd.f32 %v1513_v29, %v1213_v3 }
 0x15a   :  { %1431 = vadd.xlane.f32.xlu0 %v4193_v11  ;;  %v1439_v11 = vadd.f32 %v1438_v23, %v1153_v51  ;;  %v1518_v28 = vadd.f32 %v1216_v31, %v1215_v42 }
 0x15b   :  { %v1515_v48 = vadd.f32 %v1514_v4, %v1214_v20 }
 0x15c   :  { %v1440_v35 = vadd.f32 %v1439_v11, %v1154_v26  ;;  %v1519_v9 = vadd.f32 %v1518_v28, %v1217_v58 }
 0x15d   :  { %1506 = vadd.xlane.f32.xlu1 %v1505_v13 }
 0x15e   :  { %1581 = vadd.xlane.f32.xlu0 %v4146_v22  ;;  %v2235_v22 = vld [vmem:[#allocation2 + $0x5f8] sm:$0xff] }
 0x15f   :  { %v1218_v0 = vmul.f32 %v2235_v22, %v3761_v5  ;;  %v2287_v5 = vmov 0.0  }
 0x160   :  { %33 = vst [vmem:[#allocation5] sm:$0xf] %v2287_v5 }
 0x161   :  { %1436 = vadd.xlane.f32.xlu1 %v1435_v25  ;;  %v1520_v60 = vadd.f32 %v1519_v9, %v1218_v0 }
 0x162   :  { %1511 = vadd.xlane.f32.xlu0 %v1510_v43 }
 0x165   :  { %1586 = vadd.xlane.f32.xlu1 %v4160_v34 }
 0x166   :  { %1441 = vadd.xlane.f32.xlu0 %v1440_v35 }
 0x169   :  { %1516 = vadd.xlane.f32.xlu1 %v1515_v48 }
 0x16a   :  { %1591 = vadd.xlane.f32.xlu0 %v4233_v30 }
 0x16d   :  { %1521 = vadd.xlane.f32.xlu1 %v1520_v60 }
 0x16e   :  { %1596 = vadd.xlane.f32.xlu0 %v4256_v45 }
 0x171   :  { %1601 = vadd.xlane.f32.xlu1 %v4268_v33 }
 0x178   :  { %v1447_v19 = vpop.xlane.xlu1 %1446 }
 0x179   :  { %v1452_v27 = vpop.xlane.xlu0 %1451  ;;  %v1860_v13 = vrot.slane %v1447_v19, %v4241_v63 }
 0x17a   :  { %v1864_v34 = vrot.slane %v1452_v27, %v4247_v57 }
 0x17c   :  { %v1865_v37 = vsel %vm1678_vm0, %v1864_v34, %v1860_v13  ;;  %v1382_v56 = vpop.xlane.xlu1 %1381 }
 0x17d   :  { %v1795_v15 = vrot.slane %v1382_v56, %v4244_v52  ;;  %v1457_v16 = vpop.xlane.xlu0 %1456 }
 0x17e   :  { %v1869_v30 = vrot.slane %v1457_v16, %v4236_v24 }
 0x17f   :  { %v1796_v45 = vsel %vm1692_vm2, %v1795_v15, %v4370_v12 }
 0x180   :  { %v1870_v33 = vsel %vm1685_vm1, %v1869_v30, %v1865_v37 }
 0x1ae   :  { %v1527_v32 = vpop.xlane.xlu1 %1526 }
 0x1af   :  { %v1532_v62 = vpop.xlane.xlu0 %1531  ;;  %v1939_v9 = vrot.slane %v1527_v32, %v4241_v63 }
 0x1b0   :  { %v1943_v28 = vrot.slane %v1532_v62, %v4247_v57 }
 0x1b2   :  { %v1387_v8 = vpop.xlane.xlu1 %1386  ;;  %v1944_v34 = vsel %vm1678_vm0, %v1943_v28, %v1939_v9  ;;  %vm2017_vm0 = vcmask 1042434  }
 0x1b3   :  { %v1462_v41 = vpop.xlane.xlu0 %1461  ;;  %v1800_v35 = vrot.slane %v1387_v8, %v4278_v59 }
 0x1b4   :  { %v1874_v60 = vrot.slane %v1462_v41, %v4244_v52 }
 0x1b5   :  { %v1801_v13 = vsel %vm1699_vm3, %v1800_v35, %v1796_v45 }
 0x1b6   :  { %v1537_v61 = vpop.xlane.xlu1 %1536  ;;  %v1875_v30 = vsel %vm1692_vm2, %v1874_v60, %v1870_v33 }
 0x1b7   :  { %v1392_v54 = vpop.xlane.xlu0 %1391  ;;  %v1948_v5 = vrot.slane %v1537_v61, %v4236_v24 }
 0x1b8   :  { %v1805_v0 = vrot.slane %v1392_v54, %v4252_v21 }
 0x1ba   :  { %v1467_v6 = vpop.xlane.xlu1 %1466  ;;  %v1806_v15 = vsel %vm1706_vm4, %v1805_v0, %v1801_v13 }
 0x1bb   :  { %v1542_v46 = vpop.xlane.xlu0 %1541  ;;  %v1879_v63 = vrot.slane %v1467_v6, %v4278_v59 }
 0x1bc   :  { %v1953_v32 = vrot.slane %v1542_v46, %v4244_v52 }
 0x1be   :  { %v1397_v51 = vpop.xlane.xlu1 %1396 }
 0x1bf   :  { %v4408_v23 = vpop.xlane.xlu0 %1471  ;;  %v1810_v19 = vrot.slane %v1397_v51, %v4286_v47 }
 0x1c0   :  { %v1884_v24 = vrot.slane %v4408_v23, %v4252_v21  ;;  %v1880_v23 = vsel %vm1699_vm3, %v1879_v63, %v1875_v30 }
 0x1c1   :  { %v1811_v45 = vsel %vm1713_vm5, %v1810_v19, %v1806_v15 }
 0x1c2   :  { %v1547_v25 = vpop.xlane.xlu1 %1546 }
 0x1c3   :  { %v1402_v50 = vpop.xlane.xlu0 %1401  ;;  %v1958_v8 = vrot.slane %v1547_v25, %v4278_v59  ;;  %v1949_v59 = vsel %vm1685_vm1, %v1948_v5, %v1944_v34  ;;  %vm2019_vm1 = vcmask 1043459  }
 0x1c4   :  { %v1815_v27 = vrot.slane %v1402_v50, %v4283_v44 }
 0x1c6   :  { %v4410_v3 = vpop.xlane.xlu1 %1476  ;;  %v1816_v41 = vsel %vm1720_vm6, %v1815_v27, %v1811_v45 }
 0x1c7   :  { %v4412_v29 = vpop.xlane.xlu0 %1551  ;;  %v1889_v54 = vrot.slane %v4410_v3, %v4286_v47 }
 0x1c8   :  { %v1963_v6 = vrot.slane %v4412_v29, %v4252_v21 }
 0x1ca   :  { %v1407_v12 = vpop.xlane.xlu1 %1406 }
 0x1cb   :  { %v4414_v1 = vpop.xlane.xlu0 %1481  ;;  %v1820_v37 = vrot.slane %v1407_v12, %v4305_v38  ;;  %v1954_v12 = vsel %vm1692_vm2, %v1953_v32, %v1949_v59 }
 0x1cc   :  { %v1894_v3 = vrot.slane %v4414_v1, %v4283_v44  ;;  %v1959_v29 = vsel %vm1699_vm3, %v1958_v8, %v1954_v12 }
 0x1cd   :  { %v1821_v33 = vsel %vm1727_vm7, %v1820_v37, %v1816_v41  ;;  %v1964_v28 = vsel %vm1706_vm4, %v1963_v6, %v1959_v29 }
 0x1ce   :  { %v4416_v26 = vpop.xlane.xlu1 %1556 }
 0x1cf   :  { %v1412_v53 = vpop.xlane.xlu0 %1411 }
 0x1d0   :  { %v1825_v16 = vrot.slane %v1412_v53, %v4293_v17 }
 0x1d2   :  { %v4418_v42 = vpop.xlane.xlu1 %1486  ;;  %v1826_v25 = vsel %vm1734_vm8, %v1825_v16, %v1821_v33 }
 0x1d3   :  { %v4420_v43 = vpop.xlane.xlu0 %1561  ;;  %v1899_v1 = vrot.slane %v4418_v42, %v4305_v38 }
 0x1d4   :  { %v1973_v60 = vrot.slane %v4420_v43, %v4283_v44 }
 0x1d6   :  { %v1417_v11 = vpop.xlane.xlu1 %1416 }
 0x1d7   :  { %v4422_v49 = vpop.xlane.xlu0 %1491  ;;  %v1830_v62 = vrot.slane %v1417_v11, %v4321_v14  ;;  %v1885_v11 = vsel %vm1706_vm4, %v1884_v24, %v1880_v23  ;;  %v1026_v23 = vld [vmem:[#allocation5] sm:$0xf] }
 0x1d8   :  { %v1890_v35 = vsel %vm1713_vm5, %v1889_v54, %v1885_v11  ;;  %v1904_v19 = vrot.slane %v4422_v49, %v4293_v17 }
 0x1d9   :  { %v1831_v53 = vsel %vm1741_vm9, %v1830_v62, %v1826_v25  ;;  %v1895_v27 = vsel %vm1720_vm6, %v1894_v3, %v1890_v35 }
 0x1da   :  { %v4424_v31 = vpop.xlane.xlu1 %1566  ;;  %v1900_v5 = vsel %vm1727_vm7, %v1899_v1, %v1895_v27 }
 0x1db   :  { %v1422_v55 = vpop.xlane.xlu0 %1421  ;;  %v1978_v13 = vrot.slane %v4424_v31, %v4305_v38 }
 0x1dc   :  { %v1835_v61 = vrot.slane %v1422_v55, %v4312_v7  ;;  %v1968_v55 = vrot.slane %v4416_v26, %v4286_v47 }
 0x1de   :  { %v4426_v20 = vpop.xlane.xlu1 %1496  ;;  %v1969_v37 = vsel %vm1713_vm5, %v1968_v55, %v1964_v28 }
 0x1df   :  { %v4428_v36 = vpop.xlane.xlu0 %1571  ;;  %v1909_v42 = vrot.slane %v4426_v20, %v4321_v14 }
 0x1e0   :  { %v1983_v44 = vrot.slane %v4428_v36, %v4293_v17  ;;  %v1974_v17 = vsel %vm1720_vm6, %v1973_v60, %v1969_v37  ;;  %v1905_v36 = vsel %vm1734_vm8, %v1904_v19, %v1900_v5 }
 0x1e1   :  { %v1979_v30 = vsel %vm1727_vm7, %v1978_v13, %v1974_v17 }
 0x1e2   :  { %v1427_v58 = vpop.xlane.xlu1 %1426 }
 0x1e3   :  { %v4430_v4 = vpop.xlane.xlu0 %1501  ;;  %v1840_v52 = vrot.slane %v1427_v58, %v4338_v18  ;;  %v1836_v58 = vsel %vm1748_vm10, %v1835_v61, %v1831_v53 }
 0x1e4   :  { %v1914_v43 = vrot.slane %v4430_v4, %v4312_v7 }
 0x1e6   :  { %v4434_v48 = vpop.xlane.xlu1 %1576 }
 0x1e7   :  { %v1432_v22 = vpop.xlane.xlu0 %1431  ;;  %v1988_v38 = vrot.slane %v4434_v48, %v4321_v14  ;;  %v1910_v14 = vsel %vm1741_vm9, %v1909_v42, %v1905_v36 }
 0x1e8   :  { %v1845_v50 = vrot.slane %v1432_v22, %v4327_v2  ;;  %v1841_v22 = vsel %vm1755_vm11, %v1840_v52, %v1836_v58  ;;  %v1915_v45 = vsel %vm1748_vm10, %v1914_v43, %v1910_v14 }
 0x1ea   :  { %v4444_v57 = vpop.xlane.xlu1 %1506  ;;  %v1846_v47 = vsel %vm1762_vm12, %v1845_v50, %v1841_v22 }
 0x1eb   :  { %v4446_v56 = vpop.xlane.xlu0 %1581  ;;  %v1919_v31 = vrot.slane %v4444_v57, %v4338_v18 }
 0x1ec   :  { %v1993_v4 = vrot.slane %v4446_v56, %v4312_v7 }
 0x1ed   :  { %v1920_v7 = vsel %vm1755_vm11, %v1919_v31, %v1915_v45 }
 0x1ee   :  { %v1437_v46 = vpop.xlane.xlu1 %1436 }
 0x1ef   :  { %v1512_v51 = vpop.xlane.xlu0 %1511  ;;  %v1850_v21 = vrot.slane %v1437_v46, %v4355_v40 }
 0x1f0   :  { %v1924_v16 = vrot.slane %v1512_v51, %v4327_v2 }
 0x1f1   :  { %v1851_v34 = vsel %vm1769_vm13, %v1850_v21, %v1846_v47 }
 0x1f2   :  { %v1587_v0 = vpop.xlane.xlu1 %1586  ;;  %v1925_v41 = vsel %vm1762_vm12, %v1924_v16, %v1920_v7 }
 0x1f3   :  { %v1442_v9 = vpop.xlane.xlu0 %1441  ;;  %v1998_v48 = vrot.slane %v1587_v0, %v4338_v18 }
 0x1f4   :  { %v1855_v26 = vrot.slane %v1442_v9, %v4346_v39 }
 0x1f6   :  { %v1856_v49 = vsel %vm1776_vm14, %v1855_v26, %v1851_v34  ;;  %v1517_v20 = vpop.xlane.xlu1 %1516 }
 0x1f7   :  { %v2016_v63 = vsel %vm2015_vm15, %v1856_v49, %v4382_v10  ;;  %v1592_v15 = vpop.xlane.xlu0 %1591  ;;  %v1929_v57 = vrot.slane %v1517_v20, %v4355_v40  ;;  %v1984_v10 = vsel %vm1734_vm8, %v1983_v44, %v1979_v30 }
 0x1f8   :  { %v2003_v32 = vrot.slane %v1592_v15, %v4327_v2  ;;  %v1989_v62 = vsel %vm1741_vm9, %v1988_v38, %v1984_v10 }
 0x1f9   :  { %v1994_v24 = vsel %vm1748_vm10, %v1993_v4, %v1989_v62  ;;  %v1930_v33 = vsel %vm1769_vm13, %v1929_v57, %v1925_v41 }
 0x1fa   :  { %v1522_v56 = vpop.xlane.xlu1 %1521  ;;  %v1999_v54 = vsel %vm1755_vm11, %v1998_v48, %v1994_v24 }
 0x1fb   :  { %v1597_v8 = vpop.xlane.xlu0 %1596  ;;  %v1934_v18 = vrot.slane %v1522_v56, %v4346_v39  ;;  %v2004_v6 = vsel %vm1762_vm12, %v2003_v32, %v1999_v54 }
 0x1fc   :  { %v2008_v61 = vrot.slane %v1597_v8, %v4355_v40 }
 0x1fd   :  { %v1935_v2 = vsel %vm1776_vm14, %v1934_v18, %v1930_v33 }
 0x1fe   :  { %v2018_v52 = vsel %vm2017_vm0, %v1935_v2, %v2016_v63  ;;  %v2009_v46 = vsel %vm1769_vm13, %v2008_v61, %v2004_v6  ;;  %v1602_v51 = vpop.xlane.xlu1 %1601 }
 0x1ff   :  { %v2013_v59 = vrot.slane %v1602_v51, %v4346_v39 }
 0x201   :  { %v2014_v40 = vsel %vm1776_vm14, %v2013_v59, %v2009_v46 }
 0x202   :  { %v2020_v25 = vsel %vm2019_vm1, %v2014_v40, %v2018_v52 }
 0x203   :  { %v2022_v50 = vadd.f32 %v2020_v25, %v1026_v23 }
 0x205   :  { %2023 = vst [vmem:[#allocation5] sm:$0xf] %v2022_v50 }
 0x206   :  { %2269 = shalt.err (!%p2266_p12)
}
 0x207   :  { %s2270_s24 = scalar_lea.hbm %s4549_s1, 64 }
 0x208   :  { %p2271_p13 = scmp.ne.s32.totalorder %s4549_s1, %s2270_s24  ;;  %p2274_p0 = scmp.lt.u32.totalorder %s2270_s24, %s4549_s1 }
 0x20a   :  { %p2276_p1 = pnand %p2274_p0, %p2271_p13 }
 0x20c   :  { %2279 = shalt.err (!%p2276_p1)
}
 0x20d   :  { %2033 = dma.vmem_to_hbm [thread:$0]  %s2031_s20, 64, %s4549_s1, [#allocation4]  }
 0x20e   :  { %2282 = dma.done.wait [#allocation4], 64  }
 0x20f   :  { %2283 = vsyncadd [#allocation4], 4294967232 }
 0x210   :  { %2037 = vsyncpa [#allocation3], 1 }
 0x211   :  { %2038 = vsyncpa [#allocation4], 1 }

</bundles_post_ra>
